<compile_context>
chip_gen: v7x
topology: tpu7x:2x2x1
jax: 0.10.0
libtpu: 0.0.40
codegen_flags: <defaults>
</compile_context>

<pallas_src>
import functools
import math

import jax
import jax.numpy as jnp
from jax.experimental import pallas as pl
from jax.experimental.pallas import tpu as pltpu

HEADS = 4          # must divide d_model
LN_EPS = 1e-5
# approx=True routes the divide to the EUP (otherwise idle); ~1e-3 relative error,
# fine for inference.  Set False for exact division (bit-closer to PyTorch).
APPROX_RECIPROCAL = True


# ---------------------------------------------------------------------------
# in-kernel helpers (operate on jnp arrays loaded from VMEM refs)
# ---------------------------------------------------------------------------
def _recip(x):
    if APPROX_RECIPROCAL:
        return pl.reciprocal(x, approx=True)
    return 1.0 / x


def _erf(x):
    # Abramowitz & Stegun 7.1.26 rational approximation, |err| < 1.5e-7
    # (exact at f32 precision) -> keeps nn.GELU() (erf) parity without relying
    # on an erf lowering.
    a1, a2, a3, a4, a5 = 0.254829592, -0.284496736, 1.421413741, -1.453152027, 1.061405429
    p = 0.3275911
    ax = jnp.abs(x)
    t = _recip(1.0 + p * ax)                      # EUP reciprocal, frees VALU
    poly = ((((a5 * t + a4) * t + a3) * t + a2) * t + a1) * t
    y = 1.0 - poly * jnp.exp(-ax * ax)
    return jnp.where(x >= 0.0, y, -y)


def _gelu_exact(x):
    # nn.GELU() default is the exact (erf) GELU.
    return 0.5 * x * (1.0 + _erf(x * (1.0 / math.sqrt(2.0))))


def _layernorm(x, gamma, beta, eps=LN_EPS):
    mu = jnp.mean(x, axis=-1, keepdims=True)
    xc = x - mu
    var = jnp.mean(xc * xc, axis=-1, keepdims=True)
    return xc * jax.lax.rsqrt(var + eps) * gamma + beta


def _sdpa(q, k, v, add_mask, heads, batched_heads):
    """Scaled-dot-product attention.  q (T,D) bf16, k/v (S,D) bf16,
    add_mask (T,S) f32 or None.  Returns (T,D) f32 (pre out-projection)."""
    T, D = q.shape
    S = k.shape[0]
    hd = D // heads
    scale = 1.0 / math.sqrt(hd)

    if batched_heads:
        # Only taken when head_dim >= 128: the reshape/transpose is then a
        # tile-aligned shuffle rather than a lane-splitting XLU relayout.
        qh = q.reshape(T, heads, hd).transpose(1, 0, 2)
        kh = k.reshape(S, heads, hd).transpose(1, 0, 2)
        vh = v.reshape(S, heads, hd).transpose(1, 0, 2)
        s = jnp.einsum('htd,hsd->hts', qh, kh,
                       preferred_element_type=jnp.float32) * scale
        if add_mask is not None:
            s = s + add_mask[None]
        s = s - jnp.max(s, axis=-1, keepdims=True)
        p = jnp.exp(s)
        p = p * _recip(jnp.sum(p, axis=-1, keepdims=True))
        o = jnp.einsum('hts,hsd->htd', p.astype(jnp.bfloat16), vh,
                       preferred_element_type=jnp.float32)
        return o.transpose(1, 0, 2).reshape(T, D)

    # Per-head lane-slice loop: known-good lowering for small head_dim.
    outs = []
    for h in range(heads):
        sl = slice(h * hd, (h + 1) * hd)
        s = jax.lax.dot_general(q[:, sl], k[:, sl], (((1,), (1,)), ((), ())),
                                preferred_element_type=jnp.float32) * scale
        if add_mask is not None:
            s = s + add_mask
        s = s - jnp.max(s, axis=-1, keepdims=True)
        p = jnp.exp(s)
        p = p * _recip(jnp.sum(p, axis=-1, keepdims=True))
        outs.append(jnp.dot(p.astype(jnp.bfloat16), v[:, sl],
                            preferred_element_type=jnp.float32))
    return jnp.concatenate(outs, axis=-1)


# ---------------------------------------------------------------------------
# Pallas kernel: one grid step == Bb batch elements
# ---------------------------------------------------------------------------
def decoder_block_kernel(x_ref, e_ref, trg_ref, pad_ref,
                         w_qkv1_ref, b_qkv1_ref, w_o1_ref, b_o1_ref, ln1_ref,
                         w_q2_ref, b_q2_ref, w_kv2_ref, b_kv2_ref,
                         w_o2_ref, b_o2_ref, ln2_ref,
                         w_ff1_ref, b_ff1_ref, w_ff2_ref, b_ff2_ref, ln3_ref,
                         o_ref, *, heads, batched_heads):
    Bb, T, D = x_ref.shape
    S = e_ref.shape[1]
    M = Bb * T

    # bf16 copies feed the MXU; one f32 upcast of x carries the residual.
    x_bf = x_ref[...].reshape(M, D)                       # (M, D) bf16
    x_f32 = x_bf.astype(jnp.float32)
    e_bf = e_ref[...].reshape(Bb * S, D)                  # (Bb*S, D) bf16
    trg_add = trg_ref[...]                                # (T, T) f32, shared

    # --- 1. self-attention (attn_mask + key_padding_mask), residual, norm1 ---
    qkv = (jnp.dot(x_bf, w_qkv1_ref[...], preferred_element_type=jnp.float32)
           + b_qkv1_ref[...])                             # (M, 3D) f32
    qkv_bf = qkv.astype(jnp.bfloat16)                     # single cast, not per-head
    rows = []
    for b in range(Bb):                                   # static, small trip count
        r = b * T
        add_mask = trg_add + pad_ref[b]                   # (T,T)+(1,T), hoisted
        rows.append(_sdpa(qkv_bf[r:r + T, 0:D],
                          qkv_bf[r:r + T, D:2 * D],
                          qkv_bf[r:r + T, 2 * D:3 * D],
                          add_mask, heads, batched_heads))
    a1 = rows[0] if Bb == 1 else jnp.concatenate(rows, axis=0)   # (M, D) f32
    a1 = (jnp.dot(a1.astype(jnp.bfloat16), w_o1_ref[...],
                  preferred_element_type=jnp.float32) + b_o1_ref[...])
    y = _layernorm(x_f32 + a1, ln1_ref[0:1, :], ln1_ref[1:2, :])

    # --- 2. cross-attention over encoder outputs (no masks), residual, norm2 --
    y_bf = y.astype(jnp.bfloat16)
    q_all = (jnp.dot(y_bf, w_q2_ref[...], preferred_element_type=jnp.float32)
             + b_q2_ref[...]).astype(jnp.bfloat16)        # (M, D)
    kv_all = (jnp.dot(e_bf, w_kv2_ref[...], preferred_element_type=jnp.float32)
              + b_kv2_ref[...]).astype(jnp.bfloat16)      # (Bb*S, 2D)
    rows = []
    for b in range(Bb):
        rq, rk = b * T, b * S
        rows.append(_sdpa(q_all[rq:rq + T, :],
                          kv_all[rk:rk + S, 0:D],
                          kv_all[rk:rk + S, D:2 * D],
                          None, heads, batched_heads))
    a2 = rows[0] if Bb == 1 else jnp.concatenate(rows, axis=0)
    a2 = (jnp.dot(a2.astype(jnp.bfloat16), w_o2_ref[...],
                  preferred_element_type=jnp.float32) + b_o2_ref[...])
    y = _layernorm(y + a2, ln2_ref[0:1, :], ln2_ref[1:2, :])

    # --- 3. feed-forward: Linear -> GELU(exact erf) -> Linear, residual, norm3
    h = (jnp.dot(y.astype(jnp.bfloat16), w_ff1_ref[...],
                 preferred_element_type=jnp.float32) + b_ff1_ref[...])
    h = _gelu_exact(h)
    ff = (jnp.dot(h.astype(jnp.bfloat16), w_ff2_ref[...],
                  preferred_element_type=jnp.float32) + b_ff2_ref[...])
    y = _layernorm(y + ff, ln3_ref[0:1, :], ln3_ref[1:2, :])

    o_ref[...] = y.reshape(Bb, T, D).astype(o_ref.dtype)


# ---------------------------------------------------------------------------
# wrapper
# ---------------------------------------------------------------------------
def _pick_block_batch(B, T, target_rows=256):
    """Largest divisor of B with Bb*T near target_rows, keeping >=2 grid steps
    (for v7x megacore sharding) whenever B allows it."""
    target = max(1, -(-target_rows // T))                 # ceil(target_rows / T)
    divisors = [d for d in range(1, B + 1) if B % d == 0]
    cands = [d for d in divisors if B // d >= 2] or divisors
    le = [d for d in cands if d <= target]
    return max(le) if le else min(cands)


def _vmem_limit_bytes():
    # Generation-aware scoped VMEM: ~48 MiB on v7x (64 MiB physical),
    # ~100 MiB on v5e/v6e (128 MiB physical).
    try:
        cap = int(pltpu.get_tpu_info().vmem_capacity_bytes)
    except Exception:  # noqa: BLE001 - conservative default if query unavailable
        cap = 128 << 20
    return int(min(cap - (16 << 20), 100 << 20))


def _build_call(B, T, S, D, Bb, param_shapes, out_dtype, *,
                batched_heads, single_buffer_weights):
    kernel = functools.partial(decoder_block_kernel,
                               heads=HEADS, batched_heads=batched_heads)

    def batched(shape):
        return pl.BlockSpec(shape, lambda b: (b, 0, 0))

    def resident(shape):
        nd = len(shape)
        index_map = (lambda b, _nd=nd: (0,) * _nd)
        if single_buffer_weights:
            # Constant block index across the grid -> one VMEM copy suffices
            # (no double-buffering); halves resident weight footprint.
            return pl.BlockSpec(shape, index_map, pipeline_mode=pl.Buffered(1))
        return pl.BlockSpec(shape, index_map)

    in_specs = ([
        batched((Bb, T, D)),     # x (bf16)
        batched((Bb, S, D)),     # e_outputs (bf16)
        resident((T, T)),        # target attn mask (additive), shared by all b
        batched((Bb, 1, T)),     # per-batch key-padding additive row
    ] + [resident(s) for s in param_shapes])

    return pl.pallas_call(
        kernel,
        out_shape=jax.ShapeDtypeStruct((B, T, D), out_dtype),
        grid=(B // Bb,),
        in_specs=in_specs,
        out_specs=pl.BlockSpec((Bb, T, D), lambda b: (b, 0, 0)),
        compiler_params=pltpu.CompilerParams(
            dimension_semantics=("parallel",),          # batch blocks independent
            vmem_limit_bytes=_vmem_limit_bytes()),
    )


def transformer_decoder_block(x, e_outputs, trg_mask, pad_mask, params):
    B, T, D = x.shape
    S = e_outputs.shape[1]
    assert D % HEADS == 0
    out_dtype = x.dtype

    (w_qkv1, b_qkv1, w_o1, b_o1, ln1,
     w_qkv2, b_qkv2, w_o2, b_o2, ln2,
     w_ff1, b_ff1, w_ff2, b_ff2, ln3) = params

    # Split attention2's fused in_proj into Q (decoder stream) and KV (encoder
    # outputs) once, outside the kernel, so the kernel never lane-slices a
    # weight ref at a non-tile-aligned offset.
    w_q2, w_kv2 = w_qkv2[:, :D], w_qkv2[:, D:]
    b_q2, b_kv2 = b_qkv2[:, :D], b_qkv2[:, D:]

    # PyTorch bool-mask semantics (True -> disallowed; -1e9 as finite stand-in
    # for -inf), shipped as tiny tensors instead of a [B,T,T] blob.
    neg = jnp.float32(-1e9)
    trg_add = jnp.where(trg_mask, neg, jnp.float32(0.0)).astype(jnp.float32)
    pad_add = jnp.where(pad_mask, neg, jnp.float32(0.0)).astype(jnp.float32)[:, None, :]

    # Activations stream in bf16; f32 restored in-kernel for LN/softmax/residuals.
    x_bf = x.astype(jnp.bfloat16)
    e_bf = e_outputs.astype(jnp.bfloat16)

    kparams = (w_qkv1, b_qkv1, w_o1, b_o1, ln1,
               w_q2, b_q2, w_kv2, b_kv2, w_o2, b_o2, ln2,
               w_ff1, b_ff1, w_ff2, b_ff2, ln3)
    shapes = [tuple(p.shape) for p in kparams]

    Bb = _pick_block_batch(B, T)
    batched_heads = (D // HEADS) >= 128   # lane-aligned heads only; else per-head loop

    last_err = None
    # Prefer single-buffered resident weights; fall back to default pipelining if
    # this JAX/Mosaic build rejects pl.Buffered(1).
    for single_buf in (True, False):
        try:
            call = _build_call(B, T, S, D, Bb, shapes, out_dtype,
                               batched_heads=batched_heads,
                               single_buffer_weights=single_buf)
            return call(x_bf, e_bf, trg_add, pad_add, *kparams)
        except Exception as err:  # noqa: BLE001 - retry with conservative lowering
            last_err = err
    raise last_err


def init_params(key, d_model, expansion=4):
    """Deterministic synthetic parameters.

    Weight matrices are stored (in_features, out_features) — the transpose of
    PyTorch's nn.Linear / in_proj_weight layout — and in bf16 so the kernel
    runs bf16 x bf16 -> f32 on the MXU.  Biases and LayerNorm params stay f32.
    """
    D = d_model
    F = expansion * D
    ks = jax.random.split(key, 12)

    def w(k, shape, scale):
        return (scale * jax.random.normal(k, shape)).astype(jnp.bfloat16)

    def b(k, shape):
        return (0.02 * jax.random.normal(k, shape)).astype(jnp.float32)

    ln = jnp.concatenate([jnp.ones((1, D)), jnp.zeros((1, D))], axis=0).astype(jnp.float32)

    params = [
        # attention1: fused in_proj (D,3D), bias (1,3D), out_proj (D,D), bias (1,D), norm1
        w(ks[0], (D, 3 * D), 1.0 / math.sqrt(D)), b(ks[1], (1, 3 * D)),
        w(ks[2], (D, D), 1.0 / math.sqrt(D)),     b(ks[3], (1, D)),
        ln,
        # attention2
        w(ks[4], (D, 3 * D), 1.0 / math.sqrt(D)), b(ks[5], (1, 3 * D)),
        w(ks[6], (D, D), 1.0 / math.sqrt(D)),     b(ks[7], (1, D)),
        ln,
        # feed-forward
        w(ks[8], (D, F), 1.0 / math.sqrt(D)),     b(ks[9], (1, F)),
        w(ks[10], (F, D), 1.0 / math.sqrt(F)),    b(ks[11], (1, D)),
        ln,
    ]
    return params


if __name__ == "__main__":
    B, T, S, D = 2, 8, 8, 32  # d_model=32, heads=4 -> head_dim=8

    key = jax.random.PRNGKey(0)
    kx, ke, kp = jax.random.split(key, 3)

    x = jax.random.normal(kx, (B, T, D), dtype=jnp.float32)
    e_outputs = jax.random.normal(ke, (B, S, D), dtype=jnp.float32)

    # causal target mask (True above the diagonal = disallowed)
    trg_mask = jnp.triu(jnp.ones((T, T), dtype=bool), k=1)
    # key padding mask: pad out the last target token of batch element 1
    pad_mask = jnp.zeros((B, T), dtype=bool).at[1, T - 1].set(True)

    params = init_params(kp, D)

    out = transformer_decoder_block(x, e_outputs, trg_mask, pad_mask, params)
    out = jax.block_until_ready(out)
    assert out.shape == (B, T, D) and bool(jnp.all(jnp.isfinite(out)))
    print("KERNEL_OK")
</pallas_src>

<mosaic_0001>
module attributes {stable_mosaic.version = 11 : i64} {
  func.func @decoder_block_kernel(%arg0: i32, %arg1: memref<1x8x32xbf16, #tpu.memory_space<vmem>>, %arg2: memref<1x8x32xbf16, #tpu.memory_space<vmem>>, %arg3: memref<8x8xf32, #tpu.memory_space<vmem>>, %arg4: memref<1x1x8xf32, #tpu.memory_space<vmem>>, %arg5: memref<32x96xbf16, #tpu.memory_space<vmem>>, %arg6: memref<1x96xf32, #tpu.memory_space<vmem>>, %arg7: memref<32x32xbf16, #tpu.memory_space<vmem>>, %arg8: memref<1x32xf32, #tpu.memory_space<vmem>>, %arg9: memref<2x32xf32, #tpu.memory_space<vmem>>, %arg10: memref<32x32xbf16, #tpu.memory_space<vmem>>, %arg11: memref<1x32xf32, #tpu.memory_space<vmem>>, %arg12: memref<32x64xbf16, #tpu.memory_space<vmem>>, %arg13: memref<1x64xf32, #tpu.memory_space<vmem>>, %arg14: memref<32x32xbf16, #tpu.memory_space<vmem>>, %arg15: memref<1x32xf32, #tpu.memory_space<vmem>>, %arg16: memref<2x32xf32, #tpu.memory_space<vmem>>, %arg17: memref<32x128xbf16, #tpu.memory_space<vmem>>, %arg18: memref<1x128xf32, #tpu.memory_space<vmem>>, %arg19: memref<128x32xbf16, #tpu.memory_space<vmem>>, %arg20: memref<1x32xf32, #tpu.memory_space<vmem>>, %arg21: memref<2x32xf32, #tpu.memory_space<vmem>>, %arg22: memref<1x8x32xf32, #tpu.memory_space<vmem>>) attributes {dimension_semantics = [#tpu.dimension_semantics<parallel>], iteration_bounds = array<i64: 2>, scalar_prefetch = 0 : i64, scratch_operands = 0 : i64, tpu.core_type = #tpu.core_type<tc>, window_params = [{transform_indices = @transform_0, window_bounds = array<i64: 1, 8, 32>}, {transform_indices = @transform_1, window_bounds = array<i64: 1, 8, 32>}, {pipeline_mode = #tpu.pipeline_mode<synchronous>, transform_indices = @transform_2, window_bounds = array<i64: 8, 8>}, {transform_indices = @transform_3, window_bounds = array<i64: 1, 1, 8>}, {pipeline_mode = #tpu.pipeline_mode<synchronous>, transform_indices = @transform_4, window_bounds = array<i64: 32, 96>}, {pipeline_mode = #tpu.pipeline_mode<synchronous>, transform_indices = @transform_5, window_bounds = array<i64: 1, 96>}, {pipeline_mode = #tpu.pipeline_mode<synchronous>, transform_indices = @transform_6, window_bounds = array<i64: 32, 32>}, {pipeline_mode = #tpu.pipeline_mode<synchronous>, transform_indices = @transform_7, window_bounds = array<i64: 1, 32>}, {pipeline_mode = #tpu.pipeline_mode<synchronous>, transform_indices = @transform_8, window_bounds = array<i64: 2, 32>}, {pipeline_mode = #tpu.pipeline_mode<synchronous>, transform_indices = @transform_9, window_bounds = array<i64: 32, 32>}, {pipeline_mode = #tpu.pipeline_mode<synchronous>, transform_indices = @transform_10, window_bounds = array<i64: 1, 32>}, {pipeline_mode = #tpu.pipeline_mode<synchronous>, transform_indices = @transform_11, window_bounds = array<i64: 32, 64>}, {pipeline_mode = #tpu.pipeline_mode<synchronous>, transform_indices = @transform_12, window_bounds = array<i64: 1, 64>}, {pipeline_mode = #tpu.pipeline_mode<synchronous>, transform_indices = @transform_13, window_bounds = array<i64: 32, 32>}, {pipeline_mode = #tpu.pipeline_mode<synchronous>, transform_indices = @transform_14, window_bounds = array<i64: 1, 32>}, {pipeline_mode = #tpu.pipeline_mode<synchronous>, transform_indices = @transform_15, window_bounds = array<i64: 2, 32>}, {pipeline_mode = #tpu.pipeline_mode<synchronous>, transform_indices = @transform_16, window_bounds = array<i64: 32, 128>}, {pipeline_mode = #tpu.pipeline_mode<synchronous>, transform_indices = @transform_17, window_bounds = array<i64: 1, 128>}, {pipeline_mode = #tpu.pipeline_mode<synchronous>, transform_indices = @transform_18, window_bounds = array<i64: 128, 32>}, {pipeline_mode = #tpu.pipeline_mode<synchronous>, transform_indices = @transform_19, window_bounds = array<i64: 1, 32>}, {pipeline_mode = #tpu.pipeline_mode<synchronous>, transform_indices = @transform_20, window_bounds = array<i64: 2, 32>}, {transform_indices = @transform_21, window_bounds = array<i64: 1, 8, 32>}]} {
    %c0 = arith.constant 0 : index
    %c0_0 = arith.constant 0 : index
    %c0_1 = arith.constant 0 : index
    %0 = vector.load %arg1[%c0, %c0_0, %c0_1] : memref<1x8x32xbf16, #tpu.memory_space<vmem>>, vector<1x8x32xbf16>
    %1 = vector.shape_cast %0 : vector<1x8x32xbf16> to vector<8x32xbf16>
    %2 = arith.extf %1 : vector<8x32xbf16> to vector<8x32xf32>
    %c0_2 = arith.constant 0 : index
    %c0_3 = arith.constant 0 : index
    %c0_4 = arith.constant 0 : index
    %3 = vector.load %arg2[%c0_2, %c0_3, %c0_4] : memref<1x8x32xbf16, #tpu.memory_space<vmem>>, vector<1x8x32xbf16>
    %4 = vector.shape_cast %3 : vector<1x8x32xbf16> to vector<8x32xbf16>
    %c0_5 = arith.constant 0 : index
    %c0_6 = arith.constant 0 : index
    %5 = vector.load %arg3[%c0_5, %c0_6] : memref<8x8xf32, #tpu.memory_space<vmem>>, vector<8x8xf32>
    %c0_7 = arith.constant 0 : index
    %c0_8 = arith.constant 0 : index
    %6 = vector.load %arg5[%c0_7, %c0_8] : memref<32x96xbf16, #tpu.memory_space<vmem>>, vector<32x96xbf16>
    %cst = arith.constant dense<0.000000e+00> : vector<8x96xf32>
    %7 = tpu.matmul %1, %6, %cst {dimension_numbers = #tpu.dot_dimension_numbers<[1], [0], [0], [1], [0, 0, 1, 1], [], []>} : vector<8x32xbf16>, vector<32x96xbf16>, vector<8x96xf32> -> vector<8x96xf32>
    %c0_9 = arith.constant 0 : index
    %c0_10 = arith.constant 0 : index
    %8 = vector.load %arg6[%c0_9, %c0_10] : memref<1x96xf32, #tpu.memory_space<vmem>>, vector<1x96xf32>
    %9 = vector.broadcast %8 : vector<1x96xf32> to vector<8x96xf32>
    %10 = arith.addf %7, %9 : vector<8x96xf32>
    %11 = arith.truncf %10 : vector<8x96xf32> to vector<8x96xbf16>
    %c0_11 = arith.constant 0 : index
    %c0_12 = arith.constant 0 : index
    %c0_13 = arith.constant 0 : index
    %12 = vector.load %arg4[%c0_11, %c0_12, %c0_13] : memref<1x1x8xf32, #tpu.memory_space<vmem>>, vector<1x1x8xf32>
    %13 = vector.shape_cast %12 : vector<1x1x8xf32> to vector<1x8xf32>
    %14 = vector.broadcast %13 : vector<1x8xf32> to vector<8x8xf32>
    %15 = arith.addf %5, %14 : vector<8x8xf32>
    %16 = vector.extract_strided_slice %11 {offsets = [0, 0], sizes = [8, 32], strides = [1, 1]} : vector<8x96xbf16> to vector<8x32xbf16>
    %17 = vector.extract_strided_slice %11 {offsets = [0, 32], sizes = [8, 32], strides = [1, 1]} : vector<8x96xbf16> to vector<8x32xbf16>
    %18 = vector.extract_strided_slice %11 {offsets = [0, 64], sizes = [8, 32], strides = [1, 1]} : vector<8x96xbf16> to vector<8x32xbf16>
    %19 = vector.extract_strided_slice %16 {offsets = [0, 0], sizes = [8, 8], strides = [1, 1]} : vector<8x32xbf16> to vector<8x8xbf16>
    %20 = vector.extract_strided_slice %17 {offsets = [0, 0], sizes = [8, 8], strides = [1, 1]} : vector<8x32xbf16> to vector<8x8xbf16>
    %cst_14 = arith.constant dense<0.000000e+00> : vector<8x8xf32>
    %21 = tpu.matmul %19, %20, %cst_14 {dimension_numbers = #tpu.dot_dimension_numbers<[1], [1], [0], [0], [0, 0, 1, 0], [], []>} : vector<8x8xbf16>, vector<8x8xbf16>, vector<8x8xf32> -> vector<8x8xf32>
    %cst_15 = arith.constant 0.353553385 : f32
    %22 = vector.broadcast %cst_15 : f32 to vector<8x8xf32>
    %23 = arith.mulf %21, %22 : vector<8x8xf32>
    %24 = arith.addf %23, %15 : vector<8x8xf32>
    %cst_16 = arith.constant dense<0xFF800000> : vector<8xf32>
    %25 = vector.multi_reduction <maximumf>, %24, %cst_16 [1] : vector<8x8xf32> to vector<8xf32>
    %26 = vector.shape_cast %25 : vector<8xf32> to vector<8x1xf32>
    %27 = vector.broadcast %26 : vector<8x1xf32> to vector<8x8xf32>
    %28 = arith.subf %24, %27 : vector<8x8xf32>
    %29 = math.exp %28 : vector<8x8xf32>
    %cst_17 = arith.constant dense<0.000000e+00> : vector<8xf32>
    %30 = vector.multi_reduction <add>, %29, %cst_17 [1] : vector<8x8xf32> to vector<8xf32>
    %31 = vector.shape_cast %30 : vector<8xf32> to vector<8x1xf32>
    %32 = tpu.reciprocal %31 {approx = true} : vector<8x1xf32> -> vector<8x1xf32>
    %33 = vector.broadcast %32 : vector<8x1xf32> to vector<8x8xf32>
    %34 = arith.mulf %29, %33 : vector<8x8xf32>
    %35 = arith.truncf %34 : vector<8x8xf32> to vector<8x8xbf16>
    %36 = vector.extract_strided_slice %18 {offsets = [0, 0], sizes = [8, 8], strides = [1, 1]} : vector<8x32xbf16> to vector<8x8xbf16>
    %cst_18 = arith.constant dense<0.000000e+00> : vector<8x8xf32>
    %37 = tpu.matmul %35, %36, %cst_18 {dimension_numbers = #tpu.dot_dimension_numbers<[1], [0], [0], [1], [0, 0, 1, 1], [], []>} : vector<8x8xbf16>, vector<8x8xbf16>, vector<8x8xf32> -> vector<8x8xf32>
    %38 = vector.extract_strided_slice %16 {offsets = [0, 8], sizes = [8, 8], strides = [1, 1]} : vector<8x32xbf16> to vector<8x8xbf16>
    %39 = vector.extract_strided_slice %17 {offsets = [0, 8], sizes = [8, 8], strides = [1, 1]} : vector<8x32xbf16> to vector<8x8xbf16>
    %cst_19 = arith.constant dense<0.000000e+00> : vector<8x8xf32>
    %40 = tpu.matmul %38, %39, %cst_19 {dimension_numbers = #tpu.dot_dimension_numbers<[1], [1], [0], [0], [0, 0, 1, 0], [], []>} : vector<8x8xbf16>, vector<8x8xbf16>, vector<8x8xf32> -> vector<8x8xf32>
    %cst_20 = arith.constant 0.353553385 : f32
    %41 = vector.broadcast %cst_20 : f32 to vector<8x8xf32>
    %42 = arith.mulf %40, %41 : vector<8x8xf32>
    %43 = arith.addf %42, %15 : vector<8x8xf32>
    %cst_21 = arith.constant dense<0xFF800000> : vector<8xf32>
    %44 = vector.multi_reduction <maximumf>, %43, %cst_21 [1] : vector<8x8xf32> to vector<8xf32>
    %45 = vector.shape_cast %44 : vector<8xf32> to vector<8x1xf32>
    %46 = vector.broadcast %45 : vector<8x1xf32> to vector<8x8xf32>
    %47 = arith.subf %43, %46 : vector<8x8xf32>
    %48 = math.exp %47 : vector<8x8xf32>
    %cst_22 = arith.constant dense<0.000000e+00> : vector<8xf32>
    %49 = vector.multi_reduction <add>, %48, %cst_22 [1] : vector<8x8xf32> to vector<8xf32>
    %50 = vector.shape_cast %49 : vector<8xf32> to vector<8x1xf32>
    %51 = tpu.reciprocal %50 {approx = true} : vector<8x1xf32> -> vector<8x1xf32>
    %52 = vector.broadcast %51 : vector<8x1xf32> to vector<8x8xf32>
    %53 = arith.mulf %48, %52 : vector<8x8xf32>
    %54 = arith.truncf %53 : vector<8x8xf32> to vector<8x8xbf16>
    %55 = vector.extract_strided_slice %18 {offsets = [0, 8], sizes = [8, 8], strides = [1, 1]} : vector<8x32xbf16> to vector<8x8xbf16>
    %cst_23 = arith.constant dense<0.000000e+00> : vector<8x8xf32>
    %56 = tpu.matmul %54, %55, %cst_23 {dimension_numbers = #tpu.dot_dimension_numbers<[1], [0], [0], [1], [0, 0, 1, 1], [], []>} : vector<8x8xbf16>, vector<8x8xbf16>, vector<8x8xf32> -> vector<8x8xf32>
    %57 = vector.extract_strided_slice %16 {offsets = [0, 16], sizes = [8, 8], strides = [1, 1]} : vector<8x32xbf16> to vector<8x8xbf16>
    %58 = vector.extract_strided_slice %17 {offsets = [0, 16], sizes = [8, 8], strides = [1, 1]} : vector<8x32xbf16> to vector<8x8xbf16>
    %cst_24 = arith.constant dense<0.000000e+00> : vector<8x8xf32>
    %59 = tpu.matmul %57, %58, %cst_24 {dimension_numbers = #tpu.dot_dimension_numbers<[1], [1], [0], [0], [0, 0, 1, 0], [], []>} : vector<8x8xbf16>, vector<8x8xbf16>, vector<8x8xf32> -> vector<8x8xf32>
    %cst_25 = arith.constant 0.353553385 : f32
    %60 = vector.broadcast %cst_25 : f32 to vector<8x8xf32>
    %61 = arith.mulf %59, %60 : vector<8x8xf32>
    %62 = arith.addf %61, %15 : vector<8x8xf32>
    %cst_26 = arith.constant dense<0xFF800000> : vector<8xf32>
    %63 = vector.multi_reduction <maximumf>, %62, %cst_26 [1] : vector<8x8xf32> to vector<8xf32>
    %64 = vector.shape_cast %63 : vector<8xf32> to vector<8x1xf32>
    %65 = vector.broadcast %64 : vector<8x1xf32> to vector<8x8xf32>
    %66 = arith.subf %62, %65 : vector<8x8xf32>
    %67 = math.exp %66 : vector<8x8xf32>
    %cst_27 = arith.constant dense<0.000000e+00> : vector<8xf32>
    %68 = vector.multi_reduction <add>, %67, %cst_27 [1] : vector<8x8xf32> to vector<8xf32>
    %69 = vector.shape_cast %68 : vector<8xf32> to vector<8x1xf32>
    %70 = tpu.reciprocal %69 {approx = true} : vector<8x1xf32> -> vector<8x1xf32>
    %71 = vector.broadcast %70 : vector<8x1xf32> to vector<8x8xf32>
    %72 = arith.mulf %67, %71 : vector<8x8xf32>
    %73 = arith.truncf %72 : vector<8x8xf32> to vector<8x8xbf16>
    %74 = vector.extract_strided_slice %18 {offsets = [0, 16], sizes = [8, 8], strides = [1, 1]} : vector<8x32xbf16> to vector<8x8xbf16>
    %cst_28 = arith.constant dense<0.000000e+00> : vector<8x8xf32>
    %75 = tpu.matmul %73, %74, %cst_28 {dimension_numbers = #tpu.dot_dimension_numbers<[1], [0], [0], [1], [0, 0, 1, 1], [], []>} : vector<8x8xbf16>, vector<8x8xbf16>, vector<8x8xf32> -> vector<8x8xf32>
    %76 = vector.extract_strided_slice %16 {offsets = [0, 24], sizes = [8, 8], strides = [1, 1]} : vector<8x32xbf16> to vector<8x8xbf16>
    %77 = vector.extract_strided_slice %17 {offsets = [0, 24], sizes = [8, 8], strides = [1, 1]} : vector<8x32xbf16> to vector<8x8xbf16>
    %cst_29 = arith.constant dense<0.000000e+00> : vector<8x8xf32>
    %78 = tpu.matmul %76, %77, %cst_29 {dimension_numbers = #tpu.dot_dimension_numbers<[1], [1], [0], [0], [0, 0, 1, 0], [], []>} : vector<8x8xbf16>, vector<8x8xbf16>, vector<8x8xf32> -> vector<8x8xf32>
    %cst_30 = arith.constant 0.353553385 : f32
    %79 = vector.broadcast %cst_30 : f32 to vector<8x8xf32>
    %80 = arith.mulf %78, %79 : vector<8x8xf32>
    %81 = arith.addf %80, %15 : vector<8x8xf32>
    %cst_31 = arith.constant dense<0xFF800000> : vector<8xf32>
    %82 = vector.multi_reduction <maximumf>, %81, %cst_31 [1] : vector<8x8xf32> to vector<8xf32>
    %83 = vector.shape_cast %82 : vector<8xf32> to vector<8x1xf32>
    %84 = vector.broadcast %83 : vector<8x1xf32> to vector<8x8xf32>
    %85 = arith.subf %81, %84 : vector<8x8xf32>
    %86 = math.exp %85 : vector<8x8xf32>
    %cst_32 = arith.constant dense<0.000000e+00> : vector<8xf32>
    %87 = vector.multi_reduction <add>, %86, %cst_32 [1] : vector<8x8xf32> to vector<8xf32>
    %88 = vector.shape_cast %87 : vector<8xf32> to vector<8x1xf32>
    %89 = tpu.reciprocal %88 {approx = true} : vector<8x1xf32> -> vector<8x1xf32>
    %90 = vector.broadcast %89 : vector<8x1xf32> to vector<8x8xf32>
    %91 = arith.mulf %86, %90 : vector<8x8xf32>
    %92 = arith.truncf %91 : vector<8x8xf32> to vector<8x8xbf16>
    %93 = vector.extract_strided_slice %18 {offsets = [0, 24], sizes = [8, 8], strides = [1, 1]} : vector<8x32xbf16> to vector<8x8xbf16>
    %cst_33 = arith.constant dense<0.000000e+00> : vector<8x8xf32>
    %94 = tpu.matmul %92, %93, %cst_33 {dimension_numbers = #tpu.dot_dimension_numbers<[1], [0], [0], [1], [0, 0, 1, 1], [], []>} : vector<8x8xbf16>, vector<8x8xbf16>, vector<8x8xf32> -> vector<8x8xf32>
    %95 = tpu.concatenate %37, %56, %75, %94 in 1 : vector<8x8xf32>, vector<8x8xf32>, vector<8x8xf32>, vector<8x8xf32> -> vector<8x32xf32>
    %96 = arith.truncf %95 : vector<8x32xf32> to vector<8x32xbf16>
    %c0_34 = arith.constant 0 : index
    %c0_35 = arith.constant 0 : index
    %97 = vector.load %arg7[%c0_34, %c0_35] : memref<32x32xbf16, #tpu.memory_space<vmem>>, vector<32x32xbf16>
    %cst_36 = arith.constant dense<0.000000e+00> : vector<8x32xf32>
    %98 = tpu.matmul %96, %97, %cst_36 {dimension_numbers = #tpu.dot_dimension_numbers<[1], [0], [0], [1], [0, 0, 1, 1], [], []>} : vector<8x32xbf16>, vector<32x32xbf16>, vector<8x32xf32> -> vector<8x32xf32>
    %c0_37 = arith.constant 0 : index
    %c0_38 = arith.constant 0 : index
    %99 = vector.load %arg8[%c0_37, %c0_38] : memref<1x32xf32, #tpu.memory_space<vmem>>, vector<1x32xf32>
    %100 = vector.broadcast %99 : vector<1x32xf32> to vector<8x32xf32>
    %101 = arith.addf %98, %100 : vector<8x32xf32>
    %102 = arith.addf %2, %101 : vector<8x32xf32>
    %c0_39 = arith.constant 0 : index
    %c0_40 = arith.constant 0 : index
    %103 = vector.load %arg9[%c0_39, %c0_40] : memref<2x32xf32, #tpu.memory_space<vmem>>, vector<1x32xf32>
    %c1 = arith.constant 1 : index
    %c0_41 = arith.constant 0 : index
    %104 = vector.load %arg9[%c1, %c0_41] : memref<2x32xf32, #tpu.memory_space<vmem>>, vector<1x32xf32>
    %cst_42 = arith.constant dense<0.000000e+00> : vector<8xf32>
    %105 = vector.multi_reduction <add>, %102, %cst_42 [1] : vector<8x32xf32> to vector<8xf32>
    %106 = vector.shape_cast %105 : vector<8xf32> to vector<8x1xf32>
    %cst_43 = arith.constant 3.200000e+01 : f32
    %107 = vector.broadcast %cst_43 : f32 to vector<8x1xf32>
    %108 = arith.divf %106, %107 : vector<8x1xf32>
    %109 = vector.broadcast %108 : vector<8x1xf32> to vector<8x32xf32>
    %110 = arith.subf %102, %109 : vector<8x32xf32>
    %111 = arith.mulf %110, %110 : vector<8x32xf32>
    %cst_44 = arith.constant dense<0.000000e+00> : vector<8xf32>
    %112 = vector.multi_reduction <add>, %111, %cst_44 [1] : vector<8x32xf32> to vector<8xf32>
    %113 = vector.shape_cast %112 : vector<8xf32> to vector<8x1xf32>
    %cst_45 = arith.constant 3.200000e+01 : f32
    %114 = vector.broadcast %cst_45 : f32 to vector<8x1xf32>
    %115 = arith.divf %113, %114 : vector<8x1xf32>
    %cst_46 = arith.constant 9.99999974E-6 : f32
    %116 = vector.broadcast %cst_46 : f32 to vector<8x1xf32>
    %117 = arith.addf %115, %116 : vector<8x1xf32>
    %118 = math.rsqrt %117 : vector<8x1xf32>
    %119 = vector.broadcast %118 : vector<8x1xf32> to vector<8x32xf32>
    %120 = arith.mulf %110, %119 : vector<8x32xf32>
    %121 = vector.broadcast %103 : vector<1x32xf32> to vector<8x32xf32>
    %122 = arith.mulf %120, %121 : vector<8x32xf32>
    %123 = vector.broadcast %104 : vector<1x32xf32> to vector<8x32xf32>
    %124 = arith.addf %122, %123 : vector<8x32xf32>
    %125 = arith.truncf %124 : vector<8x32xf32> to vector<8x32xbf16>
    %c0_47 = arith.constant 0 : index
    %c0_48 = arith.constant 0 : index
    %126 = vector.load %arg10[%c0_47, %c0_48] : memref<32x32xbf16, #tpu.memory_space<vmem>>, vector<32x32xbf16>
    %cst_49 = arith.constant dense<0.000000e+00> : vector<8x32xf32>
    %127 = tpu.matmul %125, %126, %cst_49 {dimension_numbers = #tpu.dot_dimension_numbers<[1], [0], [0], [1], [0, 0, 1, 1], [], []>} : vector<8x32xbf16>, vector<32x32xbf16>, vector<8x32xf32> -> vector<8x32xf32>
    %c0_50 = arith.constant 0 : index
    %c0_51 = arith.constant 0 : index
    %128 = vector.load %arg11[%c0_50, %c0_51] : memref<1x32xf32, #tpu.memory_space<vmem>>, vector<1x32xf32>
    %129 = vector.broadcast %128 : vector<1x32xf32> to vector<8x32xf32>
    %130 = arith.addf %127, %129 : vector<8x32xf32>
    %131 = arith.truncf %130 : vector<8x32xf32> to vector<8x32xbf16>
    %c0_52 = arith.constant 0 : index
    %c0_53 = arith.constant 0 : index
    %132 = vector.load %arg12[%c0_52, %c0_53] : memref<32x64xbf16, #tpu.memory_space<vmem>>, vector<32x64xbf16>
    %cst_54 = arith.constant dense<0.000000e+00> : vector<8x64xf32>
    %133 = tpu.matmul %4, %132, %cst_54 {dimension_numbers = #tpu.dot_dimension_numbers<[1], [0], [0], [1], [0, 0, 1, 1], [], []>} : vector<8x32xbf16>, vector<32x64xbf16>, vector<8x64xf32> -> vector<8x64xf32>
    %c0_55 = arith.constant 0 : index
    %c0_56 = arith.constant 0 : index
    %134 = vector.load %arg13[%c0_55, %c0_56] : memref<1x64xf32, #tpu.memory_space<vmem>>, vector<1x64xf32>
    %135 = vector.broadcast %134 : vector<1x64xf32> to vector<8x64xf32>
    %136 = arith.addf %133, %135 : vector<8x64xf32>
    %137 = arith.truncf %136 : vector<8x64xf32> to vector<8x64xbf16>
    %138 = vector.extract_strided_slice %137 {offsets = [0, 0], sizes = [8, 32], strides = [1, 1]} : vector<8x64xbf16> to vector<8x32xbf16>
    %139 = vector.extract_strided_slice %137 {offsets = [0, 32], sizes = [8, 32], strides = [1, 1]} : vector<8x64xbf16> to vector<8x32xbf16>
    %140 = vector.extract_strided_slice %131 {offsets = [0, 0], sizes = [8, 8], strides = [1, 1]} : vector<8x32xbf16> to vector<8x8xbf16>
    %141 = vector.extract_strided_slice %138 {offsets = [0, 0], sizes = [8, 8], strides = [1, 1]} : vector<8x32xbf16> to vector<8x8xbf16>
    %cst_57 = arith.constant dense<0.000000e+00> : vector<8x8xf32>
    %142 = tpu.matmul %140, %141, %cst_57 {dimension_numbers = #tpu.dot_dimension_numbers<[1], [1], [0], [0], [0, 0, 1, 0], [], []>} : vector<8x8xbf16>, vector<8x8xbf16>, vector<8x8xf32> -> vector<8x8xf32>
    %cst_58 = arith.constant 0.353553385 : f32
    %143 = vector.broadcast %cst_58 : f32 to vector<8x8xf32>
    %144 = arith.mulf %142, %143 : vector<8x8xf32>
    %cst_59 = arith.constant dense<0xFF800000> : vector<8xf32>
    %145 = vector.multi_reduction <maximumf>, %144, %cst_59 [1] : vector<8x8xf32> to vector<8xf32>
    %146 = vector.shape_cast %145 : vector<8xf32> to vector<8x1xf32>
    %147 = vector.broadcast %146 : vector<8x1xf32> to vector<8x8xf32>
    %148 = arith.subf %144, %147 : vector<8x8xf32>
    %149 = math.exp %148 : vector<8x8xf32>
    %cst_60 = arith.constant dense<0.000000e+00> : vector<8xf32>
    %150 = vector.multi_reduction <add>, %149, %cst_60 [1] : vector<8x8xf32> to vector<8xf32>
    %151 = vector.shape_cast %150 : vector<8xf32> to vector<8x1xf32>
    %152 = tpu.reciprocal %151 {approx = true} : vector<8x1xf32> -> vector<8x1xf32>
    %153 = vector.broadcast %152 : vector<8x1xf32> to vector<8x8xf32>
    %154 = arith.mulf %149, %153 : vector<8x8xf32>
    %155 = arith.truncf %154 : vector<8x8xf32> to vector<8x8xbf16>
    %156 = vector.extract_strided_slice %139 {offsets = [0, 0], sizes = [8, 8], strides = [1, 1]} : vector<8x32xbf16> to vector<8x8xbf16>
    %cst_61 = arith.constant dense<0.000000e+00> : vector<8x8xf32>
    %157 = tpu.matmul %155, %156, %cst_61 {dimension_numbers = #tpu.dot_dimension_numbers<[1], [0], [0], [1], [0, 0, 1, 1], [], []>} : vector<8x8xbf16>, vector<8x8xbf16>, vector<8x8xf32> -> vector<8x8xf32>
    %158 = vector.extract_strided_slice %131 {offsets = [0, 8], sizes = [8, 8], strides = [1, 1]} : vector<8x32xbf16> to vector<8x8xbf16>
    %159 = vector.extract_strided_slice %138 {offsets = [0, 8], sizes = [8, 8], strides = [1, 1]} : vector<8x32xbf16> to vector<8x8xbf16>
    %cst_62 = arith.constant dense<0.000000e+00> : vector<8x8xf32>
    %160 = tpu.matmul %158, %159, %cst_62 {dimension_numbers = #tpu.dot_dimension_numbers<[1], [1], [0], [0], [0, 0, 1, 0], [], []>} : vector<8x8xbf16>, vector<8x8xbf16>, vector<8x8xf32> -> vector<8x8xf32>
    %cst_63 = arith.constant 0.353553385 : f32
    %161 = vector.broadcast %cst_63 : f32 to vector<8x8xf32>
    %162 = arith.mulf %160, %161 : vector<8x8xf32>
    %cst_64 = arith.constant dense<0xFF800000> : vector<8xf32>
    %163 = vector.multi_reduction <maximumf>, %162, %cst_64 [1] : vector<8x8xf32> to vector<8xf32>
    %164 = vector.shape_cast %163 : vector<8xf32> to vector<8x1xf32>
    %165 = vector.broadcast %164 : vector<8x1xf32> to vector<8x8xf32>
    %166 = arith.subf %162, %165 : vector<8x8xf32>
    %167 = math.exp %166 : vector<8x8xf32>
    %cst_65 = arith.constant dense<0.000000e+00> : vector<8xf32>
    %168 = vector.multi_reduction <add>, %167, %cst_65 [1] : vector<8x8xf32> to vector<8xf32>
    %169 = vector.shape_cast %168 : vector<8xf32> to vector<8x1xf32>
    %170 = tpu.reciprocal %169 {approx = true} : vector<8x1xf32> -> vector<8x1xf32>
    %171 = vector.broadcast %170 : vector<8x1xf32> to vector<8x8xf32>
    %172 = arith.mulf %167, %171 : vector<8x8xf32>
    %173 = arith.truncf %172 : vector<8x8xf32> to vector<8x8xbf16>
    %174 = vector.extract_strided_slice %139 {offsets = [0, 8], sizes = [8, 8], strides = [1, 1]} : vector<8x32xbf16> to vector<8x8xbf16>
    %cst_66 = arith.constant dense<0.000000e+00> : vector<8x8xf32>
    %175 = tpu.matmul %173, %174, %cst_66 {dimension_numbers = #tpu.dot_dimension_numbers<[1], [0], [0], [1], [0, 0, 1, 1], [], []>} : vector<8x8xbf16>, vector<8x8xbf16>, vector<8x8xf32> -> vector<8x8xf32>
    %176 = vector.extract_strided_slice %131 {offsets = [0, 16], sizes = [8, 8], strides = [1, 1]} : vector<8x32xbf16> to vector<8x8xbf16>
    %177 = vector.extract_strided_slice %138 {offsets = [0, 16], sizes = [8, 8], strides = [1, 1]} : vector<8x32xbf16> to vector<8x8xbf16>
    %cst_67 = arith.constant dense<0.000000e+00> : vector<8x8xf32>
    %178 = tpu.matmul %176, %177, %cst_67 {dimension_numbers = #tpu.dot_dimension_numbers<[1], [1], [0], [0], [0, 0, 1, 0], [], []>} : vector<8x8xbf16>, vector<8x8xbf16>, vector<8x8xf32> -> vector<8x8xf32>
    %cst_68 = arith.constant 0.353553385 : f32
    %179 = vector.broadcast %cst_68 : f32 to vector<8x8xf32>
    %180 = arith.mulf %178, %179 : vector<8x8xf32>
    %cst_69 = arith.constant dense<0xFF800000> : vector<8xf32>
    %181 = vector.multi_reduction <maximumf>, %180, %cst_69 [1] : vector<8x8xf32> to vector<8xf32>
    %182 = vector.shape_cast %181 : vector<8xf32> to vector<8x1xf32>
    %183 = vector.broadcast %182 : vector<8x1xf32> to vector<8x8xf32>
    %184 = arith.subf %180, %183 : vector<8x8xf32>
    %185 = math.exp %184 : vector<8x8xf32>
    %cst_70 = arith.constant dense<0.000000e+00> : vector<8xf32>
    %186 = vector.multi_reduction <add>, %185, %cst_70 [1] : vector<8x8xf32> to vector<8xf32>
    %187 = vector.shape_cast %186 : vector<8xf32> to vector<8x1xf32>
    %188 = tpu.reciprocal %187 {approx = true} : vector<8x1xf32> -> vector<8x1xf32>
    %189 = vector.broadcast %188 : vector<8x1xf32> to vector<8x8xf32>
    %190 = arith.mulf %185, %189 : vector<8x8xf32>
    %191 = arith.truncf %190 : vector<8x8xf32> to vector<8x8xbf16>
    %192 = vector.extract_strided_slice %139 {offsets = [0, 16], sizes = [8, 8], strides = [1, 1]} : vector<8x32xbf16> to vector<8x8xbf16>
    %cst_71 = arith.constant dense<0.000000e+00> : vector<8x8xf32>
    %193 = tpu.matmul %191, %192, %cst_71 {dimension_numbers = #tpu.dot_dimension_numbers<[1], [0], [0], [1], [0, 0, 1, 1], [], []>} : vector<8x8xbf16>, vector<8x8xbf16>, vector<8x8xf32> -> vector<8x8xf32>
    %194 = vector.extract_strided_slice %131 {offsets = [0, 24], sizes = [8, 8], strides = [1, 1]} : vector<8x32xbf16> to vector<8x8xbf16>
    %195 = vector.extract_strided_slice %138 {offsets = [0, 24], sizes = [8, 8], strides = [1, 1]} : vector<8x32xbf16> to vector<8x8xbf16>
    %cst_72 = arith.constant dense<0.000000e+00> : vector<8x8xf32>
    %196 = tpu.matmul %194, %195, %cst_72 {dimension_numbers = #tpu.dot_dimension_numbers<[1], [1], [0], [0], [0, 0, 1, 0], [], []>} : vector<8x8xbf16>, vector<8x8xbf16>, vector<8x8xf32> -> vector<8x8xf32>
    %cst_73 = arith.constant 0.353553385 : f32
    %197 = vector.broadcast %cst_73 : f32 to vector<8x8xf32>
    %198 = arith.mulf %196, %197 : vector<8x8xf32>
    %cst_74 = arith.constant dense<0xFF800000> : vector<8xf32>
    %199 = vector.multi_reduction <maximumf>, %198, %cst_74 [1] : vector<8x8xf32> to vector<8xf32>
    %200 = vector.shape_cast %199 : vector<8xf32> to vector<8x1xf32>
    %201 = vector.broadcast %200 : vector<8x1xf32> to vector<8x8xf32>
    %202 = arith.subf %198, %201 : vector<8x8xf32>
    %203 = math.exp %202 : vector<8x8xf32>
    %cst_75 = arith.constant dense<0.000000e+00> : vector<8xf32>
    %204 = vector.multi_reduction <add>, %203, %cst_75 [1] : vector<8x8xf32> to vector<8xf32>
    %205 = vector.shape_cast %204 : vector<8xf32> to vector<8x1xf32>
    %206 = tpu.reciprocal %205 {approx = true} : vector<8x1xf32> -> vector<8x1xf32>
    %207 = vector.broadcast %206 : vector<8x1xf32> to vector<8x8xf32>
    %208 = arith.mulf %203, %207 : vector<8x8xf32>
    %209 = arith.truncf %208 : vector<8x8xf32> to vector<8x8xbf16>
    %210 = vector.extract_strided_slice %139 {offsets = [0, 24], sizes = [8, 8], strides = [1, 1]} : vector<8x32xbf16> to vector<8x8xbf16>
    %cst_76 = arith.constant dense<0.000000e+00> : vector<8x8xf32>
    %211 = tpu.matmul %209, %210, %cst_76 {dimension_numbers = #tpu.dot_dimension_numbers<[1], [0], [0], [1], [0, 0, 1, 1], [], []>} : vector<8x8xbf16>, vector<8x8xbf16>, vector<8x8xf32> -> vector<8x8xf32>
    %212 = tpu.concatenate %157, %175, %193, %211 in 1 : vector<8x8xf32>, vector<8x8xf32>, vector<8x8xf32>, vector<8x8xf32> -> vector<8x32xf32>
    %213 = arith.truncf %212 : vector<8x32xf32> to vector<8x32xbf16>
    %c0_77 = arith.constant 0 : index
    %c0_78 = arith.constant 0 : index
    %214 = vector.load %arg14[%c0_77, %c0_78] : memref<32x32xbf16, #tpu.memory_space<vmem>>, vector<32x32xbf16>
    %cst_79 = arith.constant dense<0.000000e+00> : vector<8x32xf32>
    %215 = tpu.matmul %213, %214, %cst_79 {dimension_numbers = #tpu.dot_dimension_numbers<[1], [0], [0], [1], [0, 0, 1, 1], [], []>} : vector<8x32xbf16>, vector<32x32xbf16>, vector<8x32xf32> -> vector<8x32xf32>
    %c0_80 = arith.constant 0 : index
    %c0_81 = arith.constant 0 : index
    %216 = vector.load %arg15[%c0_80, %c0_81] : memref<1x32xf32, #tpu.memory_space<vmem>>, vector<1x32xf32>
    %217 = vector.broadcast %216 : vector<1x32xf32> to vector<8x32xf32>
    %218 = arith.addf %215, %217 : vector<8x32xf32>
    %219 = arith.addf %124, %218 : vector<8x32xf32>
    %c0_82 = arith.constant 0 : index
    %c0_83 = arith.constant 0 : index
    %220 = vector.load %arg16[%c0_82, %c0_83] : memref<2x32xf32, #tpu.memory_space<vmem>>, vector<1x32xf32>
    %c1_84 = arith.constant 1 : index
    %c0_85 = arith.constant 0 : index
    %221 = vector.load %arg16[%c1_84, %c0_85] : memref<2x32xf32, #tpu.memory_space<vmem>>, vector<1x32xf32>
    %cst_86 = arith.constant dense<0.000000e+00> : vector<8xf32>
    %222 = vector.multi_reduction <add>, %219, %cst_86 [1] : vector<8x32xf32> to vector<8xf32>
    %223 = vector.shape_cast %222 : vector<8xf32> to vector<8x1xf32>
    %cst_87 = arith.constant 3.200000e+01 : f32
    %224 = vector.broadcast %cst_87 : f32 to vector<8x1xf32>
    %225 = arith.divf %223, %224 : vector<8x1xf32>
    %226 = vector.broadcast %225 : vector<8x1xf32> to vector<8x32xf32>
    %227 = arith.subf %219, %226 : vector<8x32xf32>
    %228 = arith.mulf %227, %227 : vector<8x32xf32>
    %cst_88 = arith.constant dense<0.000000e+00> : vector<8xf32>
    %229 = vector.multi_reduction <add>, %228, %cst_88 [1] : vector<8x32xf32> to vector<8xf32>
    %230 = vector.shape_cast %229 : vector<8xf32> to vector<8x1xf32>
    %cst_89 = arith.constant 3.200000e+01 : f32
    %231 = vector.broadcast %cst_89 : f32 to vector<8x1xf32>
    %232 = arith.divf %230, %231 : vector<8x1xf32>
    %cst_90 = arith.constant 9.99999974E-6 : f32
    %233 = vector.broadcast %cst_90 : f32 to vector<8x1xf32>
    %234 = arith.addf %232, %233 : vector<8x1xf32>
    %235 = math.rsqrt %234 : vector<8x1xf32>
    %236 = vector.broadcast %235 : vector<8x1xf32> to vector<8x32xf32>
    %237 = arith.mulf %227, %236 : vector<8x32xf32>
    %238 = vector.broadcast %220 : vector<1x32xf32> to vector<8x32xf32>
    %239 = arith.mulf %237, %238 : vector<8x32xf32>
    %240 = vector.broadcast %221 : vector<1x32xf32> to vector<8x32xf32>
    %241 = arith.addf %239, %240 : vector<8x32xf32>
    %242 = arith.truncf %241 : vector<8x32xf32> to vector<8x32xbf16>
    %c0_91 = arith.constant 0 : index
    %c0_92 = arith.constant 0 : index
    %243 = vector.load %arg17[%c0_91, %c0_92] : memref<32x128xbf16, #tpu.memory_space<vmem>>, vector<32x128xbf16>
    %cst_93 = arith.constant dense<0.000000e+00> : vector<8x128xf32>
    %244 = tpu.matmul %242, %243, %cst_93 {dimension_numbers = #tpu.dot_dimension_numbers<[1], [0], [0], [1], [0, 0, 1, 1], [], []>} : vector<8x32xbf16>, vector<32x128xbf16>, vector<8x128xf32> -> vector<8x128xf32>
    %c0_94 = arith.constant 0 : index
    %c0_95 = arith.constant 0 : index
    %245 = vector.load %arg18[%c0_94, %c0_95] : memref<1x128xf32, #tpu.memory_space<vmem>>, vector<1x128xf32>
    %246 = vector.broadcast %245 : vector<1x128xf32> to vector<8x128xf32>
    %247 = arith.addf %244, %246 : vector<8x128xf32>
    %cst_96 = arith.constant 5.000000e-01 : f32
    %248 = vector.broadcast %cst_96 : f32 to vector<8x128xf32>
    %249 = arith.mulf %248, %247 : vector<8x128xf32>
    %cst_97 = arith.constant 0.707106769 : f32
    %250 = vector.broadcast %cst_97 : f32 to vector<8x128xf32>
    %251 = arith.mulf %247, %250 : vector<8x128xf32>
    %252 = math.absf %251 : vector<8x128xf32>
    %cst_98 = arith.constant 0.327591091 : f32
    %253 = vector.broadcast %cst_98 : f32 to vector<8x128xf32>
    %254 = arith.mulf %253, %252 : vector<8x128xf32>
    %cst_99 = arith.constant 1.000000e+00 : f32
    %255 = vector.broadcast %cst_99 : f32 to vector<8x128xf32>
    %256 = arith.addf %255, %254 : vector<8x128xf32>
    %257 = tpu.reciprocal %256 {approx = true} : vector<8x128xf32> -> vector<8x128xf32>
    %cst_100 = arith.constant 1.06140542 : f32
    %258 = vector.broadcast %cst_100 : f32 to vector<8x128xf32>
    %259 = arith.mulf %258, %257 : vector<8x128xf32>
    %cst_101 = arith.constant -1.45315206 : f32
    %260 = vector.broadcast %cst_101 : f32 to vector<8x128xf32>
    %261 = arith.addf %259, %260 : vector<8x128xf32>
    %262 = arith.mulf %261, %257 : vector<8x128xf32>
    %cst_102 = arith.constant 1.42141378 : f32
    %263 = vector.broadcast %cst_102 : f32 to vector<8x128xf32>
    %264 = arith.addf %262, %263 : vector<8x128xf32>
    %265 = arith.mulf %264, %257 : vector<8x128xf32>
    %cst_103 = arith.constant -0.284496725 : f32
    %266 = vector.broadcast %cst_103 : f32 to vector<8x128xf32>
    %267 = arith.addf %265, %266 : vector<8x128xf32>
    %268 = arith.mulf %267, %257 : vector<8x128xf32>
    %cst_104 = arith.constant 0.254829586 : f32
    %269 = vector.broadcast %cst_104 : f32 to vector<8x128xf32>
    %270 = arith.addf %268, %269 : vector<8x128xf32>
    %271 = arith.mulf %270, %257 : vector<8x128xf32>
    %cst_105 = arith.constant 0.000000e+00 : f32
    %272 = vector.broadcast %cst_105 : f32 to vector<8x128xf32>
    %273 = arith.subf %272, %252 : vector<8x128xf32>
    %274 = arith.mulf %273, %252 : vector<8x128xf32>
    %275 = math.exp %274 : vector<8x128xf32>
    %276 = arith.mulf %271, %275 : vector<8x128xf32>
    %cst_106 = arith.constant 1.000000e+00 : f32
    %277 = vector.broadcast %cst_106 : f32 to vector<8x128xf32>
    %278 = arith.subf %277, %276 : vector<8x128xf32>
    %cst_107 = arith.constant 0.000000e+00 : f32
    %279 = vector.broadcast %cst_107 : f32 to vector<8x128xf32>
    %280 = arith.cmpf oge, %251, %279 : vector<8x128xf32>
    %cst_108 = arith.constant 0.000000e+00 : f32
    %281 = vector.broadcast %cst_108 : f32 to vector<8x128xf32>
    %282 = arith.subf %281, %278 : vector<8x128xf32>
    %283 = arith.select %280, %278, %282 : vector<8x128xi1>, vector<8x128xf32>
    %cst_109 = arith.constant 1.000000e+00 : f32
    %284 = vector.broadcast %cst_109 : f32 to vector<8x128xf32>
    %285 = arith.addf %284, %283 : vector<8x128xf32>
    %286 = arith.mulf %249, %285 : vector<8x128xf32>
    %287 = arith.truncf %286 : vector<8x128xf32> to vector<8x128xbf16>
    %c0_110 = arith.constant 0 : index
    %c0_111 = arith.constant 0 : index
    %288 = vector.load %arg19[%c0_110, %c0_111] : memref<128x32xbf16, #tpu.memory_space<vmem>>, vector<128x32xbf16>
    %cst_112 = arith.constant dense<0.000000e+00> : vector<8x32xf32>
    %289 = tpu.matmul %287, %288, %cst_112 {dimension_numbers = #tpu.dot_dimension_numbers<[1], [0], [0], [1], [0, 0, 1, 1], [], []>} : vector<8x128xbf16>, vector<128x32xbf16>, vector<8x32xf32> -> vector<8x32xf32>
    %c0_113 = arith.constant 0 : index
    %c0_114 = arith.constant 0 : index
    %290 = vector.load %arg20[%c0_113, %c0_114] : memref<1x32xf32, #tpu.memory_space<vmem>>, vector<1x32xf32>
    %291 = vector.broadcast %290 : vector<1x32xf32> to vector<8x32xf32>
    %292 = arith.addf %289, %291 : vector<8x32xf32>
    %293 = arith.addf %241, %292 : vector<8x32xf32>
    %c0_115 = arith.constant 0 : index
    %c0_116 = arith.constant 0 : index
    %294 = vector.load %arg21[%c0_115, %c0_116] : memref<2x32xf32, #tpu.memory_space<vmem>>, vector<1x32xf32>
    %c1_117 = arith.constant 1 : index
    %c0_118 = arith.constant 0 : index
    %295 = vector.load %arg21[%c1_117, %c0_118] : memref<2x32xf32, #tpu.memory_space<vmem>>, vector<1x32xf32>
    %cst_119 = arith.constant dense<0.000000e+00> : vector<8xf32>
    %296 = vector.multi_reduction <add>, %293, %cst_119 [1] : vector<8x32xf32> to vector<8xf32>
    %297 = vector.shape_cast %296 : vector<8xf32> to vector<8x1xf32>
    %cst_120 = arith.constant 3.200000e+01 : f32
    %298 = vector.broadcast %cst_120 : f32 to vector<8x1xf32>
    %299 = arith.divf %297, %298 : vector<8x1xf32>
    %300 = vector.broadcast %299 : vector<8x1xf32> to vector<8x32xf32>
    %301 = arith.subf %293, %300 : vector<8x32xf32>
    %302 = arith.mulf %301, %301 : vector<8x32xf32>
    %cst_121 = arith.constant dense<0.000000e+00> : vector<8xf32>
    %303 = vector.multi_reduction <add>, %302, %cst_121 [1] : vector<8x32xf32> to vector<8xf32>
    %304 = vector.shape_cast %303 : vector<8xf32> to vector<8x1xf32>
    %cst_122 = arith.constant 3.200000e+01 : f32
    %305 = vector.broadcast %cst_122 : f32 to vector<8x1xf32>
    %306 = arith.divf %304, %305 : vector<8x1xf32>
    %cst_123 = arith.constant 9.99999974E-6 : f32
    %307 = vector.broadcast %cst_123 : f32 to vector<8x1xf32>
    %308 = arith.addf %306, %307 : vector<8x1xf32>
    %309 = math.rsqrt %308 : vector<8x1xf32>
    %310 = vector.broadcast %309 : vector<8x1xf32> to vector<8x32xf32>
    %311 = arith.mulf %301, %310 : vector<8x32xf32>
    %312 = vector.broadcast %294 : vector<1x32xf32> to vector<8x32xf32>
    %313 = arith.mulf %311, %312 : vector<8x32xf32>
    %314 = vector.broadcast %295 : vector<1x32xf32> to vector<8x32xf32>
    %315 = arith.addf %313, %314 : vector<8x32xf32>
    %316 = vector.shape_cast %315 : vector<8x32xf32> to vector<1x8x32xf32>
    %c0_124 = arith.constant 0 : index
    %c0_125 = arith.constant 0 : index
    %c0_126 = arith.constant 0 : index
    %317 = vector.load %arg22[%c0_124, %c0_125, %c0_126] : memref<1x8x32xf32, #tpu.memory_space<vmem>>, vector<1x8x32xf32>
    tpu.vector_store %arg22[%c0_124, %c0_125, %c0_126], %316 {strides = array<i32>} : memref<1x8x32xf32, #tpu.memory_space<vmem>>, vector<1x8x32xf32>,
    return
  }
  func.func @transform_0(%arg0: i32) -> (i32, i32, i32) {
    %c0_i32 = arith.constant 0 : i32
    %c0_i32_0 = arith.constant 0 : i32
    %c0_i32_1 = arith.constant 0 : i32
    return %arg0, %c0_i32, %c0_i32_0 : i32, i32, i32
  }
  func.func @transform_1(%arg0: i32) -> (i32, i32, i32) {
    %c0_i32 = arith.constant 0 : i32
    %c0_i32_0 = arith.constant 0 : i32
    %c0_i32_1 = arith.constant 0 : i32
    return %arg0, %c0_i32, %c0_i32_0 : i32, i32, i32
  }
  func.func @transform_2(%arg0: i32) -> (i32, i32) {
    %c0_i32 = arith.constant 0 : i32
    %c0_i32_0 = arith.constant 0 : i32
    %c0_i32_1 = arith.constant 0 : i32
    return %c0_i32, %c0_i32_0 : i32, i32
  }
  func.func @transform_3(%arg0: i32) -> (i32, i32, i32) {
    %c0_i32 = arith.constant 0 : i32
    %c0_i32_0 = arith.constant 0 : i32
    %c0_i32_1 = arith.constant 0 : i32
    return %arg0, %c0_i32, %c0_i32_0 : i32, i32, i32
  }
  func.func @transform_4(%arg0: i32) -> (i32, i32) {
    %c0_i32 = arith.constant 0 : i32
    %c0_i32_0 = arith.constant 0 : i32
    %c0_i32_1 = arith.constant 0 : i32
    return %c0_i32, %c0_i32_0 : i32, i32
  }
  func.func @transform_5(%arg0: i32) -> (i32, i32) {
    %c0_i32 = arith.constant 0 : i32
    %c0_i32_0 = arith.constant 0 : i32
    %c0_i32_1 = arith.constant 0 : i32
    return %c0_i32, %c0_i32_0 : i32, i32
  }
  func.func @transform_6(%arg0: i32) -> (i32, i32) {
    %c0_i32 = arith.constant 0 : i32
    %c0_i32_0 = arith.constant 0 : i32
    %c0_i32_1 = arith.constant 0 : i32
    return %c0_i32, %c0_i32_0 : i32, i32
  }
  func.func @transform_7(%arg0: i32) -> (i32, i32) {
    %c0_i32 = arith.constant 0 : i32
    %c0_i32_0 = arith.constant 0 : i32
    %c0_i32_1 = arith.constant 0 : i32
    return %c0_i32, %c0_i32_0 : i32, i32
  }
  func.func @transform_8(%arg0: i32) -> (i32, i32) {
    %c0_i32 = arith.constant 0 : i32
    %c0_i32_0 = arith.constant 0 : i32
    %c0_i32_1 = arith.constant 0 : i32
    return %c0_i32, %c0_i32_0 : i32, i32
  }
  func.func @transform_9(%arg0: i32) -> (i32, i32) {
    %c0_i32 = arith.constant 0 : i32
    %c0_i32_0 = arith.constant 0 : i32
    %c0_i32_1 = arith.constant 0 : i32
    return %c0_i32, %c0_i32_0 : i32, i32
  }
  func.func @transform_10(%arg0: i32) -> (i32, i32) {
    %c0_i32 = arith.constant 0 : i32
    %c0_i32_0 = arith.constant 0 : i32
    %c0_i32_1 = arith.constant 0 : i32
    return %c0_i32, %c0_i32_0 : i32, i32
  }
  func.func @transform_11(%arg0: i32) -> (i32, i32) {
    %c0_i32 = arith.constant 0 : i32
    %c0_i32_0 = arith.constant 0 : i32
    %c0_i32_1 = arith.constant 0 : i32
    return %c0_i32, %c0_i32_0 : i32, i32
  }
  func.func @transform_12(%arg0: i32) -> (i32, i32) {
    %c0_i32 = arith.constant 0 : i32
    %c0_i32_0 = arith.constant 0 : i32
    %c0_i32_1 = arith.constant 0 : i32
    return %c0_i32, %c0_i32_0 : i32, i32
  }
  func.func @transform_13(%arg0: i32) -> (i32, i32) {
    %c0_i32 = arith.constant 0 : i32
    %c0_i32_0 = arith.constant 0 : i32
    %c0_i32_1 = arith.constant 0 : i32
    return %c0_i32, %c0_i32_0 : i32, i32
  }
  func.func @transform_14(%arg0: i32) -> (i32, i32) {
    %c0_i32 = arith.constant 0 : i32
    %c0_i32_0 = arith.constant 0 : i32
    %c0_i32_1 = arith.constant 0 : i32
    return %c0_i32, %c0_i32_0 : i32, i32
  }
  func.func @transform_15(%arg0: i32) -> (i32, i32) {
    %c0_i32 = arith.constant 0 : i32
    %c0_i32_0 = arith.constant 0 : i32
    %c0_i32_1 = arith.constant 0 : i32
    return %c0_i32, %c0_i32_0 : i32, i32
  }
  func.func @transform_16(%arg0: i32) -> (i32, i32) {
    %c0_i32 = arith.constant 0 : i32
    %c0_i32_0 = arith.constant 0 : i32
    %c0_i32_1 = arith.constant 0 : i32
    return %c0_i32, %c0_i32_0 : i32, i32
  }
  func.func @transform_17(%arg0: i32) -> (i32, i32) {
    %c0_i32 = arith.constant 0 : i32
    %c0_i32_0 = arith.constant 0 : i32
    %c0_i32_1 = arith.constant 0 : i32
    return %c0_i32, %c0_i32_0 : i32, i32
  }
  func.func @transform_18(%arg0: i32) -> (i32, i32) {
    %c0_i32 = arith.constant 0 : i32
    %c0_i32_0 = arith.constant 0 : i32
    %c0_i32_1 = arith.constant 0 : i32
    return %c0_i32, %c0_i32_0 : i32, i32
  }
  func.func @transform_19(%arg0: i32) -> (i32, i32) {
    %c0_i32 = arith.constant 0 : i32
    %c0_i32_0 = arith.constant 0 : i32
    %c0_i32_1 = arith.constant 0 : i32
    return %c0_i32, %c0_i32_0 : i32, i32
  }
  func.func @transform_20(%arg0: i32) -> (i32, i32) {
    %c0_i32 = arith.constant 0 : i32
    %c0_i32_0 = arith.constant 0 : i32
    %c0_i32_1 = arith.constant 0 : i32
    return %c0_i32, %c0_i32_0 : i32, i32
  }
  func.func @transform_21(%arg0: i32) -> (i32, i32, i32) {
    %c0_i32 = arith.constant 0 : i32
    %c0_i32_0 = arith.constant 0 : i32
    %c0_i32_1 = arith.constant 0 : i32
    return %arg0, %c0_i32, %c0_i32_0 : i32, i32, i32
  }
}

module attributes {stable_mosaic.version = 11 : i64} {
  func.func @decoder_block_kernel(%arg0: i32, %arg1: memref<1x8x32xbf16, #tpu.memory_space<vmem>>, %arg2: memref<1x8x32xbf16, #tpu.memory_space<vmem>>, %arg3: memref<8x8xf32, #tpu.memory_space<vmem>>, %arg4: memref<1x1x8xf32, #tpu.memory_space<vmem>>, %arg5: memref<32x96xbf16, #tpu.memory_space<vmem>>, %arg6: memref<1x96xf32, #tpu.memory_space<vmem>>, %arg7: memref<32x32xbf16, #tpu.memory_space<vmem>>, %arg8: memref<1x32xf32, #tpu.memory_space<vmem>>, %arg9: memref<2x32xf32, #tpu.memory_space<vmem>>, %arg10: memref<32x32xbf16, #tpu.memory_space<vmem>>, %arg11: memref<1x32xf32, #tpu.memory_space<vmem>>, %arg12: memref<32x64xbf16, #tpu.memory_space<vmem>>, %arg13: memref<1x64xf32, #tpu.memory_space<vmem>>, %arg14: memref<32x32xbf16, #tpu.memory_space<vmem>>, %arg15: memref<1x32xf32, #tpu.memory_space<vmem>>, %arg16: memref<2x32xf32, #tpu.memory_space<vmem>>, %arg17: memref<32x128xbf16, #tpu.memory_space<vmem>>, %arg18: memref<1x128xf32, #tpu.memory_space<vmem>>, %arg19: memref<128x32xbf16, #tpu.memory_space<vmem>>, %arg20: memref<1x32xf32, #tpu.memory_space<vmem>>, %arg21: memref<2x32xf32, #tpu.memory_space<vmem>>, %arg22: memref<1x8x32xf32, #tpu.memory_space<vmem>>) attributes {dimension_semantics = [#tpu.dimension_semantics<parallel>], iteration_bounds = array<i64: 2>, scalar_prefetch = 0 : i64, scratch_operands = 0 : i64, tpu.core_type = #tpu.core_type<tc>, window_params = [{transform_indices = @transform_0, window_bounds = array<i64: 1, 8, 32>}, {transform_indices = @transform_1, window_bounds = array<i64: 1, 8, 32>}, {pipeline_mode = #tpu.pipeline_mode<synchronous>, transform_indices = @transform_2, window_bounds = array<i64: 8, 8>}, {transform_indices = @transform_3, window_bounds = array<i64: 1, 1, 8>}, {pipeline_mode = #tpu.pipeline_mode<synchronous>, transform_indices = @transform_4, window_bounds = array<i64: 32, 96>}, {pipeline_mode = #tpu.pipeline_mode<synchronous>, transform_indices = @transform_5, window_bounds = array<i64: 1, 96>}, {pipeline_mode = #tpu.pipeline_mode<synchronous>, transform_indices = @transform_6, window_bounds = array<i64: 32, 32>}, {pipeline_mode = #tpu.pipeline_mode<synchronous>, transform_indices = @transform_7, window_bounds = array<i64: 1, 32>}, {pipeline_mode = #tpu.pipeline_mode<synchronous>, transform_indices = @transform_8, window_bounds = array<i64: 2, 32>}, {pipeline_mode = #tpu.pipeline_mode<synchronous>, transform_indices = @transform_9, window_bounds = array<i64: 32, 32>}, {pipeline_mode = #tpu.pipeline_mode<synchronous>, transform_indices = @transform_10, window_bounds = array<i64: 1, 32>}, {pipeline_mode = #tpu.pipeline_mode<synchronous>, transform_indices = @transform_11, window_bounds = array<i64: 32, 64>}, {pipeline_mode = #tpu.pipeline_mode<synchronous>, transform_indices = @transform_12, window_bounds = array<i64: 1, 64>}, {pipeline_mode = #tpu.pipeline_mode<synchronous>, transform_indices = @transform_13, window_bounds = array<i64: 32, 32>}, {pipeline_mode = #tpu.pipeline_mode<synchronous>, transform_indices = @transform_14, window_bounds = array<i64: 1, 32>}, {pipeline_mode = #tpu.pipeline_mode<synchronous>, transform_indices = @transform_15, window_bounds = array<i64: 2, 32>}, {pipeline_mode = #tpu.pipeline_mode<synchronous>, transform_indices = @transform_16, window_bounds = array<i64: 32, 128>}, {pipeline_mode = #tpu.pipeline_mode<synchronous>, transform_indices = @transform_17, window_bounds = array<i64: 1, 128>}, {pipeline_mode = #tpu.pipeline_mode<synchronous>, transform_indices = @transform_18, window_bounds = array<i64: 128, 32>}, {pipeline_mode = #tpu.pipeline_mode<synchronous>, transform_indices = @transform_19, window_bounds = array<i64: 1, 32>}, {pipeline_mode = #tpu.pipeline_mode<synchronous>, transform_indices = @transform_20, window_bounds = array<i64: 2, 32>}, {transform_indices = @transform_21, window_bounds = array<i64: 1, 8, 32>}]} {
    %c0 = arith.constant 0 : index
    %c0_0 = arith.constant 0 : index
    %c0_1 = arith.constant 0 : index
    %0 = vector.load %arg1[%c0, %c0_0, %c0_1] : memref<1x8x32xbf16, #tpu.memory_space<vmem>>, vector<1x8x32xbf16>
    %1 = vector.shape_cast %0 : vector<1x8x32xbf16> to vector<8x32xbf16>
    %2 = arith.extf %1 : vector<8x32xbf16> to vector<8x32xf32>
    %c0_2 = arith.constant 0 : index
    %c0_3 = arith.constant 0 : index
    %c0_4 = arith.constant 0 : index
    %3 = vector.load %arg2[%c0_2, %c0_3, %c0_4] : memref<1x8x32xbf16, #tpu.memory_space<vmem>>, vector<1x8x32xbf16>
    %4 = vector.shape_cast %3 : vector<1x8x32xbf16> to vector<8x32xbf16>
    %c0_5 = arith.constant 0 : index
    %c0_6 = arith.constant 0 : index
    %5 = vector.load %arg3[%c0_5, %c0_6] : memref<8x8xf32, #tpu.memory_space<vmem>>, vector<8x8xf32>
    %c0_7 = arith.constant 0 : index
    %c0_8 = arith.constant 0 : index
    %6 = vector.load %arg5[%c0_7, %c0_8] : memref<32x96xbf16, #tpu.memory_space<vmem>>, vector<32x96xbf16>
    %cst = arith.constant dense<0.000000e+00> : vector<8x96xf32>
    %7 = tpu.matmul %1, %6, %cst {dimension_numbers = #tpu.dot_dimension_numbers<[1], [0], [0], [1], [0, 0, 1, 1], [], []>} : vector<8x32xbf16>, vector<32x96xbf16>, vector<8x96xf32> -> vector<8x96xf32>
    %c0_9 = arith.constant 0 : index
    %c0_10 = arith.constant 0 : index
    %8 = vector.load %arg6[%c0_9, %c0_10] : memref<1x96xf32, #tpu.memory_space<vmem>>, vector<1x96xf32>
    %9 = vector.broadcast %8 : vector<1x96xf32> to vector<8x96xf32>
    %10 = arith.addf %7, %9 : vector<8x96xf32>
    %11 = arith.truncf %10 : vector<8x96xf32> to vector<8x96xbf16>
    %c0_11 = arith.constant 0 : index
    %c0_12 = arith.constant 0 : index
    %c0_13 = arith.constant 0 : index
    %12 = vector.load %arg4[%c0_11, %c0_12, %c0_13] : memref<1x1x8xf32, #tpu.memory_space<vmem>>, vector<1x1x8xf32>
    %13 = vector.shape_cast %12 : vector<1x1x8xf32> to vector<1x8xf32>
    %14 = vector.broadcast %13 : vector<1x8xf32> to vector<8x8xf32>
    %15 = arith.addf %5, %14 : vector<8x8xf32>
    %16 = vector.extract_strided_slice %11 {offsets = [0, 0], sizes = [8, 32], strides = [1, 1]} : vector<8x96xbf16> to vector<8x32xbf16>
    %17 = vector.extract_strided_slice %11 {offsets = [0, 32], sizes = [8, 32], strides = [1, 1]} : vector<8x96xbf16> to vector<8x32xbf16>
    %18 = vector.extract_strided_slice %11 {offsets = [0, 64], sizes = [8, 32], strides = [1, 1]} : vector<8x96xbf16> to vector<8x32xbf16>
    %19 = vector.extract_strided_slice %16 {offsets = [0, 0], sizes = [8, 8], strides = [1, 1]} : vector<8x32xbf16> to vector<8x8xbf16>
    %20 = vector.extract_strided_slice %17 {offsets = [0, 0], sizes = [8, 8], strides = [1, 1]} : vector<8x32xbf16> to vector<8x8xbf16>
    %cst_14 = arith.constant dense<0.000000e+00> : vector<8x8xf32>
    %21 = tpu.matmul %19, %20, %cst_14 {dimension_numbers = #tpu.dot_dimension_numbers<[1], [1], [0], [0], [0, 0, 1, 0], [], []>} : vector<8x8xbf16>, vector<8x8xbf16>, vector<8x8xf32> -> vector<8x8xf32>
    %cst_15 = arith.constant 0.353553385 : f32
    %22 = vector.broadcast %cst_15 : f32 to vector<8x8xf32>
    %23 = arith.mulf %21, %22 : vector<8x8xf32>
    %24 = arith.addf %23, %15 : vector<8x8xf32>
    %cst_16 = arith.constant dense<0xFF800000> : vector<8xf32>
    %25 = vector.multi_reduction <maximumf>, %24, %cst_16 [1] : vector<8x8xf32> to vector<8xf32>
    %26 = vector.shape_cast %25 : vector<8xf32> to vector<8x1xf32>
    %27 = vector.broadcast %26 : vector<8x1xf32> to vector<8x8xf32>
    %28 = arith.subf %24, %27 : vector<8x8xf32>
    %29 = math.exp %28 : vector<8x8xf32>
    %cst_17 = arith.constant dense<0.000000e+00> : vector<8xf32>
    %30 = vector.multi_reduction <add>, %29, %cst_17 [1] : vector<8x8xf32> to vector<8xf32>
    %31 = vector.shape_cast %30 : vector<8xf32> to vector<8x1xf32>
    %32 = tpu.reciprocal %31 {approx = true} : vector<8x1xf32> -> vector<8x1xf32>
    %33 = vector.broadcast %32 : vector<8x1xf32> to vector<8x8xf32>
    %34 = arith.mulf %29, %33 : vector<8x8xf32>
    %35 = arith.truncf %34 : vector<8x8xf32> to vector<8x8xbf16>
    %36 = vector.extract_strided_slice %18 {offsets = [0, 0], sizes = [8, 8], strides = [1, 1]} : vector<8x32xbf16> to vector<8x8xbf16>
    %cst_18 = arith.constant dense<0.000000e+00> : vector<8x8xf32>
    %37 = tpu.matmul %35, %36, %cst_18 {dimension_numbers = #tpu.dot_dimension_numbers<[1], [0], [0], [1], [0, 0, 1, 1], [], []>} : vector<8x8xbf16>, vector<8x8xbf16>, vector<8x8xf32> -> vector<8x8xf32>
    %38 = vector.extract_strided_slice %16 {offsets = [0, 8], sizes = [8, 8], strides = [1, 1]} : vector<8x32xbf16> to vector<8x8xbf16>
    %39 = vector.extract_strided_slice %17 {offsets = [0, 8], sizes = [8, 8], strides = [1, 1]} : vector<8x32xbf16> to vector<8x8xbf16>
    %cst_19 = arith.constant dense<0.000000e+00> : vector<8x8xf32>
    %40 = tpu.matmul %38, %39, %cst_19 {dimension_numbers = #tpu.dot_dimension_numbers<[1], [1], [0], [0], [0, 0, 1, 0], [], []>} : vector<8x8xbf16>, vector<8x8xbf16>, vector<8x8xf32> -> vector<8x8xf32>
    %cst_20 = arith.constant 0.353553385 : f32
    %41 = vector.broadcast %cst_20 : f32 to vector<8x8xf32>
    %42 = arith.mulf %40, %41 : vector<8x8xf32>
    %43 = arith.addf %42, %15 : vector<8x8xf32>
    %cst_21 = arith.constant dense<0xFF800000> : vector<8xf32>
    %44 = vector.multi_reduction <maximumf>, %43, %cst_21 [1] : vector<8x8xf32> to vector<8xf32>
    %45 = vector.shape_cast %44 : vector<8xf32> to vector<8x1xf32>
    %46 = vector.broadcast %45 : vector<8x1xf32> to vector<8x8xf32>
    %47 = arith.subf %43, %46 : vector<8x8xf32>
    %48 = math.exp %47 : vector<8x8xf32>
    %cst_22 = arith.constant dense<0.000000e+00> : vector<8xf32>
    %49 = vector.multi_reduction <add>, %48, %cst_22 [1] : vector<8x8xf32> to vector<8xf32>
    %50 = vector.shape_cast %49 : vector<8xf32> to vector<8x1xf32>
    %51 = tpu.reciprocal %50 {approx = true} : vector<8x1xf32> -> vector<8x1xf32>
    %52 = vector.broadcast %51 : vector<8x1xf32> to vector<8x8xf32>
    %53 = arith.mulf %48, %52 : vector<8x8xf32>
    %54 = arith.truncf %53 : vector<8x8xf32> to vector<8x8xbf16>
    %55 = vector.extract_strided_slice %18 {offsets = [0, 8], sizes = [8, 8], strides = [1, 1]} : vector<8x32xbf16> to vector<8x8xbf16>
    %cst_23 = arith.constant dense<0.000000e+00> : vector<8x8xf32>
    %56 = tpu.matmul %54, %55, %cst_23 {dimension_numbers = #tpu.dot_dimension_numbers<[1], [0], [0], [1], [0, 0, 1, 1], [], []>} : vector<8x8xbf16>, vector<8x8xbf16>, vector<8x8xf32> -> vector<8x8xf32>
    %57 = vector.extract_strided_slice %16 {offsets = [0, 16], sizes = [8, 8], strides = [1, 1]} : vector<8x32xbf16> to vector<8x8xbf16>
    %58 = vector.extract_strided_slice %17 {offsets = [0, 16], sizes = [8, 8], strides = [1, 1]} : vector<8x32xbf16> to vector<8x8xbf16>
    %cst_24 = arith.constant dense<0.000000e+00> : vector<8x8xf32>
    %59 = tpu.matmul %57, %58, %cst_24 {dimension_numbers = #tpu.dot_dimension_numbers<[1], [1], [0], [0], [0, 0, 1, 0], [], []>} : vector<8x8xbf16>, vector<8x8xbf16>, vector<8x8xf32> -> vector<8x8xf32>
    %cst_25 = arith.constant 0.353553385 : f32
    %60 = vector.broadcast %cst_25 : f32 to vector<8x8xf32>
    %61 = arith.mulf %59, %60 : vector<8x8xf32>
    %62 = arith.addf %61, %15 : vector<8x8xf32>
    %cst_26 = arith.constant dense<0xFF800000> : vector<8xf32>
    %63 = vector.multi_reduction <maximumf>, %62, %cst_26 [1] : vector<8x8xf32> to vector<8xf32>
    %64 = vector.shape_cast %63 : vector<8xf32> to vector<8x1xf32>
    %65 = vector.broadcast %64 : vector<8x1xf32> to vector<8x8xf32>
    %66 = arith.subf %62, %65 : vector<8x8xf32>
    %67 = math.exp %66 : vector<8x8xf32>
    %cst_27 = arith.constant dense<0.000000e+00> : vector<8xf32>
    %68 = vector.multi_reduction <add>, %67, %cst_27 [1] : vector<8x8xf32> to vector<8xf32>
    %69 = vector.shape_cast %68 : vector<8xf32> to vector<8x1xf32>
    %70 = tpu.reciprocal %69 {approx = true} : vector<8x1xf32> -> vector<8x1xf32>
    %71 = vector.broadcast %70 : vector<8x1xf32> to vector<8x8xf32>
    %72 = arith.mulf %67, %71 : vector<8x8xf32>
    %73 = arith.truncf %72 : vector<8x8xf32> to vector<8x8xbf16>
    %74 = vector.extract_strided_slice %18 {offsets = [0, 16], sizes = [8, 8], strides = [1, 1]} : vector<8x32xbf16> to vector<8x8xbf16>
    %cst_28 = arith.constant dense<0.000000e+00> : vector<8x8xf32>
    %75 = tpu.matmul %73, %74, %cst_28 {dimension_numbers = #tpu.dot_dimension_numbers<[1], [0], [0], [1], [0, 0, 1, 1], [], []>} : vector<8x8xbf16>, vector<8x8xbf16>, vector<8x8xf32> -> vector<8x8xf32>
    %76 = vector.extract_strided_slice %16 {offsets = [0, 24], sizes = [8, 8], strides = [1, 1]} : vector<8x32xbf16> to vector<8x8xbf16>
    %77 = vector.extract_strided_slice %17 {offsets = [0, 24], sizes = [8, 8], strides = [1, 1]} : vector<8x32xbf16> to vector<8x8xbf16>
    %cst_29 = arith.constant dense<0.000000e+00> : vector<8x8xf32>
    %78 = tpu.matmul %76, %77, %cst_29 {dimension_numbers = #tpu.dot_dimension_numbers<[1], [1], [0], [0], [0, 0, 1, 0], [], []>} : vector<8x8xbf16>, vector<8x8xbf16>, vector<8x8xf32> -> vector<8x8xf32>
    %cst_30 = arith.constant 0.353553385 : f32
    %79 = vector.broadcast %cst_30 : f32 to vector<8x8xf32>
    %80 = arith.mulf %78, %79 : vector<8x8xf32>
    %81 = arith.addf %80, %15 : vector<8x8xf32>
    %cst_31 = arith.constant dense<0xFF800000> : vector<8xf32>
    %82 = vector.multi_reduction <maximumf>, %81, %cst_31 [1] : vector<8x8xf32> to vector<8xf32>
    %83 = vector.shape_cast %82 : vector<8xf32> to vector<8x1xf32>
    %84 = vector.broadcast %83 : vector<8x1xf32> to vector<8x8xf32>
    %85 = arith.subf %81, %84 : vector<8x8xf32>
    %86 = math.exp %85 : vector<8x8xf32>
    %cst_32 = arith.constant dense<0.000000e+00> : vector<8xf32>
    %87 = vector.multi_reduction <add>, %86, %cst_32 [1] : vector<8x8xf32> to vector<8xf32>
    %88 = vector.shape_cast %87 : vector<8xf32> to vector<8x1xf32>
    %89 = tpu.reciprocal %88 {approx = true} : vector<8x1xf32> -> vector<8x1xf32>
    %90 = vector.broadcast %89 : vector<8x1xf32> to vector<8x8xf32>
    %91 = arith.mulf %86, %90 : vector<8x8xf32>
    %92 = arith.truncf %91 : vector<8x8xf32> to vector<8x8xbf16>
    %93 = vector.extract_strided_slice %18 {offsets = [0, 24], sizes = [8, 8], strides = [1, 1]} : vector<8x32xbf16> to vector<8x8xbf16>
    %cst_33 = arith.constant dense<0.000000e+00> : vector<8x8xf32>
    %94 = tpu.matmul %92, %93, %cst_33 {dimension_numbers = #tpu.dot_dimension_numbers<[1], [0], [0], [1], [0, 0, 1, 1], [], []>} : vector<8x8xbf16>, vector<8x8xbf16>, vector<8x8xf32> -> vector<8x8xf32>
    %95 = tpu.concatenate %37, %56, %75, %94 in 1 : vector<8x8xf32>, vector<8x8xf32>, vector<8x8xf32>, vector<8x8xf32> -> vector<8x32xf32>
    %96 = arith.truncf %95 : vector<8x32xf32> to vector<8x32xbf16>
    %c0_34 = arith.constant 0 : index
    %c0_35 = arith.constant 0 : index
    %97 = vector.load %arg7[%c0_34, %c0_35] : memref<32x32xbf16, #tpu.memory_space<vmem>>, vector<32x32xbf16>
    %cst_36 = arith.constant dense<0.000000e+00> : vector<8x32xf32>
    %98 = tpu.matmul %96, %97, %cst_36 {dimension_numbers = #tpu.dot_dimension_numbers<[1], [0], [0], [1], [0, 0, 1, 1], [], []>} : vector<8x32xbf16>, vector<32x32xbf16>, vector<8x32xf32> -> vector<8x32xf32>
    %c0_37 = arith.constant 0 : index
    %c0_38 = arith.constant 0 : index
    %99 = vector.load %arg8[%c0_37, %c0_38] : memref<1x32xf32, #tpu.memory_space<vmem>>, vector<1x32xf32>
    %100 = vector.broadcast %99 : vector<1x32xf32> to vector<8x32xf32>
    %101 = arith.addf %98, %100 : vector<8x32xf32>
    %102 = arith.addf %2, %101 : vector<8x32xf32>
    %c0_39 = arith.constant 0 : index
    %c0_40 = arith.constant 0 : index
    %103 = vector.load %arg9[%c0_39, %c0_40] : memref<2x32xf32, #tpu.memory_space<vmem>>, vector<1x32xf32>
    %c1 = arith.constant 1 : index
    %c0_41 = arith.constant 0 : index
    %104 = vector.load %arg9[%c1, %c0_41] : memref<2x32xf32, #tpu.memory_space<vmem>>, vector<1x32xf32>
    %cst_42 = arith.constant dense<0.000000e+00> : vector<8xf32>
    %105 = vector.multi_reduction <add>, %102, %cst_42 [1] : vector<8x32xf32> to vector<8xf32>
    %106 = vector.shape_cast %105 : vector<8xf32> to vector<8x1xf32>
    %cst_43 = arith.constant 3.200000e+01 : f32
    %107 = vector.broadcast %cst_43 : f32 to vector<8x1xf32>
    %108 = arith.divf %106, %107 : vector<8x1xf32>
    %109 = vector.broadcast %108 : vector<8x1xf32> to vector<8x32xf32>
    %110 = arith.subf %102, %109 : vector<8x32xf32>
    %111 = arith.mulf %110, %110 : vector<8x32xf32>
    %cst_44 = arith.constant dense<0.000000e+00> : vector<8xf32>
    %112 = vector.multi_reduction <add>, %111, %cst_44 [1] : vector<8x32xf32> to vector<8xf32>
    %113 = vector.shape_cast %112 : vector<8xf32> to vector<8x1xf32>
    %cst_45 = arith.constant 3.200000e+01 : f32
    %114 = vector.broadcast %cst_45 : f32 to vector<8x1xf32>
    %115 = arith.divf %113, %114 : vector<8x1xf32>
    %cst_46 = arith.constant 9.99999974E-6 : f32
    %116 = vector.broadcast %cst_46 : f32 to vector<8x1xf32>
    %117 = arith.addf %115, %116 : vector<8x1xf32>
    %118 = math.rsqrt %117 : vector<8x1xf32>
    %119 = vector.broadcast %118 : vector<8x1xf32> to vector<8x32xf32>
    %120 = arith.mulf %110, %119 : vector<8x32xf32>
    %121 = vector.broadcast %103 : vector<1x32xf32> to vector<8x32xf32>
    %122 = arith.mulf %120, %121 : vector<8x32xf32>
    %123 = vector.broadcast %104 : vector<1x32xf32> to vector<8x32xf32>
    %124 = arith.addf %122, %123 : vector<8x32xf32>
    %125 = arith.truncf %124 : vector<8x32xf32> to vector<8x32xbf16>
    %c0_47 = arith.constant 0 : index
    %c0_48 = arith.constant 0 : index
    %126 = vector.load %arg10[%c0_47, %c0_48] : memref<32x32xbf16, #tpu.memory_space<vmem>>, vector<32x32xbf16>
    %cst_49 = arith.constant dense<0.000000e+00> : vector<8x32xf32>
    %127 = tpu.matmul %125, %126, %cst_49 {dimension_numbers = #tpu.dot_dimension_numbers<[1], [0], [0], [1], [0, 0, 1, 1], [], []>} : vector<8x32xbf16>, vector<32x32xbf16>, vector<8x32xf32> -> vector<8x32xf32>
    %c0_50 = arith.constant 0 : index
    %c0_51 = arith.constant 0 : index
    %128 = vector.load %arg11[%c0_50, %c0_51] : memref<1x32xf32, #tpu.memory_space<vmem>>, vector<1x32xf32>
    %129 = vector.broadcast %128 : vector<1x32xf32> to vector<8x32xf32>
    %130 = arith.addf %127, %129 : vector<8x32xf32>
    %131 = arith.truncf %130 : vector<8x32xf32> to vector<8x32xbf16>
    %c0_52 = arith.constant 0 : index
    %c0_53 = arith.constant 0 : index
    %132 = vector.load %arg12[%c0_52, %c0_53] : memref<32x64xbf16, #tpu.memory_space<vmem>>, vector<32x64xbf16>
    %cst_54 = arith.constant dense<0.000000e+00> : vector<8x64xf32>
    %133 = tpu.matmul %4, %132, %cst_54 {dimension_numbers = #tpu.dot_dimension_numbers<[1], [0], [0], [1], [0, 0, 1, 1], [], []>} : vector<8x32xbf16>, vector<32x64xbf16>, vector<8x64xf32> -> vector<8x64xf32>
    %c0_55 = arith.constant 0 : index
    %c0_56 = arith.constant 0 : index
    %134 = vector.load %arg13[%c0_55, %c0_56] : memref<1x64xf32, #tpu.memory_space<vmem>>, vector<1x64xf32>
    %135 = vector.broadcast %134 : vector<1x64xf32> to vector<8x64xf32>
    %136 = arith.addf %133, %135 : vector<8x64xf32>
    %137 = arith.truncf %136 : vector<8x64xf32> to vector<8x64xbf16>
    %138 = vector.extract_strided_slice %137 {offsets = [0, 0], sizes = [8, 32], strides = [1, 1]} : vector<8x64xbf16> to vector<8x32xbf16>
    %139 = vector.extract_strided_slice %137 {offsets = [0, 32], sizes = [8, 32], strides = [1, 1]} : vector<8x64xbf16> to vector<8x32xbf16>
    %140 = vector.extract_strided_slice %131 {offsets = [0, 0], sizes = [8, 8], strides = [1, 1]} : vector<8x32xbf16> to vector<8x8xbf16>
    %141 = vector.extract_strided_slice %138 {offsets = [0, 0], sizes = [8, 8], strides = [1, 1]} : vector<8x32xbf16> to vector<8x8xbf16>
    %cst_57 = arith.constant dense<0.000000e+00> : vector<8x8xf32>
    %142 = tpu.matmul %140, %141, %cst_57 {dimension_numbers = #tpu.dot_dimension_numbers<[1], [1], [0], [0], [0, 0, 1, 0], [], []>} : vector<8x8xbf16>, vector<8x8xbf16>, vector<8x8xf32> -> vector<8x8xf32>
    %cst_58 = arith.constant 0.353553385 : f32
    %143 = vector.broadcast %cst_58 : f32 to vector<8x8xf32>
    %144 = arith.mulf %142, %143 : vector<8x8xf32>
    %cst_59 = arith.constant dense<0xFF800000> : vector<8xf32>
    %145 = vector.multi_reduction <maximumf>, %144, %cst_59 [1] : vector<8x8xf32> to vector<8xf32>
    %146 = vector.shape_cast %145 : vector<8xf32> to vector<8x1xf32>
    %147 = vector.broadcast %146 : vector<8x1xf32> to vector<8x8xf32>
    %148 = arith.subf %144, %147 : vector<8x8xf32>
    %149 = math.exp %148 : vector<8x8xf32>
    %cst_60 = arith.constant dense<0.000000e+00> : vector<8xf32>
    %150 = vector.multi_reduction <add>, %149, %cst_60 [1] : vector<8x8xf32> to vector<8xf32>
    %151 = vector.shape_cast %150 : vector<8xf32> to vector<8x1xf32>
    %152 = tpu.reciprocal %151 {approx = true} : vector<8x1xf32> -> vector<8x1xf32>
    %153 = vector.broadcast %152 : vector<8x1xf32> to vector<8x8xf32>
    %154 = arith.mulf %149, %153 : vector<8x8xf32>
    %155 = arith.truncf %154 : vector<8x8xf32> to vector<8x8xbf16>
    %156 = vector.extract_strided_slice %139 {offsets = [0, 0], sizes = [8, 8], strides = [1, 1]} : vector<8x32xbf16> to vector<8x8xbf16>
    %cst_61 = arith.constant dense<0.000000e+00> : vector<8x8xf32>
    %157 = tpu.matmul %155, %156, %cst_61 {dimension_numbers = #tpu.dot_dimension_numbers<[1], [0], [0], [1], [0, 0, 1, 1], [], []>} : vector<8x8xbf16>, vector<8x8xbf16>, vector<8x8xf32> -> vector<8x8xf32>
    %158 = vector.extract_strided_slice %131 {offsets = [0, 8], sizes = [8, 8], strides = [1, 1]} : vector<8x32xbf16> to vector<8x8xbf16>
    %159 = vector.extract_strided_slice %138 {offsets = [0, 8], sizes = [8, 8], strides = [1, 1]} : vector<8x32xbf16> to vector<8x8xbf16>
    %cst_62 = arith.constant dense<0.000000e+00> : vector<8x8xf32>
    %160 = tpu.matmul %158, %159, %cst_62 {dimension_numbers = #tpu.dot_dimension_numbers<[1], [1], [0], [0], [0, 0, 1, 0], [], []>} : vector<8x8xbf16>, vector<8x8xbf16>, vector<8x8xf32> -> vector<8x8xf32>
    %cst_63 = arith.constant 0.353553385 : f32
    %161 = vector.broadcast %cst_63 : f32 to vector<8x8xf32>
    %162 = arith.mulf %160, %161 : vector<8x8xf32>
    %cst_64 = arith.constant dense<0xFF800000> : vector<8xf32>
    %163 = vector.multi_reduction <maximumf>, %162, %cst_64 [1] : vector<8x8xf32> to vector<8xf32>
    %164 = vector.shape_cast %163 : vector<8xf32> to vector<8x1xf32>
    %165 = vector.broadcast %164 : vector<8x1xf32> to vector<8x8xf32>
    %166 = arith.subf %162, %165 : vector<8x8xf32>
    %167 = math.exp %166 : vector<8x8xf32>
    %cst_65 = arith.constant dense<0.000000e+00> : vector<8xf32>
    %168 = vector.multi_reduction <add>, %167, %cst_65 [1] : vector<8x8xf32> to vector<8xf32>
    %169 = vector.shape_cast %168 : vector<8xf32> to vector<8x1xf32>
    %170 = tpu.reciprocal %169 {approx = true} : vector<8x1xf32> -> vector<8x1xf32>
    %171 = vector.broadcast %170 : vector<8x1xf32> to vector<8x8xf32>
    %172 = arith.mulf %167, %171 : vector<8x8xf32>
    %173 = arith.truncf %172 : vector<8x8xf32> to vector<8x8xbf16>
    %174 = vector.extract_strided_slice %139 {offsets = [0, 8], sizes = [8, 8], strides = [1, 1]} : vector<8x32xbf16> to vector<8x8xbf16>
    %cst_66 = arith.constant dense<0.000000e+00> : vector<8x8xf32>
    %175 = tpu.matmul %173, %174, %cst_66 {dimension_numbers = #tpu.dot_dimension_numbers<[1], [0], [0], [1], [0, 0, 1, 1], [], []>} : vector<8x8xbf16>, vector<8x8xbf16>, vector<8x8xf32> -> vector<8x8xf32>
    %176 = vector.extract_strided_slice %131 {offsets = [0, 16], sizes = [8, 8], strides = [1, 1]} : vector<8x32xbf16> to vector<8x8xbf16>
    %177 = vector.extract_strided_slice %138 {offsets = [0, 16], sizes = [8, 8], strides = [1, 1]} : vector<8x32xbf16> to vector<8x8xbf16>
    %cst_67 = arith.constant dense<0.000000e+00> : vector<8x8xf32>
    %178 = tpu.matmul %176, %177, %cst_67 {dimension_numbers = #tpu.dot_dimension_numbers<[1], [1], [0], [0], [0, 0, 1, 0], [], []>} : vector<8x8xbf16>, vector<8x8xbf16>, vector<8x8xf32> -> vector<8x8xf32>
    %cst_68 = arith.constant 0.353553385 : f32
    %179 = vector.broadcast %cst_68 : f32 to vector<8x8xf32>
    %180 = arith.mulf %178, %179 : vector<8x8xf32>
    %cst_69 = arith.constant dense<0xFF800000> : vector<8xf32>
    %181 = vector.multi_reduction <maximumf>, %180, %cst_69 [1] : vector<8x8xf32> to vector<8xf32>
    %182 = vector.shape_cast %181 : vector<8xf32> to vector<8x1xf32>
    %183 = vector.broadcast %182 : vector<8x1xf32> to vector<8x8xf32>
    %184 = arith.subf %180, %183 : vector<8x8xf32>
    %185 = math.exp %184 : vector<8x8xf32>
    %cst_70 = arith.constant dense<0.000000e+00> : vector<8xf32>
    %186 = vector.multi_reduction <add>, %185, %cst_70 [1] : vector<8x8xf32> to vector<8xf32>
    %187 = vector.shape_cast %186 : vector<8xf32> to vector<8x1xf32>
    %188 = tpu.reciprocal %187 {approx = true} : vector<8x1xf32> -> vector<8x1xf32>
    %189 = vector.broadcast %188 : vector<8x1xf32> to vector<8x8xf32>
    %190 = arith.mulf %185, %189 : vector<8x8xf32>
    %191 = arith.truncf %190 : vector<8x8xf32> to vector<8x8xbf16>
    %192 = vector.extract_strided_slice %139 {offsets = [0, 16], sizes = [8, 8], strides = [1, 1]} : vector<8x32xbf16> to vector<8x8xbf16>
    %cst_71 = arith.constant dense<0.000000e+00> : vector<8x8xf32>
    %193 = tpu.matmul %191, %192, %cst_71 {dimension_numbers = #tpu.dot_dimension_numbers<[1], [0], [0], [1], [0, 0, 1, 1], [], []>} : vector<8x8xbf16>, vector<8x8xbf16>, vector<8x8xf32> -> vector<8x8xf32>
    %194 = vector.extract_strided_slice %131 {offsets = [0, 24], sizes = [8, 8], strides = [1, 1]} : vector<8x32xbf16> to vector<8x8xbf16>
    %195 = vector.extract_strided_slice %138 {offsets = [0, 24], sizes = [8, 8], strides = [1, 1]} : vector<8x32xbf16> to vector<8x8xbf16>
    %cst_72 = arith.constant dense<0.000000e+00> : vector<8x8xf32>
    %196 = tpu.matmul %194, %195, %cst_72 {dimension_numbers = #tpu.dot_dimension_numbers<[1], [1], [0], [0], [0, 0, 1, 0], [], []>} : vector<8x8xbf16>, vector<8x8xbf16>, vector<8x8xf32> -> vector<8x8xf32>
    %cst_73 = arith.constant 0.353553385 : f32
    %197 = vector.broadcast %cst_73 : f32 to vector<8x8xf32>
    %198 = arith.mulf %196, %197 : vector<8x8xf32>
    %cst_74 = arith.constant dense<0xFF800000> : vector<8xf32>
    %199 = vector.multi_reduction <maximumf>, %198, %cst_74 [1] : vector<8x8xf32> to vector<8xf32>
    %200 = vector.shape_cast %199 : vector<8xf32> to vector<8x1xf32>
    %201 = vector.broadcast %200 : vector<8x1xf32> to vector<8x8xf32>
    %202 = arith.subf %198, %201 : vector<8x8xf32>
    %203 = math.exp %202 : vector<8x8xf32>
    %cst_75 = arith.constant dense<0.000000e+00> : vector<8xf32>
    %204 = vector.multi_reduction <add>, %203, %cst_75 [1] : vector<8x8xf32> to vector<8xf32>
    %205 = vector.shape_cast %204 : vector<8xf32> to vector<8x1xf32>
    %206 = tpu.reciprocal %205 {approx = true} : vector<8x1xf32> -> vector<8x1xf32>
    %207 = vector.broadcast %206 : vector<8x1xf32> to vector<8x8xf32>
    %208 = arith.mulf %203, %207 : vector<8x8xf32>
    %209 = arith.truncf %208 : vector<8x8xf32> to vector<8x8xbf16>
    %210 = vector.extract_strided_slice %139 {offsets = [0, 24], sizes = [8, 8], strides = [1, 1]} : vector<8x32xbf16> to vector<8x8xbf16>
    %cst_76 = arith.constant dense<0.000000e+00> : vector<8x8xf32>
    %211 = tpu.matmul %209, %210, %cst_76 {dimension_numbers = #tpu.dot_dimension_numbers<[1], [0], [0], [1], [0, 0, 1, 1], [], []>} : vector<8x8xbf16>, vector<8x8xbf16>, vector<8x8xf32> -> vector<8x8xf32>
    %212 = tpu.concatenate %157, %175, %193, %211 in 1 : vector<8x8xf32>, vector<8x8xf32>, vector<8x8xf32>, vector<8x8xf32> -> vector<8x32xf32>
    %213 = arith.truncf %212 : vector<8x32xf32> to vector<8x32xbf16>
    %c0_77 = arith.constant 0 : index
    %c0_78 = arith.constant 0 : index
    %214 = vector.load %arg14[%c0_77, %c0_78] : memref<32x32xbf16, #tpu.memory_space<vmem>>, vector<32x32xbf16>
    %cst_79 = arith.constant dense<0.000000e+00> : vector<8x32xf32>
    %215 = tpu.matmul %213, %214, %cst_79 {dimension_numbers = #tpu.dot_dimension_numbers<[1], [0], [0], [1], [0, 0, 1, 1], [], []>} : vector<8x32xbf16>, vector<32x32xbf16>, vector<8x32xf32> -> vector<8x32xf32>
    %c0_80 = arith.constant 0 : index
    %c0_81 = arith.constant 0 : index
    %216 = vector.load %arg15[%c0_80, %c0_81] : memref<1x32xf32, #tpu.memory_space<vmem>>, vector<1x32xf32>
    %217 = vector.broadcast %216 : vector<1x32xf32> to vector<8x32xf32>
    %218 = arith.addf %215, %217 : vector<8x32xf32>
    %219 = arith.addf %124, %218 : vector<8x32xf32>
    %c0_82 = arith.constant 0 : index
    %c0_83 = arith.constant 0 : index
    %220 = vector.load %arg16[%c0_82, %c0_83] : memref<2x32xf32, #tpu.memory_space<vmem>>, vector<1x32xf32>
    %c1_84 = arith.constant 1 : index
    %c0_85 = arith.constant 0 : index
    %221 = vector.load %arg16[%c1_84, %c0_85] : memref<2x32xf32, #tpu.memory_space<vmem>>, vector<1x32xf32>
    %cst_86 = arith.constant dense<0.000000e+00> : vector<8xf32>
    %222 = vector.multi_reduction <add>, %219, %cst_86 [1] : vector<8x32xf32> to vector<8xf32>
    %223 = vector.shape_cast %222 : vector<8xf32> to vector<8x1xf32>
    %cst_87 = arith.constant 3.200000e+01 : f32
    %224 = vector.broadcast %cst_87 : f32 to vector<8x1xf32>
    %225 = arith.divf %223, %224 : vector<8x1xf32>
    %226 = vector.broadcast %225 : vector<8x1xf32> to vector<8x32xf32>
    %227 = arith.subf %219, %226 : vector<8x32xf32>
    %228 = arith.mulf %227, %227 : vector<8x32xf32>
    %cst_88 = arith.constant dense<0.000000e+00> : vector<8xf32>
    %229 = vector.multi_reduction <add>, %228, %cst_88 [1] : vector<8x32xf32> to vector<8xf32>
    %230 = vector.shape_cast %229 : vector<8xf32> to vector<8x1xf32>
    %cst_89 = arith.constant 3.200000e+01 : f32
    %231 = vector.broadcast %cst_89 : f32 to vector<8x1xf32>
    %232 = arith.divf %230, %231 : vector<8x1xf32>
    %cst_90 = arith.constant 9.99999974E-6 : f32
    %233 = vector.broadcast %cst_90 : f32 to vector<8x1xf32>
    %234 = arith.addf %232, %233 : vector<8x1xf32>
    %235 = math.rsqrt %234 : vector<8x1xf32>
    %236 = vector.broadcast %235 : vector<8x1xf32> to vector<8x32xf32>
    %237 = arith.mulf %227, %236 : vector<8x32xf32>
    %238 = vector.broadcast %220 : vector<1x32xf32> to vector<8x32xf32>
    %239 = arith.mulf %237, %238 : vector<8x32xf32>
    %240 = vector.broadcast %221 : vector<1x32xf32> to vector<8x32xf32>
    %241 = arith.addf %239, %240 : vector<8x32xf32>
    %242 = arith.truncf %241 : vector<8x32xf32> to vector<8x32xbf16>
    %c0_91 = arith.constant 0 : index
    %c0_92 = arith.constant 0 : index
    %243 = vector.load %arg17[%c0_91, %c0_92] : memref<32x128xbf16, #tpu.memory_space<vmem>>, vector<32x128xbf16>
    %cst_93 = arith.constant dense<0.000000e+00> : vector<8x128xf32>
    %244 = tpu.matmul %242, %243, %cst_93 {dimension_numbers = #tpu.dot_dimension_numbers<[1], [0], [0], [1], [0, 0, 1, 1], [], []>} : vector<8x32xbf16>, vector<32x128xbf16>, vector<8x128xf32> -> vector<8x128xf32>
    %c0_94 = arith.constant 0 : index
    %c0_95 = arith.constant 0 : index
    %245 = vector.load %arg18[%c0_94, %c0_95] : memref<1x128xf32, #tpu.memory_space<vmem>>, vector<1x128xf32>
    %246 = vector.broadcast %245 : vector<1x128xf32> to vector<8x128xf32>
    %247 = arith.addf %244, %246 : vector<8x128xf32>
    %cst_96 = arith.constant 5.000000e-01 : f32
    %248 = vector.broadcast %cst_96 : f32 to vector<8x128xf32>
    %249 = arith.mulf %248, %247 : vector<8x128xf32>
    %cst_97 = arith.constant 0.707106769 : f32
    %250 = vector.broadcast %cst_97 : f32 to vector<8x128xf32>
    %251 = arith.mulf %247, %250 : vector<8x128xf32>
    %252 = math.absf %251 : vector<8x128xf32>
    %cst_98 = arith.constant 0.327591091 : f32
    %253 = vector.broadcast %cst_98 : f32 to vector<8x128xf32>
    %254 = arith.mulf %253, %252 : vector<8x128xf32>
    %cst_99 = arith.constant 1.000000e+00 : f32
    %255 = vector.broadcast %cst_99 : f32 to vector<8x128xf32>
    %256 = arith.addf %255, %254 : vector<8x128xf32>
    %257 = tpu.reciprocal %256 {approx = true} : vector<8x128xf32> -> vector<8x128xf32>
    %cst_100 = arith.constant 1.06140542 : f32
    %258 = vector.broadcast %cst_100 : f32 to vector<8x128xf32>
    %259 = arith.mulf %258, %257 : vector<8x128xf32>
    %cst_101 = arith.constant -1.45315206 : f32
    %260 = vector.broadcast %cst_101 : f32 to vector<8x128xf32>
    %261 = arith.addf %259, %260 : vector<8x128xf32>
    %262 = arith.mulf %261, %257 : vector<8x128xf32>
    %cst_102 = arith.constant 1.42141378 : f32
    %263 = vector.broadcast %cst_102 : f32 to vector<8x128xf32>
    %264 = arith.addf %262, %263 : vector<8x128xf32>
    %265 = arith.mulf %264, %257 : vector<8x128xf32>
    %cst_103 = arith.constant -0.284496725 : f32
    %266 = vector.broadcast %cst_103 : f32 to vector<8x128xf32>
    %267 = arith.addf %265, %266 : vector<8x128xf32>
    %268 = arith.mulf %267, %257 : vector<8x128xf32>
    %cst_104 = arith.constant 0.254829586 : f32
    %269 = vector.broadcast %cst_104 : f32 to vector<8x128xf32>
    %270 = arith.addf %268, %269 : vector<8x128xf32>
    %271 = arith.mulf %270, %257 : vector<8x128xf32>
    %cst_105 = arith.constant 0.000000e+00 : f32
    %272 = vector.broadcast %cst_105 : f32 to vector<8x128xf32>
    %273 = arith.subf %272, %252 : vector<8x128xf32>
    %274 = arith.mulf %273, %252 : vector<8x128xf32>
    %275 = math.exp %274 : vector<8x128xf32>
    %276 = arith.mulf %271, %275 : vector<8x128xf32>
    %cst_106 = arith.constant 1.000000e+00 : f32
    %277 = vector.broadcast %cst_106 : f32 to vector<8x128xf32>
    %278 = arith.subf %277, %276 : vector<8x128xf32>
    %cst_107 = arith.constant 0.000000e+00 : f32
    %279 = vector.broadcast %cst_107 : f32 to vector<8x128xf32>
    %280 = arith.cmpf oge, %251, %279 : vector<8x128xf32>
    %cst_108 = arith.constant 0.000000e+00 : f32
    %281 = vector.broadcast %cst_108 : f32 to vector<8x128xf32>
    %282 = arith.subf %281, %278 : vector<8x128xf32>
    %283 = arith.select %280, %278, %282 : vector<8x128xi1>, vector<8x128xf32>
    %cst_109 = arith.constant 1.000000e+00 : f32
    %284 = vector.broadcast %cst_109 : f32 to vector<8x128xf32>
    %285 = arith.addf %284, %283 : vector<8x128xf32>
    %286 = arith.mulf %249, %285 : vector<8x128xf32>
    %287 = arith.truncf %286 : vector<8x128xf32> to vector<8x128xbf16>
    %c0_110 = arith.constant 0 : index
    %c0_111 = arith.constant 0 : index
    %288 = vector.load %arg19[%c0_110, %c0_111] : memref<128x32xbf16, #tpu.memory_space<vmem>>, vector<128x32xbf16>
    %cst_112 = arith.constant dense<0.000000e+00> : vector<8x32xf32>
    %289 = tpu.matmul %287, %288, %cst_112 {dimension_numbers = #tpu.dot_dimension_numbers<[1], [0], [0], [1], [0, 0, 1, 1], [], []>} : vector<8x128xbf16>, vector<128x32xbf16>, vector<8x32xf32> -> vector<8x32xf32>
    %c0_113 = arith.constant 0 : index
    %c0_114 = arith.constant 0 : index
    %290 = vector.load %arg20[%c0_113, %c0_114] : memref<1x32xf32, #tpu.memory_space<vmem>>, vector<1x32xf32>
    %291 = vector.broadcast %290 : vector<1x32xf32> to vector<8x32xf32>
    %292 = arith.addf %289, %291 : vector<8x32xf32>
    %293 = arith.addf %241, %292 : vector<8x32xf32>
    %c0_115 = arith.constant 0 : index
    %c0_116 = arith.constant 0 : index
    %294 = vector.load %arg21[%c0_115, %c0_116] : memref<2x32xf32, #tpu.memory_space<vmem>>, vector<1x32xf32>
    %c1_117 = arith.constant 1 : index
    %c0_118 = arith.constant 0 : index
    %295 = vector.load %arg21[%c1_117, %c0_118] : memref<2x32xf32, #tpu.memory_space<vmem>>, vector<1x32xf32>
    %cst_119 = arith.constant dense<0.000000e+00> : vector<8xf32>
    %296 = vector.multi_reduction <add>, %293, %cst_119 [1] : vector<8x32xf32> to vector<8xf32>
    %297 = vector.shape_cast %296 : vector<8xf32> to vector<8x1xf32>
    %cst_120 = arith.constant 3.200000e+01 : f32
    %298 = vector.broadcast %cst_120 : f32 to vector<8x1xf32>
    %299 = arith.divf %297, %298 : vector<8x1xf32>
    %300 = vector.broadcast %299 : vector<8x1xf32> to vector<8x32xf32>
    %301 = arith.subf %293, %300 : vector<8x32xf32>
    %302 = arith.mulf %301, %301 : vector<8x32xf32>
    %cst_121 = arith.constant dense<0.000000e+00> : vector<8xf32>
    %303 = vector.multi_reduction <add>, %302, %cst_121 [1] : vector<8x32xf32> to vector<8xf32>
    %304 = vector.shape_cast %303 : vector<8xf32> to vector<8x1xf32>
    %cst_122 = arith.constant 3.200000e+01 : f32
    %305 = vector.broadcast %cst_122 : f32 to vector<8x1xf32>
    %306 = arith.divf %304, %305 : vector<8x1xf32>
    %cst_123 = arith.constant 9.99999974E-6 : f32
    %307 = vector.broadcast %cst_123 : f32 to vector<8x1xf32>
    %308 = arith.addf %306, %307 : vector<8x1xf32>
    %309 = math.rsqrt %308 : vector<8x1xf32>
    %310 = vector.broadcast %309 : vector<8x1xf32> to vector<8x32xf32>
    %311 = arith.mulf %301, %310 : vector<8x32xf32>
    %312 = vector.broadcast %294 : vector<1x32xf32> to vector<8x32xf32>
    %313 = arith.mulf %311, %312 : vector<8x32xf32>
    %314 = vector.broadcast %295 : vector<1x32xf32> to vector<8x32xf32>
    %315 = arith.addf %313, %314 : vector<8x32xf32>
    %316 = vector.shape_cast %315 : vector<8x32xf32> to vector<1x8x32xf32>
    %c0_124 = arith.constant 0 : index
    %c0_125 = arith.constant 0 : index
    %c0_126 = arith.constant 0 : index
    %317 = vector.load %arg22[%c0_124, %c0_125, %c0_126] : memref<1x8x32xf32, #tpu.memory_space<vmem>>, vector<1x8x32xf32>
    tpu.vector_store %arg22[%c0_124, %c0_125, %c0_126], %316 {strides = array<i32>} : memref<1x8x32xf32, #tpu.memory_space<vmem>>, vector<1x8x32xf32>,
    return
  }
  func.func @transform_0(%arg0: i32) -> (i32, i32, i32) {
    %c0_i32 = arith.constant 0 : i32
    %c0_i32_0 = arith.constant 0 : i32
    %c0_i32_1 = arith.constant 0 : i32
    return %arg0, %c0_i32, %c0_i32_0 : i32, i32, i32
  }
  func.func @transform_1(%arg0: i32) -> (i32, i32, i32) {
    %c0_i32 = arith.constant 0 : i32
    %c0_i32_0 = arith.constant 0 : i32
    %c0_i32_1 = arith.constant 0 : i32
    return %arg0, %c0_i32, %c0_i32_0 : i32, i32, i32
  }
  func.func @transform_2(%arg0: i32) -> (i32, i32) {
    %c0_i32 = arith.constant 0 : i32
    %c0_i32_0 = arith.constant 0 : i32
    %c0_i32_1 = arith.constant 0 : i32
    return %c0_i32, %c0_i32_0 : i32, i32
  }
  func.func @transform_3(%arg0: i32) -> (i32, i32, i32) {
    %c0_i32 = arith.constant 0 : i32
    %c0_i32_0 = arith.constant 0 : i32
    %c0_i32_1 = arith.constant 0 : i32
    return %arg0, %c0_i32, %c0_i32_0 : i32, i32, i32
  }
  func.func @transform_4(%arg0: i32) -> (i32, i32) {
    %c0_i32 = arith.constant 0 : i32
    %c0_i32_0 = arith.constant 0 : i32
    %c0_i32_1 = arith.constant 0 : i32
    return %c0_i32, %c0_i32_0 : i32, i32
  }
  func.func @transform_5(%arg0: i32) -> (i32, i32) {
    %c0_i32 = arith.constant 0 : i32
    %c0_i32_0 = arith.constant 0 : i32
    %c0_i32_1 = arith.constant 0 : i32
    return %c0_i32, %c0_i32_0 : i32, i32
  }
  func.func @transform_6(%arg0: i32) -> (i32, i32) {
    %c0_i32 = arith.constant 0 : i32
    %c0_i32_0 = arith.constant 0 : i32
    %c0_i32_1 = arith.constant 0 : i32
    return %c0_i32, %c0_i32_0 : i32, i32
  }
  func.func @transform_7(%arg0: i32) -> (i32, i32) {
    %c0_i32 = arith.constant 0 : i32
    %c0_i32_0 = arith.constant 0 : i32
    %c0_i32_1 = arith.constant 0 : i32
    return %c0_i32, %c0_i32_0 : i32, i32
  }
  func.func @transform_8(%arg0: i32) -> (i32, i32) {
    %c0_i32 = arith.constant 0 : i32
    %c0_i32_0 = arith.constant 0 : i32
    %c0_i32_1 = arith.constant 0 : i32
    return %c0_i32, %c0_i32_0 : i32, i32
  }
  func.func @transform_9(%arg0: i32) -> (i32, i32) {
    %c0_i32 = arith.constant 0 : i32
    %c0_i32_0 = arith.constant 0 : i32
    %c0_i32_1 = arith.constant 0 : i32
    return %c0_i32, %c0_i32_0 : i32, i32
  }
  func.func @transform_10(%arg0: i32) -> (i32, i32) {
    %c0_i32 = arith.constant 0 : i32
    %c0_i32_0 = arith.constant 0 : i32
    %c0_i32_1 = arith.constant 0 : i32
    return %c0_i32, %c0_i32_0 : i32, i32
  }
  func.func @transform_11(%arg0: i32) -> (i32, i32) {
    %c0_i32 = arith.constant 0 : i32
    %c0_i32_0 = arith.constant 0 : i32
    %c0_i32_1 = arith.constant 0 : i32
    return %c0_i32, %c0_i32_0 : i32, i32
  }
  func.func @transform_12(%arg0: i32) -> (i32, i32) {
    %c0_i32 = arith.constant 0 : i32
    %c0_i32_0 = arith.constant 0 : i32
    %c0_i32_1 = arith.constant 0 : i32
    return %c0_i32, %c0_i32_0 : i32, i32
  }
  func.func @transform_13(%arg0: i32) -> (i32, i32) {
    %c0_i32 = arith.constant 0 : i32
    %c0_i32_0 = arith.constant 0 : i32
    %c0_i32_1 = arith.constant 0 : i32
    return %c0_i32, %c0_i32_0 : i32, i32
  }
  func.func @transform_14(%arg0: i32) -> (i32, i32) {
    %c0_i32 = arith.constant 0 : i32
    %c0_i32_0 = arith.constant 0 : i32
    %c0_i32_1 = arith.constant 0 : i32
    return %c0_i32, %c0_i32_0 : i32, i32
  }
  func.func @transform_15(%arg0: i32) -> (i32, i32) {
    %c0_i32 = arith.constant 0 : i32
    %c0_i32_0 = arith.constant 0 : i32
    %c0_i32_1 = arith.constant 0 : i32
    return %c0_i32, %c0_i32_0 : i32, i32
  }
  func.func @transform_16(%arg0: i32) -> (i32, i32) {
    %c0_i32 = arith.constant 0 : i32
    %c0_i32_0 = arith.constant 0 : i32
    %c0_i32_1 = arith.constant 0 : i32
    return %c0_i32, %c0_i32_0 : i32, i32
  }
  func.func @transform_17(%arg0: i32) -> (i32, i32) {
    %c0_i32 = arith.constant 0 : i32
    %c0_i32_0 = arith.constant 0 : i32
    %c0_i32_1 = arith.constant 0 : i32
    return %c0_i32, %c0_i32_0 : i32, i32
  }
  func.func @transform_18(%arg0: i32) -> (i32, i32) {
    %c0_i32 = arith.constant 0 : i32
    %c0_i32_0 = arith.constant 0 : i32
    %c0_i32_1 = arith.constant 0 : i32
    return %c0_i32, %c0_i32_0 : i32, i32
  }
  func.func @transform_19(%arg0: i32) -> (i32, i32) {
    %c0_i32 = arith.constant 0 : i32
    %c0_i32_0 = arith.constant 0 : i32
    %c0_i32_1 = arith.constant 0 : i32
    return %c0_i32, %c0_i32_0 : i32, i32
  }
  func.func @transform_20(%arg0: i32) -> (i32, i32) {
    %c0_i32 = arith.constant 0 : i32
    %c0_i32_0 = arith.constant 0 : i32
    %c0_i32_1 = arith.constant 0 : i32
    return %c0_i32, %c0_i32_0 : i32, i32
  }
  func.func @transform_21(%arg0: i32) -> (i32, i32, i32) {
    %c0_i32 = arith.constant 0 : i32
    %c0_i32_0 = arith.constant 0 : i32
    %c0_i32_1 = arith.constant 0 : i32
    return %arg0, %c0_i32, %c0_i32_0 : i32, i32, i32
  }
}

</mosaic_0001>

<bundles_post_ra>
// kernel: tpu_custom_call.1
= control target key start
LH: loop header
LB: loop body
LE: loop exit
PB: predicated region body
PF: predicated region fallthrough
CT: control target
= control target key end

     0   :  { %s5222_s0 = inlined_call_operand.hbm [shape: bf16[2,8,32], index: 0, kind: input, shape index: {}]   ;;  %s5223_s1 = inlined_call_operand.hbm [shape: bf16[2,8,32], index: 1, kind: input, shape index: {}]   ;;  %s5224_s2 = inlined_call_operand.hbm [shape: f32[8,8], index: 2, kind: input, shape index: {}]   ;;  %s5225_s3 = inlined_call_operand.hbm [shape: f32[2,1,8], index: 3, kind: input, shape index: {}]   ;;  %s5226_s4 = inlined_call_operand.hbm [shape: bf16[32,96], index: 4, kind: input, shape index: {}]   ;;  %s5227_s5 = inlined_call_operand.hbm [shape: f32[1,96], index: 5, kind: input, shape index: {}]   ;;  %s5228_s6 = inlined_call_operand.hbm [shape: bf16[32,32], index: 6, kind: input, shape index: {}]   ;;  %s5229_s7 = inlined_call_operand.hbm [shape: f32[1,32], index: 7, kind: input, shape index: {}]   ;;  %s5230_s8 = inlined_call_operand.hbm [shape: f32[2,32], index: 8, kind: input, shape index: {}]   ;;  %s5231_s9 = inlined_call_operand.hbm [shape: bf16[32,32], index: 9, kind: input, shape index: {}]   ;;  %s5232_s10 = inlined_call_operand.hbm [shape: f32[1,32], index: 10, kind: input, shape index: {}]   ;;  %s5233_s11 = inlined_call_operand.hbm [shape: bf16[32,64], index: 11, kind: input, shape index: {}]   ;;  %s5234_s12 = inlined_call_operand.hbm [shape: f32[1,64], index: 12, kind: input, shape index: {}]   ;;  %s5235_s13 = inlined_call_operand.hbm [shape: bf16[32,32], index: 13, kind: input, shape index: {}]   ;;  %s5236_s14 = inlined_call_operand.hbm [shape: f32[1,32], index: 14, kind: input, shape index: {}]   ;;  %s5237_s15 = inlined_call_operand.hbm [shape: f32[2,32], index: 15, kind: input, shape index: {}]   ;;  %s5238_s16 = inlined_call_operand.hbm [shape: bf16[32,128], index: 16, kind: input, shape index: {}]   ;;  %s5239_s17 = inlined_call_operand.hbm [shape: f32[1,128], index: 17, kind: input, shape index: {}]   ;;  %s5240_s18 = inlined_call_operand.hbm [shape: bf16[128,32], index: 18, kind: input, shape index: {}]   ;;  %s5241_s19 = inlined_call_operand.hbm [shape: f32[1,32], index: 19, kind: input, shape index: {}]   ;;  %s5242_s20 = inlined_call_operand.hbm [shape: f32[2,32], index: 20, kind: input, shape index: {}]   ;;  %s5243_s21 = inlined_call_operand.hbm [shape: f32[2,8,32], index: 21, kind: output, shape index: {}]  }
   0x1   :  { %5275 = sst [smem:[#allocation56_spill]] %s5222_s0 }
   0x2   :  { %5276 = sst [smem:[#allocation57_spill]] %s5223_s1 }
   0x3   :  { %5277 = sst [smem:[#allocation58_spill]] %s5224_s2 }
   0x4   :  { %5278 = sst [smem:[#allocation59_spill]] %s5225_s3 }
   0x5   :  { %5279 = sst [smem:[#allocation60_spill]] %s5226_s4 }
   0x6   :  { %5280 = sst [smem:[#allocation61_spill]] %s5227_s5 }
   0x7   :  { %5281 = sst [smem:[#allocation62_spill]] %s5228_s6 }
   0x8   :  { %5282 = sst [smem:[#allocation63_spill]] %s5229_s7 }
   0x9   :  { %5283 = sst [smem:[#allocation64_spill]] %s5230_s8 }
   0xa   :  { %5284 = sst [smem:[#allocation65_spill]] %s5231_s9 }
   0xb   :  { %5285 = sst [smem:[#allocation66_spill]] %s5232_s10 }
   0xc   :  { %5286 = sst [smem:[#allocation67_spill]] %s5233_s11 }
   0xd   :  { %5287 = sst [smem:[#allocation68_spill]] %s5234_s12 }
   0xe   :  { %5288 = sst [smem:[#allocation69_spill]] %s5235_s13 }
   0xf   :  { %5289 = sst [smem:[#allocation70_spill]] %s5236_s14 }
  0x10   :  { %5290 = sst [smem:[#allocation71_spill]] %s5242_s20 }
  0x11   :  { %5291 = sst [smem:[#allocation72_spill]] %s5243_s21 }
  0x12   :  { %26 = vsyncpa [#allocation3], 0 }
  0x13   :  { %28 = vsyncpa [#allocation3 + $0x1], 0 }
  0x14   :  { %29 = vsyncpa [#allocation6], 0 }
  0x15   :  { %31 = vsyncpa [#allocation6 + $0x1], 0 }
  0x16   :  { %32 = vsyncpa [#allocation9], 0 }
  0x17   :  { %34 = vsyncpa [#allocation9 + $0x1], 0 }
  0x18   :  { %35 = vsyncpa [#allocation12], 0 }
  0x19   :  { %36 = vsyncpa [#allocation15], 0 }
  0x1a   :  { %37 = vsyncpa [#allocation18], 0 }
  0x1b   :  { %38 = vsyncpa [#allocation21], 0 }
  0x1c   :  { %39 = vsyncpa [#allocation24], 0 }
  0x1d   :  { %40 = vsyncpa [#allocation27], 0 }
  0x1e   :  { %41 = vsyncpa [#allocation30], 0 }
  0x1f   :  { %42 = vsyncpa [#allocation33], 0 }
  0x20   :  { %43 = vsyncpa [#allocation4], 0 }
  0x21   :  { %45 = vsyncpa [#allocation4 + $0x1], 0  ;;  %s4344_s2 = smov 0   ;;  %s4346_s25 = smov 0  }
  0x22   :  { %s4348_s26 = smov 0   ;;  %s4350_s27 = smov 0  }
  0x23 LB: > { %5292 = sst [smem:[#allocation50_spill]] %s4180_s2  ;;  %s4194_s3 = smov [#allocation7]   ;;  %s4192_s27 = sphi %s4350_s27, %s4751_s27   ;;  %s4188_s26 = sphi %s4348_s26, %s5372_s26   ;;  %s4184_s25 = sphi %s4346_s25, %s5369_s25   ;;  %s4180_s2 = sphi %s4344_s2, %s5371_s2  }
  0x24   : > { %5293 = sst [smem:[#allocation51_spill]] %s4184_s25  ;;  %s551_s28 = sshll.u32 %s4194_s3, 4  ;;  %s552_s28 = int_to_ptr.vmem [resolvable:$true] %s551_s28 }
  0x25   : > { %5294 = sst [smem:[#allocation52_spill]] %s4188_s26  ;;  %s4365_s29 = sadd.s32 4294967295, %s4192_s27  }
  0x26   : > { %5295 = sst [smem:[#allocation53_spill]] %s4192_s27  ;;  %p2837_p0 = scmp.ge.s32.totalorder %s4192_s27, 1 }
  0x27   : > { %5296 = sst [smem:[#allocation54_spill]] %s4365_s29  ;;  %p5255_p1 = scmp.eq.s32.totalorder %s4365_s29, 0 }
  0x28   : > { %p538_p2 = scmp.lt.s32.totalorder %s4192_s27, 3  ;;  %s4195_s4 = smov [#allocation10]  }
  0x29   : > { %s561_s30 = sshll.u32 %s4195_s4, 4  ;;  %s4196_s22 = smov [#allocation11]   ;;  %s4377_s30 = int_to_ptr.vmem [resolvable:$true] %s561_s30 }
  0x2a   : > { %p4370_p3 = pnand %p2837_p0, %p538_p2  ;;  %s575_s23 = sshll.u32 %s4196_s22, 4  ;;  %s4385_s23 = int_to_ptr.vmem [resolvable:$true] %s575_s23 }
  0x2b   : > { %s5300_s3 = sld [smem:[#allocation58_spill]] }
  0x2c   : > { %s5297_s0 = scalar_select %p4370_p3, 1, 0 }
  0x2d   : > { %p3247_p5 = pneg %p4370_p3 }
  0x2e   : > { %5298 = sst [smem:[#allocation55_spill]] %s5297_s0 }
  0x2f   : > { %p4381_p6 = pnand %p3247_p5, %p5255_p1 }
  0x31   : > { %s3484_s21 = scalar_lea.hbm %s5300_s3, 128  ;;  %p4395_p8 = pneg %p4381_p6 }
  0x32   : > { %p3485_p7 = scmp.ne.s32.totalorder %s5300_s3, %s3484_s21  ;;  %p3491_p11 = scmp.lt.u32.totalorder %s3484_s21, %s5300_s3 }
  0x34   : > { %p3487_p9 = pnand %p4395_p8, %p3485_p7 }
  0x36   : > { %p3488_p10 = pneg %p3487_p9 }
  0x38   : > { %p3493_p12 = pnand %p3491_p11, %p3488_p10 }
  0x3a   : > { %3496 = shalt.err (!%p3493_p12)
}
  0x3b   : > { %s3497_s1 = scalar_lea.vmem %s552_s28, 128  ;;  %p3505_p5 = scmp.lt.s32.totalorder %s552_s28, %s552_s28 }
  0x3c   : > { %p3498_p13 = scmp.ne.s32.totalorder %s552_s28, %s3497_s1  ;;  %p3506_p4 = scmp.lt.s32.totalorder %s3497_s1, %s3497_s1 }
  0x3e   : > { %p3500_p0 = pnand %p3498_p13, %p4395_p8  ;;  %p3507_p1 = por %p3506_p4, %p3505_p5 }
  0x40   : > { %p3501_p2 = pneg %p3500_p0 }
  0x42   : > { %p3508_p3 = pnand %p3507_p1, %p3501_p2 }
  0x44   : > { %3511 = shalt.err (!%p3508_p3)
}
  0x45   : > { %3250 = dma.hbm_to_vmem [thread:$0]  (!%p4381_p6), %s5300_s3, 128, %s552_s28, [#allocation6]  }
  0x46   : > { %s5302_s24 = sld [smem:[#allocation60_spill]] }
  0x4c   : > { %s3512_s22 = scalar_lea.hbm %s5302_s24, 256 }
  0x4d   : > { %p3513_p7 = scmp.ne.s32.totalorder %s5302_s24, %s3512_s22  ;;  %p3519_p1 = scmp.lt.u32.totalorder %s3512_s22, %s5302_s24 }
  0x4f   : > { %p3515_p9 = pnand %p3513_p7, %p4395_p8 }
  0x51   : > { %p3516_p4 = pneg %p3515_p9 }
  0x53   : > { %p3521_p3 = pnand %p3519_p1, %p3516_p4 }
  0x55   : > { %3524 = shalt.err (!%p3521_p3)
}
  0x56   : > { %s3525_s28 = scalar_lea.vmem %s4377_s30, 256  ;;  %p3533_p13 = scmp.lt.s32.totalorder %s4377_s30, %s4377_s30 }
  0x57   : > { %p3526_p10 = scmp.ne.s32.totalorder %s4377_s30, %s3525_s28  ;;  %p3534_p0 = scmp.lt.s32.totalorder %s3525_s28, %s3525_s28 }
  0x59   : > { %p3528_p11 = pnand %p3526_p10, %p4395_p8  ;;  %p3535_p2 = por %p3534_p0, %p3533_p13 }
  0x5b   : > { %p3529_p12 = pneg %p3528_p11 }
  0x5d   : > { %p3536_p5 = pnand %p3535_p2, %p3529_p12 }
  0x5f   : > { %3539 = shalt.err (!%p3536_p5)
}
  0x60   : > { %s5263_s25 = smov 64   ;;  %s5265_s26 = smov 4  }
  0x61   : > { %3253 = dma.hbm_to_vmem [thread:$0]  (!%p4381_p6), %s5302_s24, 256, %s4377_s30, [#allocation9], %s5263_s25, %s5263_s25, %s5265_s26  }
  0x62   : > { %s5303_s29 = sld [smem:[#allocation61_spill]] }
  0x68   : > { %s3540_s22 = scalar_lea.hbm %s5303_s29, 16 }
  0x69   : > { %p3541_p7 = scmp.ne.s32.totalorder %s5303_s29, %s3540_s22  ;;  %p3547_p1 = scmp.lt.u32.totalorder %s3540_s22, %s5303_s29 }
  0x6b   : > { %p3543_p9 = pnand %p3541_p7, %p4395_p8 }
  0x6d   : > { %p3544_p4 = pneg %p3543_p9 }
  0x6f   : > { %p3549_p3 = pnand %p3547_p1, %p3544_p4 }
  0x71   : > { %3552 = shalt.err (!%p3549_p3)
}
  0x72   : > { %s3553_s30 = scalar_lea.vmem %s4385_s23, 16  ;;  %s3560_s27 = scalar_lea.vmem %s4385_s23, 32 }
  0x73   : > { %p3554_p10 = scmp.ne.s32.totalorder %s4385_s23, %s3553_s30  ;;  %p3561_p13 = scmp.lt.s32.totalorder %s4385_s23, %s4385_s23 }
  0x74   : > { %p3562_p0 = scmp.lt.s32.totalorder %s3560_s27, %s3553_s30 }
  0x75   : > { %p3556_p11 = pnand %p3554_p10, %p4395_p8 }
  0x76   : > { %p3563_p2 = por %p3562_p0, %p3561_p13 }
  0x77   : > { %p3557_p12 = pneg %p3556_p11 }
  0x79   : > { %p3564_p5 = pnand %p3563_p2, %p3557_p12 }
  0x7b   : > { %3567 = shalt.err (!%p3564_p5)
}
  0x7c   : > { %3256 = dma.hbm_to_vmem [thread:$0]  (!%p4381_p6), %s5303_s29, 16, %s4385_s23, [#allocation12]  }
  0x7d   : > { %s4199_s2 = smov [#allocation14]   ;;  %s4200_s21 = smov [#allocation17]  }
  0x7e   : > { %s599_s0 = sshll.u32 %s4199_s2, 4  ;;  %s620_s22 = sshll.u32 %s4200_s21, 4  ;;  %s600_s0 = int_to_ptr.vmem [resolvable:$true] %s599_s0  ;;  %s621_s22 = int_to_ptr.vmem [resolvable:$true] %s620_s22 }
  0x7f   : > { %s5304_s7 = sld [smem:[#allocation63_spill]] }
  0x85   : > { %s3568_s30 = scalar_lea.hbm %s5304_s7, 16 }
  0x86   : > { %p3569_p7 = scmp.ne.s32.totalorder %s5304_s7, %s3568_s30  ;;  %p3575_p1 = scmp.lt.u32.totalorder %s3568_s30, %s5304_s7 }
  0x88   : > { %p3571_p9 = pnand %p3569_p7, %p4395_p8 }
  0x8a   : > { %p3572_p4 = pneg %p3571_p9 }
  0x8c   : > { %p3577_p3 = pnand %p3575_p1, %p3572_p4 }
  0x8e   : > { %3580 = shalt.err (!%p3577_p3)
}
  0x8f   : > { %s3581_s23 = scalar_lea.vmem %s600_s0, 16  ;;  %s3588_s3 = scalar_lea.vmem %s600_s0, 32 }
  0x90   : > { %p3582_p10 = scmp.ne.s32.totalorder %s600_s0, %s3581_s23  ;;  %p3589_p13 = scmp.lt.s32.totalorder %s600_s0, %s600_s0 }
  0x91   : > { %p3590_p0 = scmp.lt.s32.totalorder %s3588_s3, %s3581_s23 }
  0x92   : > { %p3584_p11 = pnand %p3582_p10, %p4395_p8 }
  0x93   : > { %p3591_p2 = por %p3590_p0, %p3589_p13 }
  0x94   : > { %p3585_p12 = pneg %p3584_p11 }
  0x96   : > { %p3592_p5 = pnand %p3591_p2, %p3585_p12 }
  0x98   : > { %3595 = shalt.err (!%p3592_p5)
}
  0x99   : > { %3262 = dma.hbm_to_vmem [thread:$0]  (!%p4381_p6), %s5304_s7, 16, %s600_s0, [#allocation15]  }
  0x9a   : > { %s5305_s9 = sld [smem:[#allocation65_spill]] }
  0xa0   : > { %s3596_s1 = scalar_lea.hbm %s5305_s9, 256 }
  0xa1   : > { %p3597_p7 = scmp.ne.s32.totalorder %s5305_s9, %s3596_s1  ;;  %p3603_p1 = scmp.lt.u32.totalorder %s3596_s1, %s5305_s9 }
  0xa3   : > { %p3599_p9 = pnand %p3597_p7, %p4395_p8 }
  0xa5   : > { %p3600_p4 = pneg %p3599_p9 }
  0xa7   : > { %p3605_p3 = pnand %p3603_p1, %p3600_p4 }
  0xa9   : > { %3608 = shalt.err (!%p3605_p3)
}
  0xaa   : > { %s3609_s23 = scalar_lea.vmem %s621_s22, 256  ;;  %p3617_p13 = scmp.lt.s32.totalorder %s621_s22, %s621_s22 }
  0xab   : > { %p3610_p10 = scmp.ne.s32.totalorder %s621_s22, %s3609_s23  ;;  %p3618_p0 = scmp.lt.s32.totalorder %s3609_s23, %s3609_s23 }
  0xad   : > { %p3612_p11 = pnand %p3610_p10, %p4395_p8  ;;  %p3619_p2 = por %p3618_p0, %p3617_p13 }
  0xaf   : > { %p3613_p12 = pneg %p3612_p11 }
  0xb1   : > { %p3620_p5 = pnand %p3619_p2, %p3613_p12 }
  0xb3   : > { %3623 = shalt.err (!%p3620_p5)
}
  0xb4   : > { %s5306_s0 = smov 4   ;;  %s5307_s3 = smov 64  }
  0xb5   : > { %3268 = dma.hbm_to_vmem [thread:$0]  (!%p4381_p6), %s5305_s9, 256, %s621_s22, [#allocation18], %s5307_s3, %s5307_s3, %s5306_s0  }
  0xb6   : > { %s4201_s26 = smov [#allocation20]   ;;  %s4202_s1 = smov [#allocation23]  }
  0xb7   : > { %s644_s21 = sshll.u32 %s4201_s26, 4  ;;  %s668_s28 = sshll.u32 %s4202_s1, 4  ;;  %s645_s21 = int_to_ptr.vmem [resolvable:$true] %s644_s21  ;;  %s669_s28 = int_to_ptr.vmem [resolvable:$true] %s668_s28 }
  0xb8   : > { %s5308_s11 = sld [smem:[#allocation67_spill]] }
  0xbe   : > { %s3624_s20 = scalar_lea.hbm %s5308_s11, 256 }
  0xbf   : > { %p3625_p7 = scmp.ne.s32.totalorder %s5308_s11, %s3624_s20  ;;  %p3631_p1 = scmp.lt.u32.totalorder %s3624_s20, %s5308_s11 }
  0xc1   : > { %p3627_p9 = pnand %p3625_p7, %p4395_p8 }
  0xc3   : > { %p3628_p4 = pneg %p3627_p9 }
  0xc5   : > { %p3633_p3 = pnand %p3631_p1, %p3628_p4 }
  0xc7   : > { %3636 = shalt.err (!%p3633_p3)
}
  0xc8   : > { %s3637_s22 = scalar_lea.vmem %s645_s21, 256  ;;  %p3645_p13 = scmp.lt.s32.totalorder %s645_s21, %s645_s21 }
  0xc9   : > { %p3638_p10 = scmp.ne.s32.totalorder %s645_s21, %s3637_s22  ;;  %p3646_p0 = scmp.lt.s32.totalorder %s3637_s22, %s3637_s22 }
  0xcb   : > { %p3640_p11 = pnand %p3638_p10, %p4395_p8  ;;  %p3647_p2 = por %p3646_p0, %p3645_p13 }
  0xcd   : > { %p3641_p12 = pneg %p3640_p11 }
  0xcf   : > { %p3648_p5 = pnand %p3647_p2, %p3641_p12 }
  0xd1   : > { %3651 = shalt.err (!%p3648_p5)
}
  0xd2   : > { %3274 = dma.hbm_to_vmem [thread:$0]  (!%p4381_p6), %s5308_s11, 256, %s645_s21, [#allocation21], %s5307_s3, %s5307_s3, %s5306_s0  }
  0xd3   : > { %s5309_s13 = sld [smem:[#allocation69_spill]] }
  0xd9   : > { %s3652_s1 = scalar_lea.hbm %s5309_s13, 256 }
  0xda   : > { %p3653_p7 = scmp.ne.s32.totalorder %s5309_s13, %s3652_s1  ;;  %p3659_p1 = scmp.lt.u32.totalorder %s3652_s1, %s5309_s13 }
  0xdc   : > { %p3655_p9 = pnand %p3653_p7, %p4395_p8 }
  0xde   : > { %p3656_p4 = pneg %p3655_p9 }
  0xe0   : > { %p3661_p3 = pnand %p3659_p1, %p3656_p4 }
  0xe2   : > { %3664 = shalt.err (!%p3661_p3)
}
  0xe3   : > { %s3665_s25 = scalar_lea.vmem %s669_s28, 256  ;;  %p3673_p13 = scmp.lt.s32.totalorder %s669_s28, %s669_s28 }
  0xe4   : > { %p3666_p10 = scmp.ne.s32.totalorder %s669_s28, %s3665_s25  ;;  %p3674_p0 = scmp.lt.s32.totalorder %s3665_s25, %s3665_s25 }
  0xe6   : > { %p3668_p11 = pnand %p3666_p10, %p4395_p8  ;;  %p3675_p2 = por %p3674_p0, %p3673_p13 }
  0xe8   : > { %p3669_p12 = pneg %p3668_p11 }
  0xea   : > { %p3676_p5 = pnand %p3675_p2, %p3669_p12 }
  0xec   : > { %3679 = shalt.err (!%p3676_p5)
}
  0xed   : > { %3280 = dma.hbm_to_vmem [thread:$0]  (!%p4381_p6), %s5309_s13, 256, %s669_s28, [#allocation24], %s5307_s3, %s5307_s3, %s5306_s0  }
  0xee   : > { %s4203_s7 = smov [#allocation26]   ;;  %s4204_s2 = smov [#allocation29]  }
  0xef   : > { %s693_s24 = sshll.u32 %s4203_s7, 4  ;;  %s717_s26 = sshll.u32 %s4204_s2, 4  ;;  %s694_s24 = int_to_ptr.vmem [resolvable:$true] %s693_s24  ;;  %s718_s26 = int_to_ptr.vmem [resolvable:$true] %s717_s26 }
  0xf0   : > { %s3680_s27 = scalar_lea.hbm %s5237_s15, 32 }
  0xf1   : > { %p3681_p7 = scmp.ne.s32.totalorder %s5237_s15, %s3680_s27  ;;  %p3687_p1 = scmp.lt.u32.totalorder %s3680_s27, %s5237_s15 }
  0xf3   : > { %p3683_p9 = pnand %p3681_p7, %p4395_p8 }
  0xf5   : > { %p3684_p4 = pneg %p3683_p9 }
  0xf7   : > { %p3689_p3 = pnand %p3687_p1, %p3684_p4 }
  0xf9   : > { %3692 = shalt.err (!%p3689_p3)
}
  0xfa   : > { %s3693_s28 = scalar_lea.vmem %s694_s24, 32  ;;  %p3701_p13 = scmp.lt.s32.totalorder %s694_s24, %s694_s24 }
  0xfb   : > { %p3694_p10 = scmp.ne.s32.totalorder %s694_s24, %s3693_s28  ;;  %p3702_p0 = scmp.lt.s32.totalorder %s3693_s28, %s3693_s28 }
  0xfd   : > { %p3696_p11 = pnand %p3694_p10, %p4395_p8  ;;  %p3703_p2 = por %p3702_p0, %p3701_p13 }
  0xff   : > { %p3697_p12 = pneg %p3696_p11 }
 0x101   : > { %p3704_p5 = pnand %p3703_p2, %p3697_p12 }
 0x103   : > { %3707 = shalt.err (!%p3704_p5)
}
 0x104   : > { %3286 = dma.hbm_to_vmem [thread:$0]  (!%p4381_p6), %s5237_s15, 32, %s694_s24, [#allocation27]  }
 0x105   : > { %s3708_s30 = scalar_lea.hbm %s5239_s17, 16 }
 0x106   : > { %p3709_p7 = scmp.ne.s32.totalorder %s5239_s17, %s3708_s30  ;;  %p3715_p1 = scmp.lt.u32.totalorder %s3708_s30, %s5239_s17 }
 0x108   : > { %p3711_p9 = pnand %p3709_p7, %p4395_p8 }
 0x10a   : > { %p3712_p4 = pneg %p3711_p9 }
 0x10c   : > { %p3717_p3 = pnand %p3715_p1, %p3712_p4 }
 0x10e   : > { %3720 = shalt.err (!%p3717_p3)
}
 0x10f   : > { %s3721_s21 = scalar_lea.vmem %s718_s26, 16  ;;  %s3728_s24 = scalar_lea.vmem %s718_s26, 32 }
 0x110   : > { %p3722_p10 = scmp.ne.s32.totalorder %s718_s26, %s3721_s21  ;;  %p3729_p13 = scmp.lt.s32.totalorder %s718_s26, %s718_s26 }
 0x111   : > { %p3730_p0 = scmp.lt.s32.totalorder %s3728_s24, %s3721_s21 }
 0x112   : > { %p3724_p11 = pnand %p3722_p10, %p4395_p8 }
 0x113   : > { %p3731_p2 = por %p3730_p0, %p3729_p13 }
 0x114   : > { %p3725_p12 = pneg %p3724_p11 }
 0x116   : > { %p3732_p5 = pnand %p3731_p2, %p3725_p12 }
 0x118   : > { %3735 = shalt.err (!%p3732_p5)
}
 0x119   : > { %3292 = dma.hbm_to_vmem [thread:$0]  (!%p4381_p6), %s5239_s17, 16, %s718_s26, [#allocation30]  }
 0x11a   : > { %s4205_s7 = smov [#allocation32]   ;;  %s4206_s1 = smov [#allocation13]  }
 0x11b   : > { %s741_s2 = sshll.u32 %s4205_s7, 4  ;;  %s585_s30 = sshll.u32 %s4206_s1, 4  ;;  %s742_s2 = int_to_ptr.vmem [resolvable:$true] %s741_s2  ;;  %s586_s30 = int_to_ptr.vmem [resolvable:$true] %s585_s30 }
 0x11c   : > { %s3736_s23 = scalar_lea.hbm %s5241_s19, 16 }
 0x11d   : > { %p3737_p7 = scmp.ne.s32.totalorder %s5241_s19, %s3736_s23  ;;  %p3743_p1 = scmp.lt.u32.totalorder %s3736_s23, %s5241_s19 }
 0x11f   : > { %p3739_p9 = pnand %p3737_p7, %p4395_p8 }
 0x121   : > { %p3740_p4 = pneg %p3739_p9 }
 0x123   : > { %p3745_p3 = pnand %p3743_p1, %p3740_p4 }
 0x125   : > { %3748 = shalt.err (!%p3745_p3)
}
 0x126   : > { %s3749_s26 = scalar_lea.vmem %s742_s2, 16  ;;  %s3756_s22 = scalar_lea.vmem %s742_s2, 32 }
 0x127   : > { %p3750_p10 = scmp.ne.s32.totalorder %s742_s2, %s3749_s26  ;;  %p3757_p13 = scmp.lt.s32.totalorder %s742_s2, %s742_s2 }
 0x128   : > { %p3758_p0 = scmp.lt.s32.totalorder %s3756_s22, %s3749_s26 }
 0x129   : > { %p3752_p11 = pnand %p3750_p10, %p4395_p8 }
 0x12a   : > { %p3759_p2 = por %p3758_p0, %p3757_p13 }
 0x12b   : > { %p3753_p12 = pneg %p3752_p11 }
 0x12d   : > { %p3760_p5 = pnand %p3759_p2, %p3753_p12 }
 0x12f   : > { %3763 = shalt.err (!%p3760_p5)
}
 0x130   : > { %3298 = dma.hbm_to_vmem [thread:$0]  (!%p4381_p6), %s5241_s19, 16, %s742_s2, [#allocation33]  }
 0x131   : > { %s5310_s6 = sld [smem:[#allocation62_spill]] }
 0x137   : > { %s3764_s23 = scalar_lea.hbm %s5310_s6, 256 }
 0x138   : > { %p3765_p7 = scmp.ne.s32.totalorder %s5310_s6, %s3764_s23  ;;  %p3771_p1 = scmp.lt.u32.totalorder %s3764_s23, %s5310_s6 }
 0x13a   : > { %p3767_p9 = pnand %p3765_p7, %p4395_p8 }
 0x13c   : > { %p3768_p4 = pneg %p3767_p9 }
 0x13e   : > { %p3773_p3 = pnand %p3771_p1, %p3768_p4 }
 0x140   : > { %3776 = shalt.err (!%p3773_p3)
}
 0x141   : > { %s3777_s26 = scalar_lea.vmem %s586_s30, 256  ;;  %p3785_p13 = scmp.lt.s32.totalorder %s586_s30, %s586_s30 }
 0x142   : > { %p3778_p10 = scmp.ne.s32.totalorder %s586_s30, %s3777_s26  ;;  %p3786_p0 = scmp.lt.s32.totalorder %s3777_s26, %s3777_s26 }
 0x144   : > { %p3780_p11 = pnand %p3778_p10, %p4395_p8  ;;  %p3787_p2 = por %p3786_p0, %p3785_p13 }
 0x146   : > { %p3781_p12 = pneg %p3780_p11 }
 0x148   : > { %p3788_p5 = pnand %p3787_p2, %p3781_p12 }
 0x14a   : > { %3791 = shalt.err (!%p3788_p5)
}
 0x14b   : > { %3259 = dma.hbm_to_vmem [thread:$0]  (!%p4381_p6), %s5310_s6, 256, %s586_s30, [#allocation12], %s5307_s3, %s5307_s3, %s5306_s0  }
 0x14c   : > { %s4207_s7 = smov [#allocation16]   ;;  %s4208_s27 = smov [#allocation19]  }
 0x14d   : > { %s610_s1 = sshll.u32 %s4207_s7, 4  ;;  %s634_s20 = sshll.u32 %s4208_s27, 4  ;;  %s611_s1 = int_to_ptr.vmem [resolvable:$true] %s610_s1  ;;  %s635_s20 = int_to_ptr.vmem [resolvable:$true] %s634_s20 }
 0x14e   : > { %s5311_s8 = sld [smem:[#allocation64_spill]] }
 0x154   : > { %s3792_s21 = scalar_lea.hbm %s5311_s8, 32 }
 0x155   : > { %p3793_p7 = scmp.ne.s32.totalorder %s5311_s8, %s3792_s21  ;;  %p3799_p1 = scmp.lt.u32.totalorder %s3792_s21, %s5311_s8 }
 0x157   : > { %p3795_p9 = pnand %p3793_p7, %p4395_p8 }
 0x159   : > { %p3796_p4 = pneg %p3795_p9 }
 0x15b   : > { %p3801_p3 = pnand %p3799_p1, %p3796_p4 }
 0x15d   : > { %3804 = shalt.err (!%p3801_p3)
}
 0x15e   : > { %s3805_s30 = scalar_lea.vmem %s611_s1, 32  ;;  %p3813_p13 = scmp.lt.s32.totalorder %s611_s1, %s611_s1 }
 0x15f   : > { %p3806_p10 = scmp.ne.s32.totalorder %s611_s1, %s3805_s30  ;;  %p3814_p0 = scmp.lt.s32.totalorder %s3805_s30, %s3805_s30 }
 0x161   : > { %p3808_p11 = pnand %p3806_p10, %p4395_p8  ;;  %p3815_p2 = por %p3814_p0, %p3813_p13 }
 0x163   : > { %p3809_p12 = pneg %p3808_p11 }
 0x165   : > { %p3816_p5 = pnand %p3815_p2, %p3809_p12 }
 0x167   : > { %3819 = shalt.err (!%p3816_p5)
}
 0x168   : > { %3265 = dma.hbm_to_vmem [thread:$0]  (!%p4381_p6), %s5311_s8, 32, %s611_s1, [#allocation15]  }
 0x169   : > { %s5312_s10 = sld [smem:[#allocation66_spill]] }
 0x16f   : > { %s3820_s25 = scalar_lea.hbm %s5312_s10, 16 }
 0x170   : > { %p3821_p7 = scmp.ne.s32.totalorder %s5312_s10, %s3820_s25  ;;  %p3827_p1 = scmp.lt.u32.totalorder %s3820_s25, %s5312_s10 }
 0x172   : > { %p3823_p9 = pnand %p3821_p7, %p4395_p8 }
 0x174   : > { %p3824_p4 = pneg %p3823_p9 }
 0x176   : > { %p3829_p3 = pnand %p3827_p1, %p3824_p4 }
 0x178   : > { %3832 = shalt.err (!%p3829_p3)
}
 0x179   : > { %s3833_s2 = scalar_lea.vmem %s635_s20, 16  ;;  %s3840_s1 = scalar_lea.vmem %s635_s20, 32 }
 0x17a   : > { %p3834_p10 = scmp.ne.s32.totalorder %s635_s20, %s3833_s2  ;;  %p3841_p13 = scmp.lt.s32.totalorder %s635_s20, %s635_s20 }
 0x17b   : > { %p3842_p0 = scmp.lt.s32.totalorder %s3840_s1, %s3833_s2 }
 0x17c   : > { %p3836_p11 = pnand %p3834_p10, %p4395_p8 }
 0x17d   : > { %p3843_p2 = por %p3842_p0, %p3841_p13 }
 0x17e   : > { %p3837_p12 = pneg %p3836_p11 }
 0x180   : > { %p3844_p5 = pnand %p3843_p2, %p3837_p12 }
 0x182   : > { %3847 = shalt.err (!%p3844_p5)
}
 0x183   : > { %3271 = dma.hbm_to_vmem [thread:$0]  (!%p4381_p6), %s5312_s10, 16, %s635_s20, [#allocation18]  }
 0x184   : > { %s4209_s7 = smov [#allocation22]   ;;  %s4210_s23 = smov [#allocation25]  }
 0x185   : > { %s658_s27 = sshll.u32 %s4209_s7, 4  ;;  %s682_s25 = sshll.u32 %s4210_s23, 4  ;;  %s659_s27 = int_to_ptr.vmem [resolvable:$true] %s658_s27  ;;  %s683_s25 = int_to_ptr.vmem [resolvable:$true] %s682_s25 }
 0x186   : > { %s5313_s12 = sld [smem:[#allocation68_spill]] }
 0x18c   : > { %s3848_s28 = scalar_lea.hbm %s5313_s12, 16 }
 0x18d   : > { %p3849_p7 = scmp.ne.s32.totalorder %s5313_s12, %s3848_s28  ;;  %p3855_p1 = scmp.lt.u32.totalorder %s3848_s28, %s5313_s12 }
 0x18f   : > { %p3851_p9 = pnand %p3849_p7, %p4395_p8 }
 0x191   : > { %p3852_p4 = pneg %p3851_p9 }
 0x193   : > { %p3857_p3 = pnand %p3855_p1, %p3852_p4 }
 0x195   : > { %3860 = shalt.err (!%p3857_p3)
}
 0x196   : > { %s3861_s20 = scalar_lea.vmem %s659_s27, 16  ;;  %s3868_s22 = scalar_lea.vmem %s659_s27, 32 }
 0x197   : > { %p3862_p10 = scmp.ne.s32.totalorder %s659_s27, %s3861_s20  ;;  %p3869_p13 = scmp.lt.s32.totalorder %s659_s27, %s659_s27 }
 0x198   : > { %p3870_p0 = scmp.lt.s32.totalorder %s3868_s22, %s3861_s20 }
 0x199   : > { %p3864_p11 = pnand %p3862_p10, %p4395_p8 }
 0x19a   : > { %p3871_p2 = por %p3870_p0, %p3869_p13 }
 0x19b   : > { %p3865_p12 = pneg %p3864_p11 }
 0x19d   : > { %p3872_p5 = pnand %p3871_p2, %p3865_p12 }
 0x19f   : > { %3875 = shalt.err (!%p3872_p5)
}
 0x1a0   : > { %3277 = dma.hbm_to_vmem [thread:$0]  (!%p4381_p6), %s5313_s12, 16, %s659_s27, [#allocation21]  }
 0x1a1   : > { %s5314_s14 = sld [smem:[#allocation70_spill]] }
 0x1a7   : > { %s3876_s28 = scalar_lea.hbm %s5314_s14, 16 }
 0x1a8   : > { %p3877_p7 = scmp.ne.s32.totalorder %s5314_s14, %s3876_s28  ;;  %p3883_p1 = scmp.lt.u32.totalorder %s3876_s28, %s5314_s14 }
 0x1aa   : > { %p3879_p9 = pnand %p3877_p7, %p4395_p8 }
 0x1ac   : > { %p3880_p4 = pneg %p3879_p9 }
 0x1ae   : > { %p3885_p3 = pnand %p3883_p1, %p3880_p4 }
 0x1b0   : > { %3888 = shalt.err (!%p3885_p3)
}
 0x1b1   : > { %s3889_s20 = scalar_lea.vmem %s683_s25, 16  ;;  %s3896_s27 = scalar_lea.vmem %s683_s25, 32 }
 0x1b2   : > { %p3890_p10 = scmp.ne.s32.totalorder %s683_s25, %s3889_s20  ;;  %p3897_p13 = scmp.lt.s32.totalorder %s683_s25, %s683_s25 }
 0x1b3   : > { %p3898_p0 = scmp.lt.s32.totalorder %s3896_s27, %s3889_s20 }
 0x1b4   : > { %p3892_p11 = pnand %p3890_p10, %p4395_p8 }
 0x1b5   : > { %p3899_p2 = por %p3898_p0, %p3897_p13 }
 0x1b6   : > { %p3893_p12 = pneg %p3892_p11 }
 0x1b8   : > { %p3900_p5 = pnand %p3899_p2, %p3893_p12 }
 0x1ba   : > { %3903 = shalt.err (!%p3900_p5)
}
 0x1bb   : > { %3283 = dma.hbm_to_vmem [thread:$0]  (!%p4381_p6), %s5314_s14, 16, %s683_s25, [#allocation24]  }
 0x1bc   : > { %s4211_s23 = smov [#allocation28]   ;;  %s4212_s24 = smov [#allocation31]  }
 0x1bd   : > { %s703_s21 = sshll.u32 %s4211_s23, 4  ;;  %s727_s28 = sshll.u32 %s4212_s24, 4  ;;  %s704_s21 = int_to_ptr.vmem [resolvable:$true] %s703_s21  ;;  %s728_s28 = int_to_ptr.vmem [resolvable:$true] %s727_s28 }
 0x1be   : > { %s3904_s1 = scalar_lea.hbm %s5238_s16, 256 }
 0x1bf   : > { %p3905_p7 = scmp.ne.s32.totalorder %s5238_s16, %s3904_s1  ;;  %p3911_p1 = scmp.lt.u32.totalorder %s3904_s1, %s5238_s16 }
 0x1c1   : > { %p3907_p9 = pnand %p3905_p7, %p4395_p8 }
 0x1c3   : > { %p3908_p4 = pneg %p3907_p9 }
 0x1c5   : > { %p3913_p3 = pnand %p3911_p1, %p3908_p4 }
 0x1c7   : > { %3916 = shalt.err (!%p3913_p3)
}
 0x1c8   : > { %s3917_s25 = scalar_lea.vmem %s704_s21, 256  ;;  %p3925_p13 = scmp.lt.s32.totalorder %s704_s21, %s704_s21 }
 0x1c9   : > { %p3918_p10 = scmp.ne.s32.totalorder %s704_s21, %s3917_s25  ;;  %p3926_p0 = scmp.lt.s32.totalorder %s3917_s25, %s3917_s25 }
 0x1cb   : > { %p3920_p11 = pnand %p3918_p10, %p4395_p8  ;;  %p3927_p2 = por %p3926_p0, %p3925_p13 }
 0x1cd   : > { %p3921_p12 = pneg %p3920_p11 }
 0x1cf   : > { %p3928_p5 = pnand %p3927_p2, %p3921_p12 }
 0x1d1   : > { %3931 = shalt.err (!%p3928_p5)
}
 0x1d2   : > { %3289 = dma.hbm_to_vmem [thread:$0]  (!%p4381_p6), %s5238_s16, 256, %s704_s21, [#allocation27], %s5307_s3, %s5307_s3, %s5306_s0  }
 0x1d3   : > { %s3932_s2 = scalar_lea.hbm %s5240_s18, 1024 }
 0x1d4   : > { %p3933_p7 = scmp.ne.s32.totalorder %s5240_s18, %s3932_s2  ;;  %p3939_p1 = scmp.lt.u32.totalorder %s3932_s2, %s5240_s18 }
 0x1d6   : > { %p3935_p9 = pnand %p3933_p7, %p4395_p8 }
 0x1d8   : > { %p3936_p4 = pneg %p3935_p9 }
 0x1da   : > { %p3941_p3 = pnand %p3939_p1, %p3936_p4 }
 0x1dc   : > { %3944 = shalt.err (!%p3941_p3)
}
 0x1dd   : > { %s3945_s22 = scalar_lea.vmem %s728_s28, 1024  ;;  %p3953_p13 = scmp.lt.s32.totalorder %s728_s28, %s728_s28 }
 0x1de   : > { %p3946_p10 = scmp.ne.s32.totalorder %s728_s28, %s3945_s22  ;;  %p3954_p0 = scmp.lt.s32.totalorder %s3945_s22, %s3945_s22 }
 0x1e0   : > { %p3948_p11 = pnand %p3946_p10, %p4395_p8  ;;  %p3955_p2 = por %p3954_p0, %p3953_p13 }
 0x1e2   : > { %p3949_p12 = pneg %p3948_p11 }
 0x1e4   : > { %p3956_p5 = pnand %p3955_p2, %p3949_p12 }
 0x1e6   : > { %3959 = shalt.err (!%p3956_p5)
}
 0x1e7   : > { %3295 = dma.hbm_to_vmem [thread:$0]  (!%p4381_p6), %s5240_s18, 1024, %s728_s28, [#allocation30], %s5307_s3, %s5307_s3, %s5306_s0  }
 0x1e8   : > { %s4213_s7 = smov [#allocation34]   ;;  %s5315_s2 = sld [smem:[#allocation71_spill]] }
 0x1e9   : > { %s752_s23 = sshll.u32 %s4213_s7, 4  ;;  %s753_s23 = int_to_ptr.vmem [resolvable:$true] %s752_s23 }
 0x1ee   : > { %s5316_s1 = smov %s5315_s2  ;;  %s3960_s30 = scalar_lea.hbm %s5315_s2, 32 }
 0x1ef   : > { %p3961_p7 = scmp.ne.s32.totalorder %s5316_s1, %s3960_s30  ;;  %p3967_p1 = scmp.lt.u32.totalorder %s3960_s30, %s5316_s1 }
 0x1f1   : > { %p3963_p9 = pnand %p3961_p7, %p4395_p8 }
 0x1f3   : > { %p3964_p4 = pneg %p3963_p9 }
 0x1f5   : > { %p3969_p3 = pnand %p3967_p1, %p3964_p4 }
 0x1f7   : > { %3972 = shalt.err (!%p3969_p3)
}
 0x1f8   : > { %s3973_s0 = scalar_lea.vmem %s753_s23, 32  ;;  %p3981_p13 = scmp.lt.s32.totalorder %s753_s23, %s753_s23 }
 0x1f9   : > { %p3974_p10 = scmp.ne.s32.totalorder %s753_s23, %s3973_s0  ;;  %p3982_p0 = scmp.lt.s32.totalorder %s3973_s0, %s3973_s0 }
 0x1fb   : > { %p3976_p11 = pnand %p3974_p10, %p4395_p8  ;;  %p3983_p2 = por %p3982_p0, %p3981_p13 }
 0x1fd   : > { %p3977_p12 = pneg %p3976_p11 }
 0x1ff   : > { %p3984_p5 = pnand %p3983_p2, %p3977_p12 }
 0x201   : > { %3987 = shalt.err (!%p3984_p5)
}
 0x202   : > { %s5317_s6 = sld [smem:[#allocation53_spill]]  ;;  %s5318_s21 = sld [smem:[#allocation52_spill]] }
 0x203   : > { %s5319_s25 = sld [smem:[#allocation51_spill]]  ;;  %s5320_s4 = sld [smem:[#allocation50_spill]] }
 0x204   : > { %s5321_s7 = sld [smem:[#allocation54_spill]]  ;;  %s5329_s9 = sld [smem:[#allocation57_spill]] }
 0x205   : > { %3301 = dma.hbm_to_vmem [thread:$0]  (!%p4381_p6), %s5316_s1, 32, %s753_s23, [#allocation33]  }
 0x208   : > { %s2836_s24 = sadd.s32 4294967294, %s5317_s6   ;;  %s4751_s27 = sadd.s32 1, %s5317_s6  }
 0x209   : > { %s55_s5 = ssub.s32 %s5317_s6, %s4751_s27  ;;  %s58_s26 = sadd.s32 1, %s5318_s21 }
 0x20a   : > { %p56_p8 = scmp.eq.s32.totalorder %s55_s5, 0  ;;  %p65_p7 = scmp.ne.s32.totalorder %s5318_s21, %s5319_s25 }
 0x20b   : > { %p66_p9 = scmp.eq.s32.totalorder %s5317_s6, 0  ;;  %p71_p4 = scmp.ne.s32.totalorder %s5319_s25, %s5320_s4 }
 0x20c   : > { %s4762_s2 = scalar_select %p56_p8, %s5318_s21, %s58_s26  }
 0x20d   : > { %p4764_p1 = por %p66_p9, %p65_p7  ;;  %p5323_p3 = scmp.eq.s32.totalorder %s5321_s7, 0 }
 0x20e   : > { %p525_p10 = scmp.eq.s32.totalorder %s5321_s7, 1  ;;  %p531_p11 = scmp.eq.s32.totalorder %s2836_s24, 1 }
 0x20f   : > { %p4770_p6 = por %p5323_p3, %p71_p4  ;;  %p3334_p12 = scmp.lt.s32.totalorder %s5317_s6, 2 }
 0x210   : > { %s4777_s20 = sand.u32 1, %s5318_s21   ;;  %p4779_p13 = por %p525_p10, %p65_p7 }
 0x211   : > { %s5324_s23 = scalar_select %p4770_p6, 1, 0 }
 0x212   : > { %s5325_s22 = scalar_select %p4779_p13, 1, 0 }
 0x213   : > { %p4783_p0 = por %p531_p11, %p71_p4  ;;  %s5269_s3 = sshll.u32 %s4777_s20, 2 }
 0x214   : > { %s2858_s28 = sshll.u32 %s5317_s6, 6  ;;  %s5327_s7 = sld [smem:[#allocation56_spill]] }
 0x215   : > { %s5326_s0 = scalar_select %p4783_p0, 1, 0 }
 0x216   : > { %s767_s21 = scalar_lea.vmem [#allocation2], %s5269_s3  ;;  %p4800_p2 = pnand %p3334_p12, %p4764_p1 }
 0x217   : > { %s774_s5 = sshll.u32 %s767_s21, 4  ;;  %s4807_s25 = scalar_lea.hbm %s5329_s9, %s2858_s28  ;;  %s4796_s5 = int_to_ptr.vmem [resolvable:$true] %s774_s5 }
 0x218   : > { %s5328_s26 = scalar_select %p4800_p2, 1, 0 }
 0x219   : > { %s764_s10 = scalar_lea.sflag [#allocation3], %s4777_s20  ;;  %p4815_p8 = pneg %p4800_p2 }
 0x21a   : > { %s4792_s24 = scalar_lea.hbm %s5327_s7, %s2858_s28  ;;  %s3993_s8 = scalar_lea.hbm %s5327_s7, 128 }
 0x21b   : > { %s3988_s11 = scalar_lea.hbm %s4792_s24, 64  ;;  %p3994_p4 = scmp.lt.u32.totalorder %s4792_s24, %s5327_s7 }
 0x21c   : > { %p3989_p5 = scmp.ne.s32.totalorder %s4792_s24, %s3988_s11  ;;  %p3995_p1 = scmp.lt.u32.totalorder %s3993_s8, %s3988_s11 }
 0x21d   : > { %p3997_p10 = scmp.lt.u32.totalorder %s3988_s11, %s4792_s24 }
 0x21e   : > { %p3991_p7 = pnand %p4815_p8, %p3989_p5  ;;  %p3996_p3 = por %p3995_p1, %p3994_p4 }
 0x220   : > { %p3992_p9 = pneg %p3991_p7  ;;  %p3998_p11 = por %p3997_p10, %p3996_p3 }
 0x222   : > { %p3999_p12 = pnand %p3998_p11, %p3992_p9 }
 0x224   : > { %4002 = shalt.err (!%p3999_p12)
}
 0x225   : > { %s4003_s4 = scalar_lea.vmem %s4796_s5, 64  ;;  %s4214_s3 = smov [#allocation2]  }
 0x226   : > { %p4004_p5 = scmp.ne.s32.totalorder %s4796_s5, %s4003_s4  ;;  %s4008_s30 = sshll.u32 %s4214_s3, 4  ;;  %s4009_s30 = int_to_ptr.vmem [resolvable:$false] %s4008_s30 }
 0x227   : > { %s4010_s1 = scalar_lea.vmem %s4009_s30, 128  ;;  %p4011_p13 = scmp.lt.s32.totalorder %s4796_s5, %s4009_s30 }
 0x228   : > { %p4006_p7 = pnand %p4004_p5, %p4815_p8  ;;  %p4012_p6 = scmp.lt.s32.totalorder %s4010_s1, %s4003_s4 }
 0x22a   : > { %p4007_p0 = pneg %p4006_p7  ;;  %p4013_p4 = por %p4012_p6, %p4011_p13 }
 0x22c   : > { %p4014_p1 = pnand %p4013_p4, %p4007_p0 }
 0x22e   : > { %4017 = shalt.err (!%p4014_p1)
}
 0x22f   : > { %3305 = dma.hbm_to_vmem [thread:$0]  (!%p4800_p2), %s4792_s24, 64, %s4796_s5, %s764_s10  }
 0x230   : > { %s5331_s11 = sshll.u32 %s4777_s20, 2  ;;  %s5332_s4 = sand.u32 1, %s5317_s6  }
 0x231   : > { %s785_s8 = scalar_lea.vmem [#allocation5], %s5331_s11  ;;  %s782_s3 = scalar_lea.sflag [#allocation6], %s5332_s4 }
 0x232   : > { %s792_s28 = sshll.u32 %s785_s8, 4  ;;  %s4018_s30 = scalar_lea.hbm %s4807_s25, 64  ;;  %s793_s28 = int_to_ptr.vmem [resolvable:$true] %s792_s28 }
 0x233   : > { %p4019_p6 = scmp.ne.s32.totalorder %s4807_s25, %s4018_s30  ;;  %s4023_s12 = scalar_lea.hbm %s5329_s9, 128 }
 0x234   : > { %p4024_p9 = scmp.lt.u32.totalorder %s4807_s25, %s5329_s9  ;;  %p4025_p3 = scmp.lt.u32.totalorder %s4023_s12, %s4018_s30 }
 0x235   : > { %p4021_p13 = pnand %p4019_p6, %p4815_p8  ;;  %p4027_p11 = scmp.lt.u32.totalorder %s4018_s30, %s4807_s25 }
 0x236   : > { %p4026_p10 = por %p4025_p3, %p4024_p9 }
 0x237   : > { %p4022_p0 = pneg %p4021_p13 }
 0x238   : > { %p4028_p12 = por %p4027_p11, %p4026_p10 }
 0x23a   : > { %p4029_p5 = pnand %p4028_p12, %p4022_p0 }
 0x23c   : > { %4032 = shalt.err (!%p4029_p5)
}
 0x23d   : > { %s4033_s10 = scalar_lea.vmem %s793_s28, 64  ;;  %s4215_s24 = smov [#allocation5]  }
 0x23e   : > { %p4034_p7 = scmp.ne.s32.totalorder %s793_s28, %s4033_s10  ;;  %s4038_s5 = sshll.u32 %s4215_s24, 4  ;;  %s4039_s5 = int_to_ptr.vmem [resolvable:$false] %s4038_s5 }
 0x23f   : > { %s4040_s7 = scalar_lea.vmem %s4039_s5, 128  ;;  %p4041_p6 = scmp.lt.s32.totalorder %s793_s28, %s4039_s5 }
 0x240   : > { %p4036_p4 = pnand %p4034_p7, %p4815_p8  ;;  %p4042_p13 = scmp.lt.s32.totalorder %s4040_s7, %s4033_s10 }
 0x242   : > { %p4037_p1 = pneg %p4036_p4  ;;  %p4043_p2 = por %p4042_p13, %p4041_p6 }
 0x244   : > { %p4044_p3 = pnand %p4043_p2, %p4037_p1 }
 0x246   : > { %4047 = shalt.err (!%p4044_p3)
}
 0x247   : > { %p5333_p9 = scmp.ne.s32.totalorder %s5328_s26, 0  ;;  %s2861_s12 = sshll.u32 %s5317_s6, 4 }
 0x248   : > { %s5334_s11 = sld [smem:[#allocation59_spill]]  ;;  %s802_s4 = scalar_lea.vmem [#allocation8], %s4777_s20 }
 0x249   : > { %3308 = dma.hbm_to_vmem [thread:$0]  (!%p5333_p9), %s4807_s25, 64, %s793_s28, %s782_s3  }
 0x24a   : > { %s809_s30 = sshll.u32 %s802_s4, 4  ;;  %s5335_s1 = sand.u32 1, %s5317_s6   ;;  %s810_s30 = int_to_ptr.vmem [resolvable:$true] %s809_s30 }
 0x24b   : > { %s800_s10 = scalar_lea.sflag [#allocation9], %s5335_s1 }
 0x24e   : > { %s4863_s8 = scalar_lea.hbm %s5334_s11, %s2861_s12  ;;  %s4053_s3 = scalar_lea.hbm %s5334_s11, 32 }
 0x24f   : > { %s4048_s24 = scalar_lea.hbm %s4863_s8, 16  ;;  %p4054_p11 = scmp.lt.u32.totalorder %s4863_s8, %s5334_s11 }
 0x250   : > { %p4049_p2 = scmp.ne.s32.totalorder %s4863_s8, %s4048_s24  ;;  %p4055_p12 = scmp.lt.u32.totalorder %s4053_s3, %s4048_s24 }
 0x251   : > { %p4057_p7 = scmp.lt.u32.totalorder %s4048_s24, %s4863_s8 }
 0x252   : > { %p4051_p0 = pnand %p4049_p2, %p4815_p8  ;;  %p4056_p5 = por %p4055_p12, %p4054_p11 }
 0x254   : > { %p4052_p10 = pneg %p4051_p0  ;;  %p4058_p4 = por %p4057_p7, %p4056_p5 }
 0x256   : > { %p4059_p1 = pnand %p4058_p4, %p4052_p10 }
 0x258   : > { %4062 = shalt.err (!%p4059_p1)
}
 0x259   : > { %s4063_s6 = scalar_lea.vmem %s810_s30, 16  ;;  %s4216_s20 = smov [#allocation8]  }
 0x25a   : > { %p4064_p6 = scmp.ne.s32.totalorder %s810_s30, %s4063_s6  ;;  %s4068_s12 = sshll.u32 %s4216_s20, 4  ;;  %s4069_s12 = int_to_ptr.vmem [resolvable:$false] %s4068_s12 }
 0x25b   : > { %s4070_s13 = scalar_lea.vmem %s4069_s12, 32  ;;  %p4071_p2 = scmp.lt.s32.totalorder %s810_s30, %s4069_s12 }
 0x25c   : > { %p4066_p13 = pnand %p4064_p6, %p4815_p8  ;;  %p4072_p0 = scmp.lt.s32.totalorder %s4070_s13, %s4063_s6 }
 0x25e   : > { %p4067_p3 = pneg %p4066_p13  ;;  %p4073_p9 = por %p4072_p0, %p4071_p2 }
 0x260   : > { %p4074_p11 = pnand %p4073_p9, %p4067_p3 }
 0x262   : > { %4077 = shalt.err (!%p4074_p11)
}
 0x263   : > { %p5336_p12 = scmp.ne.s32.totalorder %s5328_s26, 0  ;;  %s5337_s14 = sld [smem:[#allocation55_spill]] }
 0x265   : > { %3311 = dma.hbm_to_vmem [thread:$0]  (!%p5336_p12), %s4863_s8, 16, %s810_s30, %s800_s10  }
 0x269   : > { %p5338_p10 = scmp.ne.s32.totalorder %s5337_s14, 0 }
 0x26a   : > { %s5339_s4 = sld [smem:[#allocation51_spill]] (!%p5338_p10)  ;;  %p5340_p8 = scmp.ne.s32.totalorder (!%p5338_p10), %s5324_s23, 0 }
 0x26b   : > { %818 = sbr.rel (%p5338_p10) target bundleno = 5568 (0x15c0), region = 104 }
 0x270   : > { %s4888_s21 = sand.u32 (!%p5338_p10), 1, %s5339_s4  }
 0x271   : > { %s2863_s1 = sshll.u32 (!%p5338_p10), %s4888_s21, 2  ;;  %s821_s24 = scalar_lea.sflag (!%p5338_p10), [#allocation3], %s4888_s21 }
 0x272   : > { %s4892_s25 = scalar_lea.vmem [#allocation2], %s2863_s1 }
 0x273   : > { %4123 = dma.done.wait (%p5340_p8), %s821_s24, 64  }
 0x274   : > { %4125 = vsyncadd (%p5340_p8), %s821_s24, 4294967232  ;;  %s5341_s26 = sld [smem:[#allocation54_spill]]  ;;  %s4899_s10 = scalar_lea.vmem [#allocation5], %s2863_s1 }
 0x27a   : > { %s829_s8 = sand.u32 1, %s5341_s26  }
 0x27b   : > { %s830_s30 = scalar_lea.sflag [#allocation6], %s829_s8 }
 0x27c   : > { %4127 = dma.done.wait (%p5340_p8), %s830_s30, 64  }
 0x27d   : > { %4129 = vsyncadd (%p5340_p8), %s830_s30, 4294967232  ;;  %p5342_p9 = scmp.eq.s32.totalorder %s5341_s26, 0 }
 0x27f   : > { %4131 = dma.done.wait (%p5342_p9), [#allocation6], 128   ;;  %p5343_p5 = pmov %p5342_p9 }
 0x280   : > { %s843_s28 = scalar_lea.sflag [#allocation9], %s829_s8  ;;  %s845_s3 = scalar_lea.vmem [#allocation8], %s4888_s21 }
 0x281   : > { %4133 = vsyncadd (%p5343_p5), [#allocation6], 4294967168 }
 0x282   : > { %4135 = dma.done.wait (%p5340_p8), %s843_s28, 16  }
 0x283   : > { %4137 = vsyncadd (%p5340_p8), %s843_s28, 4294967280  ;;  %p5344_p7 = pmov %p5343_p5 }
 0x284   : > { %p5345_p4 = pmov %p5343_p5 }
 0x285   : > { %4139 = dma.done.wait (%p5344_p7), [#allocation9], 256  }
 0x286   : > { %4141 = vsyncadd (%p5345_p4), [#allocation9], 4294967040  ;;  %p5346_p1 = pmov %p5345_p4 }
 0x288   : > { %4143 = dma.done.wait (%p5346_p1), [#allocation12], 272   ;;  %p5347_p6 = pmov %p5346_p1 }
 0x289   : > { %p5348_p13 = pmov %p5346_p1 }
 0x28a   : > { %4145 = vsyncadd (%p5347_p6), [#allocation12], 4294967024 }
 0x28b   : > { %4147 = dma.done.wait (%p5348_p13), [#allocation15], 48   ;;  %p5349_p3 = pmov %p5346_p1 }
 0x28c   : > { %p5350_p2 = pmov %p5346_p1 }
 0x28d   : > { %4149 = vsyncadd (%p5349_p3), [#allocation15], 4294967248 }
 0x28e   : > { %4151 = dma.done.wait (%p5350_p2), [#allocation18], 272   ;;  %p5351_p0 = pmov %p5346_p1 }
 0x290   : > { %4153 = vsyncadd (%p5351_p0), [#allocation18], 4294967024  ;;  %p5352_p11 = pmov %p5351_p0 }
 0x291   : > { %p5353_p12 = pmov %p5351_p0 }
 0x292   : > { %4155 = dma.done.wait (%p5352_p11), [#allocation21], 272  }
 0x293   : > { %4157 = vsyncadd (%p5353_p12), [#allocation21], 4294967024  ;;  %p5354_p10 = pmov %p5351_p0 }
 0x294   : > { %p5355_p8 = pmov %p5351_p0 }
 0x295   : > { %4159 = dma.done.wait (%p5354_p10), [#allocation24], 272  }
 0x296   : > { %4161 = vsyncadd (%p5355_p8), [#allocation24], 4294967024  ;;  %p5356_p9 = pmov %p5351_p0 }
 0x297   : > { %p5357_p5 = pmov %p5351_p0 }
 0x298   : > { %4163 = dma.done.wait (%p5356_p9), [#allocation27], 288  }
 0x299   : > { %4165 = vsyncadd (%p5357_p5), [#allocation27], 4294967008  ;;  %p5358_p7 = pmov %p5351_p0 }
 0x29a   : > { %p5359_p4 = pmov %p5351_p0 }
 0x29b   : > { %4167 = dma.done.wait (%p5358_p7), [#allocation30], 1040  }
 0x29c   : > { %4169 = vsyncadd (%p5359_p4), [#allocation30], 4294966256  ;;  %p5360_p1 = pmov %p5351_p0 }
 0x29d   : > { %p5361_p6 = pmov %p5351_p0 }
 0x29e   : > { %4171 = dma.done.wait (%p5360_p1), [#allocation33], 48  }
 0x29f   : > { %4173 = vsyncadd (%p5361_p6), [#allocation33], 4294967248  ;;  %v4217_v0 = vmov 0.0   ;;  %vm4218_vm0 = vmmov 0   ;;  %v3422_v1 = vld [vmem:[#allocation10] sm:$0xff]   ;;  %v3423_v2 = vld [vmem:[#allocation10 + $0x8] sm:$0xff]  }
 0x2a0   : > { %3003 = vmatprep.subr.bf16.mxu1 %v4217_v0  ;;  %3007 = vmatprep.mubr.msk.bf16.mxu1 %vm4218_vm0, %v4217_v0  ;;  %vm1009_vm1 = vcmask 261120   ;;  %v4958_v3 = vld [vmem:[%s4892_s25] sm:$0xf]  ;;  %v2884_v4 = vld [vmem:[#allocation11] ss:$0 sm:$0xff]  ;;  %s4219_s23 = smov 64  }
 0x2a1   : > { %3029 = vmatprep.subr.bf16.mxu0 %v4217_v0  ;;  %3031 = vmatprep.mubr.msk.bf16.mxu0 %vm4218_vm0, %v4217_v0  ;;  %s4220_s5 = smov 96   ;;  %s4221_s7 = smov 88   ;;  %vm1065_vm2 = vcmask 64512   ;;  %vm1131_vm3 = vcmask 1043456   ;;  %v985_v15 = vld [vmem:[#allocation7] sm:$0xff]  ;;  %vm1524_vm4 = vcmask 130048  }
 0x2a2   : > { %3004 = vmatpush3.bf16.msra.mxu1 %v3422_v1  ;;  %v2888_v16 = vld [vmem:[%s845_s3] ss:$0 sm:$0xff]  ;;  %s4222_s6 = smov 72   ;;  %s4223_s20 = smov 120   ;;  %vm1526_vm5 = vcmask 195584  }
 0x2a3   : > { %3005 = vmatprep.subr.bf16.mxu1 %v4217_v0  ;;  %v4982_v17 = vadd.f32 %v2888_v16, %v985_v15  ;;  %s4224_s12 = smov 80   ;;  %s4225_s13 = smov 112  }
 0x2a4   : > { %s4226_s14 = smov 104   ;;  %s4227_s4 = smov 56  }
 0x2a5   : > { %s4228_s1 = smov 48   ;;  %s4229_s24 = smov 40  }
 0x2a6   : > { %3006 = vmatpush3.bf16.msra.mxu1 %v3423_v2  ;;  %s4230_s25 = smov 8   ;;  %s4231_s8 = smov 16  }
 0x2a7   : > { %3011 = vmatprep.subr.bf16.mxu1 %v4217_v0  ;;  %s4232_s30 = smov 24   ;;  %s2941_s28 = sshll.u32 %s5341_s26, 7 }
 0x2a8   : > { %p5363_p3 = scmp.ne.s32.totalorder %s5325_s22, 0  ;;  %s4233_s26 = smov [#allocation35]  }
 0x2a9   : > { %3008 = vmatmul.mubr.msk.bf16.vlgmr.msra.gmra.mrb[0].mxu1 %vm1009_vm1, %v4958_v3 }
 0x2aa   : > { %3013 = vmatprep.mubr.msk.bf16.mxu1 %vm4218_vm0, %v4217_v0 }
 0x37c   : > { %v1047_v5 = vpop.f32.mrb[0].mxu1 }
 0x37d   : > { %v1048_v6 = vadd.f32 %v2884_v4, %v1047_v5  ;;  %v3009_v7 = vpop.f32.mrb[1].mxu1 }
 0x37e   : > { %v1050_v8 = vpop.f32.mrb[2].mxu1 }
 0x37f   : > { %v4965_v9 = vpack.c.bf16 %v1048_v6, %v1048_v6  ;;  %v3010_v10 = vpop.f32.mrb[3].mxu1 }
 0x381   : > { %1126 = vrot.lane.b32.xlu1 %v4965_v9, %s4219_s23  ;;  %1063 = vrot.lane.b32.xlu0 %v4965_v9, %s4220_s5 }
 0x385   : > { %1177 = vrot.lane.b32.xlu1 %v4965_v9, %s4221_s7 }
 0x3f3   : > { %v1064_v11 = vpop.permute.xlu0 %1063  ;;  %v1127_v13 = vpop.permute.xlu1 %1126 }
 0x3f4   : > { %v1070_v12 = vsel %vm1065_vm2, %v1064_v11, 0  ;;  %v1133_v14 = vsel %vm1131_vm3, %v1127_v13, 0 }
 0x3f5   : > { %3012 = vmatpush3.bf16.xpose.msra.mxu1 %v1070_v12 }
 0x3f6   : > { %3017 = vmatprep.subr.bf16.mxu1 %v4217_v0 }
 0x3f7   : > { %v1178_v30 = vpop.permute.xlu1 %1177 }
 0x3f8   : > { %v1183_v36 = vsel %vm1065_vm2, %v1178_v30, 0 }
 0x3fc   : > { %3014 = vmatmul.mubr.msk.bf16.vlgmr.msra.gmra.mrb[4].mxu1 %vm1065_vm2, %v4965_v9 }
 0x3fd   : > { %3018 = vmatpush3.bf16.msra.mxu1 %v1133_v14  ;;  %3019 = vmatprep.mubr.msk.bf16.mxu1 %vm4218_vm0, %v4217_v0 }
 0x3fe   : > { %3023 = vmatprep.subr.bf16.mxu1 %v4217_v0 }
 0x4cf   : > { %v1106_v18 = vpop.f32.mrb[4].mxu1 }
 0x4d0   : > { %v1112_v19 = vmul.f32 0.35355338, %v1106_v18  ;;  %v3015_v20 = vpop.f32.mrb[5].mxu1 }
 0x4d1   : > { %v1109_v21 = vpop.f32.mrb[6].mxu1 }
 0x4d2   : > { %v3016_v22 = vpop.f32.mrb[7].mxu1  ;;  %v1113_v23 = vadd.f32 %v1112_v19, %v4982_v17 }
 0x4d4   : > { %v1114_v24 = vsel %vm1065_vm2, %v1113_v23, -inf }
 0x4d5   : > { %1115 = vmax.xlane.f32.xlu0 %v1114_v24 }
 0x4eb   : > { %1401 = vrot.lane.b32.xlu0 %v4965_v9, %s4222_s6 }
 0x562   : > { %v1116_v25 = vpop.xlane.xlu0 %1115 }
 0x563   : > { %v1117_v26 = vsub.f32 %v1113_v23, %v1116_v25 }
 0x565   : > { %v1118_v27 = vmul.f32 1.442695, %v1117_v26 }
 0x566   : > { %v1402_v39 = vpop.permute.xlu0 %1401 }
 0x567   : > { %3442 = vpow2.f32 %v1118_v27  ;;  %v1407_v41 = vsel %vm1065_vm2, %v1402_v39, 0 }
 0x571   : > { %v3443_v28 = vpop.eup %3442 }
 0x572   : > { %v1120_v29 = vsel %vm1065_vm2, %v3443_v28, 0.0 }
 0x573   : > { %1121 = vadd.xlane.f32.xlu1 %v1120_v29 }
 0x584   : > { %1175 = vrot.lane.b32.xlu1 %v4965_v9, %s4223_s20 }
 0x588   : > { %1289 = vrot.lane.b32.xlu1 %v4965_v9, %s4224_s12 }
 0x58c   : > { %1287 = vrot.lane.b32.xlu1 %v4965_v9, %s4225_s13 }
 0x590   : > { %1399 = vrot.lane.b32.xlu1 %v4965_v9, %s4226_s14 }
 0x600   : > { %v1122_v31 = vpop.xlane.xlu1 %1121 }
 0x601   : > { %3444 = vrcp.f32 %v1122_v31 }
 0x604   : > { %v1176_v35 = vpop.permute.xlu1 %1175 }
 0x608   : > { %v1290_v37 = vpop.permute.xlu1 %1289 }
 0x609   : > { %v1295_v38 = vsel %vm1065_vm2, %v1290_v37, 0 }
 0x60b   : > { %v3445_v32 = vpop.eup %3444 }
 0x60c   : > { %v1124_v33 = vmul.f32 %v3445_v32, %v3443_v28  ;;  %v1288_v40 = vpop.permute.xlu1 %1287 }
 0x60e   : > { %v1125_v34 = vpack.c.bf16 %v1124_v33, %v1124_v33 }
 0x610   : > { %3020 = vmatmul.mubr.msk.bf16.vlgmr.msra.gmra.mrb[8].mxu1 %vm1065_vm2, %v1125_v34  ;;  %v1400_v42 = vpop.permute.xlu1 %1399 }
 0x611   : > { %3024 = vmatpush3.bf16.xpose.msra.mxu1 %v1183_v36  ;;  %3025 = vmatprep.mubr.msk.bf16.mxu1 %vm4218_vm0, %v4217_v0 }
 0x612   : > { %3035 = vmatprep.subr.bf16.mxu1 %v4217_v0 }
 0x618   : > { %3026 = vmatmul.mubr.msk.bf16.vlgmr.msra.gmra.mrb[12].mxu1 %vm1065_vm2, %v1176_v35 }
 0x619   : > { %3036 = vmatpush3.bf16.xpose.msra.mxu1 %v1295_v38  ;;  %3037 = vmatprep.mubr.msk.bf16.mxu1 %vm4218_vm0, %v4217_v0 }
 0x61a   : > { %3047 = vmatprep.subr.bf16.mxu1 %v4217_v0 }
 0x620   : > { %3038 = vmatmul.mubr.msk.bf16.vlgmr.msra.gmra.mrb[16].mxu1 %vm1065_vm2, %v1288_v40 }
 0x621   : > { %3048 = vmatpush3.bf16.xpose.msra.mxu1 %v1407_v41  ;;  %3049 = vmatprep.mubr.msk.bf16.mxu1 %vm4218_vm0, %v4217_v0 }
 0x622   : > { %3059 = vmatprep.subr.bf16.mxu1 %v4217_v0 }
 0x628   : > { %3050 = vmatmul.mubr.msk.bf16.vlgmr.msra.gmra.mrb[20].mxu1 %vm1065_vm2, %v1400_v42 }
 0x629   : > { %3063 = vmatprep.mubr.msk.bf16.mxu1 %vm4218_vm0, %v4217_v0 }
 0x6e3   : > { %v5015_v43 = vpop.f32.mrb[8].mxu1 }
 0x6e4   : > { %v3021_v44 = vpop.f32.mrb[9].mxu1 }
 0x6e5   : > { %v1172_v45 = vpop.f32.mrb[10].mxu1  ;;  %v3424_v44 = vld [vmem:[#allocation13] sm:$0xff]  }
 0x6e6   : > { %v3022_v46 = vpop.f32.mrb[11].mxu1  ;;  %3060 = vmatpush3.bf16.msra.mxu1 %v3424_v44  ;;  %v3425_v45 = vld [vmem:[#allocation13 + $0x8] sm:$0xff]  }
 0x6e7   : > { %3061 = vmatprep.subr.bf16.mxu1 %v4217_v0 }
 0x6ea   : > { %3062 = vmatpush3.bf16.msra.mxu1 %v3425_v45 }
 0x6eb   : > { %v1219_v47 = vpop.f32.mrb[12].mxu1  ;;  %3075 = vmatprep.subr.bf16.mxu1 %v4217_v0 }
 0x6ec   : > { %v1225_v48 = vmul.f32 0.35355338, %v1219_v47  ;;  %v3027_v49 = vpop.f32.mrb[13].mxu1 }
 0x6ed   : > { %v1222_v50 = vpop.f32.mrb[14].mxu1 }
 0x6ee   : > { %v3028_v51 = vpop.f32.mrb[15].mxu1  ;;  %v1226_v52 = vadd.f32 %v1225_v48, %v4982_v17 }
 0x6f0   : > { %v1227_v53 = vsel %vm1065_vm2, %v1226_v52, -inf }
 0x6f1   : > { %1228 = vmax.xlane.f32.xlu1 %v1227_v53 }
 0x6f3   : > { %v1331_v54 = vpop.f32.mrb[16].mxu1 }
 0x6f4   : > { %v1337_v55 = vmul.f32 0.35355338, %v1331_v54  ;;  %v3039_v56 = vpop.f32.mrb[17].mxu1 }
 0x6f5   : > { %v1334_v57 = vpop.f32.mrb[18].mxu1 }
 0x6f6   : > { %v3040_v58 = vpop.f32.mrb[19].mxu1  ;;  %v1338_v59 = vadd.f32 %v1337_v55, %v4982_v17 }
 0x6f8   : > { %v1339_v60 = vsel %vm1065_vm2, %v1338_v59, -inf }
 0x6f9   : > { %1340 = vmax.xlane.f32.xlu0 %v1339_v60 }
 0x6fb   : > { %v1443_v61 = vpop.f32.mrb[20].mxu1 }
 0x6fc   : > { %v1449_v62 = vmul.f32 0.35355338, %v1443_v61  ;;  %v3051_v63 = vpop.f32.mrb[21].mxu1  ;;  %v2897_v61 = vld [vmem:[#allocation14] ss:$0 sm:$0xff] }
 0x6fd   : > { %v1446_v1 = vpop.f32.mrb[22].mxu1 }
 0x6fe   : > { %v3052_v2 = vpop.f32.mrb[23].mxu1  ;;  %v1450_v4 = vadd.f32 %v1449_v62, %v4982_v17  ;;  %v983_v62 = vunpack.c.l.bf16 %v4958_v3  ;;  %v3427_v3 = vld [vmem:[#allocation20 + $0x8] sm:$0xff]  }
 0x700   : > { %v1451_v5 = vsel %vm1065_vm2, %v1450_v4, -inf }
 0x701   : > { %1452 = vmax.xlane.f32.xlu1 %v1451_v5 }
 0x77e   : > { %v1229_v6 = vpop.xlane.xlu1 %1228 }
 0x77f   : > { %v1230_v7 = vsub.f32 %v1226_v52, %v1229_v6 }
 0x781   : > { %v1231_v8 = vmul.f32 1.442695, %v1230_v7 }
 0x783   : > { %3446 = vpow2.f32 %v1231_v8 }
 0x786   : > { %v1341_v17 = vpop.xlane.xlu0 %1340 }
 0x787   : > { %v1342_v18 = vsub.f32 %v1338_v59, %v1341_v17 }
 0x789   : > { %v1343_v19 = vmul.f32 1.442695, %v1342_v18 }
 0x78d   : > { %v3447_v10 = vpop.eup %3446 }
 0x78e   : > { %v1453_v11 = vpop.xlane.xlu1 %1452  ;;  %v1233_v12 = vsel %vm1065_vm2, %v3447_v10, 0.0 }
 0x78f   : > { %v1454_v13 = vsub.f32 %v1450_v4, %v1453_v11  ;;  %1234 = vadd.xlane.f32.xlu1 %v1233_v12 }
 0x791   : > { %v1455_v14 = vmul.f32 1.442695, %v1454_v13  ;;  %v3426_v13 = vld [vmem:[#allocation20] sm:$0xff]  }
 0x793   : > { %3448 = vpow2.f32 %v1455_v14  ;;  %v984_v14 = vld [vmem:[%s4899_s10] sm:$0xf]  ;;  %s2883_s10 = sshll.u32 %s4888_s21, 3 }
 0x794   : > { %3450 = vpow2.f32 %v1343_v19  ;;  %s980_s3 = scalar_lea.vmem [#allocation35], %s2883_s10 }
 0x795   : > { %s2553_s23 = sshll.u32 %s980_s3, 4  ;;  %s5179_s23 = int_to_ptr.vmem [resolvable:$true] %s2553_s23 }
 0x79d   : > { %v3449_v15 = vpop.eup %3448 }
 0x79e   : > { %v1457_v16 = vsel %vm1065_vm2, %v3449_v15, 0.0  ;;  %v3451_v20 = vpop.eup %3450 }
 0x79f   : > { %1458 = vadd.xlane.f32.xlu0 %v1457_v16  ;;  %v1345_v21 = vsel %vm1065_vm2, %v3451_v20, 0.0  ;;  %v3429_v16 = vld [vmem:[#allocation17 + $0x8] sm:$0xff]  }
 0x7a0   : > { %1239 = vrot.lane.b32.xlu1 %v4965_v9, %s4227_s4 }
 0x7b5   : > { %1351 = vrot.lane.b32.xlu0 %v4965_v9, %s4228_s1 }
 0x7c4   : > { %1346 = vadd.xlane.f32.xlu1 %v1345_v21  ;;  %v2901_v21 = vld [vmem:[#allocation16] ss:$0 sm:$0xff] }
 0x7d5   : > { %1463 = vrot.lane.b32.xlu1 %v4965_v9, %s4229_s24 }
 0x81c   : > { %v1235_v22 = vpop.xlane.xlu1 %1234 }
 0x81d   : > { %3452 = vrcp.f32 %v1235_v22 }
 0x820   : > { %v1240_v23 = vpop.permute.xlu1 %1239 }
 0x821   : > { %v1245_v24 = vsel %vm1131_vm3, %v1240_v23, 0  ;;  %v2902_v23 = vld [vmem:[#allocation16 + $0x1] ss:$0 sm:$0xff] }
 0x822   : > { %3030 = vmatpush3.bf16.msra.mxu0 %v1245_v24 }
 0x823   : > { %3041 = vmatprep.subr.bf16.mxu0 %v4217_v0 }
 0x827   : > { %v3453_v25 = vpop.eup %3452 }
 0x828   : > { %v1237_v26 = vmul.f32 %v3453_v25, %v3447_v10 }
 0x82a   : > { %v1238_v27 = vpack.c.bf16 %v1237_v26, %v1237_v26 }
 0x82c   : > { %v1459_v28 = vpop.xlane.xlu0 %1458  ;;  %3032 = vmatmul.mubr.msk.bf16.vlgmr.msra.gmra.mrb[0].mxu0 %vm1065_vm2, %v1238_v27  ;;  %v2907_v27 = vld [vmem:[#allocation22] ss:$0 sm:$0xff] }
 0x82d   : > { %3043 = vmatprep.mubr.msk.bf16.mxu0 %vm4218_vm0, %v4217_v0 }
 0x830   : > { %v1352_v29 = vpop.permute.xlu0 %1351 }
 0x831   : > { %v1357_v9 = vsel %vm1131_vm3, %v1352_v29, 0 }
 0x832   : > { %3042 = vmatpush3.bf16.msra.mxu0 %v1357_v9 }
 0x833   : > { %3053 = vmatprep.subr.bf16.mxu0 %v4217_v0 }
 0x851   : > { %v1347_v30 = vpop.xlane.xlu1 %1346 }
 0x852   : > { %3454 = vrcp.f32 %v1347_v30 }
 0x853   : > { %3456 = vrcp.f32 %v1459_v28 }
 0x855   : > { %v1464_v33 = vpop.permute.xlu1 %1463 }
 0x856   : > { %v1469_v36 = vsel %vm1131_vm3, %v1464_v33, 0 }
 0x85c   : > { %v3455_v31 = vpop.eup %3454 }
 0x85d   : > { %v1349_v32 = vmul.f32 %v3455_v31, %v3451_v20  ;;  %v3457_v35 = vpop.eup %3456 }
 0x85e   : > { %v1461_v37 = vmul.f32 %v3457_v35, %v3449_v15  ;;  %v3428_v15 = vld [vmem:[#allocation17] sm:$0xff]  }
 0x85f   : > { %v1350_v34 = vpack.c.bf16 %v1349_v32, %v1349_v32 }
 0x860   : > { %v1462_v38 = vpack.c.bf16 %v1461_v37, %v1461_v37 }
 0x861   : > { %3044 = vmatmul.mubr.msk.bf16.vlgmr.msra.gmra.mrb[4].mxu0 %vm1065_vm2, %v1350_v34  ;;  %v2903_v34 = vld [vmem:[#allocation19] ss:$0 sm:$0xff] }
 0x862   : > { %3054 = vmatpush3.bf16.msra.mxu0 %v1469_v36  ;;  %3055 = vmatprep.mubr.msk.bf16.mxu0 %vm4218_vm0, %v4217_v0 }
 0x863   : > { %3067 = vmatprep.subr.bf16.mxu0 %v4217_v0 }
 0x869   : > { %3056 = vmatmul.mubr.msk.bf16.vlgmr.msra.gmra.mrb[8].mxu0 %vm1065_vm2, %v1462_v38 }
 0x86a   : > { %3071 = vmatprep.mubr.msk.bf16.mxu0 %vm4218_vm0, %v4217_v0  ;;  %3068 = vmatpush3.bf16.msra.mxu0 %v3428_v15 }
 0x86b   : > { %3069 = vmatprep.subr.bf16.mxu0 %v4217_v0 }
 0x86e   : > { %3070 = vmatpush3.bf16.msra.mxu0 %v3429_v16 }
 0x86f   : > { %3083 = vmatprep.subr.bf16.mxu0 %v4217_v0 }
 0x8ff   : > { %v1281_v39 = vpop.f32.mrb[0].mxu0 }
 0x900   : > { %1512 = vrot.lane.b32.xlu1 %v1281_v39, %s4230_s25  ;;  %v3033_v40 = vpop.f32.mrb[1].mxu0 }
 0x901   : > { %v1284_v41 = vpop.f32.mrb[2].mxu0 }
 0x902   : > { %v3034_v42 = vpop.f32.mrb[3].mxu0 }
 0x934   : > { %v1393_v46 = vpop.f32.mrb[4].mxu0 }
 0x935   : > { %1516 = vrot.lane.b32.xlu0 %v1393_v46, %s4231_s8  ;;  %v3045_v47 = vpop.f32.mrb[5].mxu0 }
 0x936   : > { %v1396_v48 = vpop.f32.mrb[6].mxu0 }
 0x937   : > { %v3046_v49 = vpop.f32.mrb[7].mxu0 }
 0x93c   : > { %v1505_v50 = vpop.f32.mrb[8].mxu0 }
 0x93d   : > { %1520 = vrot.lane.b32.xlu1 %v1505_v50, %s4232_s30  ;;  %v3057_v51 = vpop.f32.mrb[9].mxu0 }
 0x93e   : > { %v1508_v52 = vpop.f32.mrb[10].mxu0 }
 0x93f   : > { %v3058_v53 = vpop.f32.mrb[11].mxu0 }
 0x972   : > { %v1513_v54 = vpop.permute.xlu1 %1512 }
 0x973   : > { %v1523_v56 = vsel %vm1065_vm2, %v5015_v43, %v1513_v54 }
 0x9a7   : > { %v1517_v55 = vpop.permute.xlu0 %1516 }
 0x9a8   : > { %v1525_v57 = vsel %vm1524_vm4, %v1523_v56, %v1517_v55 }
 0x9af   : > { %v1521_v58 = vpop.permute.xlu1 %1520 }
 0x9b0   : > { %v1527_v59 = vsel %vm1526_vm5, %v1525_v57, %v1521_v58 }
 0x9b1   : > { %v1528_v60 = vpack.c.bf16 %v1527_v59, %v1527_v59 }
 0x9b3   : > { %3064 = vmatmul.mubr.msk.bf16.vlgmr.msra.gmra.mrb[24].mxu1 %vm1009_vm1, %v1528_v60 }
 0x9b4   : > { %3079 = vmatprep.mubr.msk.bf16.mxu1 %vm4218_vm0, %v4217_v0  ;;  %3076 = vmatpush3.bf16.msra.mxu1 %v3426_v13 }
 0x9b5   : > { %3077 = vmatprep.subr.bf16.mxu1 %v4217_v0 }
 0x9b8   : > { %3078 = vmatpush3.bf16.msra.mxu1 %v3427_v3 }
 0x9b9   : > { %3089 = vmatprep.subr.bf16.mxu1 %v4217_v0 }
 0x9bb   : > { %3080 = vmatmul.mubr.msk.bf16.vlgmr.msra.gmra.mrb[28].mxu1 %vm1009_vm1, %v984_v14 }
 0x9bc   : > { %3091 = vmatprep.mubr.msk.bf16.mxu1 %vm4218_vm0, %v4217_v0 }
 0xa86   : > { %v1589_v63 = vpop.f32.mrb[24].mxu1 }
 0xa87   : > { %v1590_v1 = vadd.f32 %v2897_v61, %v1589_v63  ;;  %v3065_v2 = vpop.f32.mrb[25].mxu1 }
 0xa88   : > { %v1592_v4 = vpop.f32.mrb[26].mxu1 }
 0xa89   : > { %v3066_v5 = vpop.f32.mrb[27].mxu1  ;;  %v1595_v43 = vadd.f32 %v1590_v1, %v983_v62 }
 0xa8b   : > { %v1598_v6 = vsel %vm1009_vm1, %v1595_v43, 0.0 }
 0xa8c   : > { %1599 = vadd.xlane.f32.xlu0 %v1598_v6 }
 0xa8e   : > { %v1750_v28 = vpop.f32.mrb[28].mxu1 }
 0xa8f   : > { %v1751_v29 = vadd.f32 %v2907_v27, %v1750_v28  ;;  %v3081_v9 = vpop.f32.mrb[29].mxu1 }
 0xa90   : > { %v1753_v30 = vpop.f32.mrb[30].mxu1 }
 0xa91   : > { %v5074_v31 = vpack.c.bf16 %v1751_v29, %v1751_v29  ;;  %v3082_v32 = vpop.f32.mrb[31].mxu1 }
 0xa93   : > { %v1761_v33 = vsel %vm1065_vm2, %v5074_v31, 0 }
 0xaa2   : > { %1868 = vrot.lane.b32.xlu0 %v5074_v31, %s4223_s20 }
 0xaa6   : > { %1979 = vrot.lane.b32.xlu0 %v5074_v31, %s4225_s13 }
 0xaaa   : > { %2090 = vrot.lane.b32.xlu0 %v5074_v31, %s4226_s14 }
 0xb19   : > { %v1600_v7 = vpop.xlane.xlu0 %1599 }
 0xb1a   : > { %v1602_v8 = vmul.f32 0.03125, %v1600_v7 }
 0xb1c   : > { %v1603_v10 = vsub.f32 %v1595_v43, %v1602_v8 }
 0xb1d   : > { %v1869_v39 = vpop.permute.xlu0 %1868 }
 0xb1e   : > { %v1604_v11 = vmul.f32 %v1603_v10, %v1603_v10  ;;  %v1874_v42 = vsel %vm1065_vm2, %v1869_v39, 0 }
 0xb20   : > { %v1605_v12 = vsel %vm1009_vm1, %v1604_v11, 0.0 }
 0xb21   : > { %1606 = vadd.xlane.f32.xlu1 %v1605_v12  ;;  %v1980_v44 = vpop.permute.xlu0 %1979 }
 0xb22   : > { %v1985_v46 = vsel %vm1065_vm2, %v1980_v44, 0 }
 0xb25   : > { %v2091_v47 = vpop.permute.xlu0 %2090 }
 0xb26   : > { %v2096_v49 = vsel %vm1065_vm2, %v2091_v47, 0 }
 0xbae   : > { %v1607_v17 = vpop.xlane.xlu1 %1606 }
 0xbaf   : > { %v1608_v18 = vmul.f32 0.03125, %v1607_v17 }
 0xbb1   : > { %v1609_v19 = vadd.f32 1e-05, %v1608_v18 }
 0xbb3   : > { %3458 = vrsqrt.f32 %v1609_v19 }
 0xbbd   : > { %v3459_v20 = vpop.eup %3458 }
 0xbbe   : > { %v1611_v22 = vmul.f32 %v3459_v20, %v1603_v10 }
 0xbc0   : > { %v1616_v24 = vmul.f32 %v2901_v21, %v1611_v22 }
 0xbc2   : > { %v5067_v25 = vadd.f32 %v2902_v23, %v1616_v24 }
 0xbc4   : > { %v1622_v26 = vpack.c.bf16 %v5067_v25, %v5067_v25 }
 0xbc6   : > { %3072 = vmatmul.mubr.msk.bf16.vlgmr.msra.gmra.mrb[12].mxu0 %vm1009_vm1, %v1622_v26 }
 0xbc7   : > { %3085 = vmatprep.mubr.msk.bf16.mxu0 %vm4218_vm0, %v4217_v0  ;;  %3084 = vmatpush3.bf16.xpose.msra.mxu0 %v1761_v33 }
 0xbc8   : > { %3095 = vmatprep.subr.bf16.mxu0 %v4217_v0 }
 0xc99   : > { %v1683_v35 = vpop.f32.mrb[12].mxu0 }
 0xc9a   : > { %v1684_v36 = vadd.f32 %v2903_v34, %v1683_v35  ;;  %v3073_v37 = vpop.f32.mrb[13].mxu0 }
 0xc9b   : > { %v1686_v38 = vpop.f32.mrb[14].mxu0 }
 0xc9c   : > { %v1689_v40 = vpack.c.bf16 %v1684_v36, %v1684_v36  ;;  %v3074_v41 = vpop.f32.mrb[15].mxu0 }
 0xc9e   : > { %1866 = vrot.lane.b32.xlu1 %v1689_v40, %s4223_s20  ;;  %3086 = vmatmul.mubr.msk.bf16.vlgmr.msra.gmra.mrb[16].mxu0 %vm1065_vm2, %v1689_v40 }
 0xc9f   : > { %3096 = vmatpush3.bf16.xpose.msra.mxu0 %v1874_v42  ;;  %3097 = vmatprep.mubr.msk.bf16.mxu0 %vm4218_vm0, %v4217_v0 }
 0xca0   : > { %3107 = vmatprep.subr.bf16.mxu0 %v4217_v0 }
 0xca2   : > { %1977 = vrot.lane.b32.xlu1 %v1689_v40, %s4225_s13  ;;  %s4078_s13 = scalar_lea.vmem %s5179_s23, 128 }
 0xca3   : > { %p4079_p13 = scmp.ne.s32.totalorder %s5179_s23, %s4078_s13 }
 0xca5   : > { %p4080_p2 = pnand %p4079_p13, %p5363_p3 }
 0xca6   : > { %2088 = vrot.lane.b32.xlu1 %v1689_v40, %s4226_s14  ;;  %s4082_s14 = sshll.u32 %s4233_s26, 4  ;;  %s4083_s14 = int_to_ptr.vmem [resolvable:$false] %s4082_s14 }
 0xca7   : > { %p4081_p0 = pneg %p4080_p2  ;;  %s4084_s4 = scalar_lea.vmem %s4083_s14, 256 }
 0xca8   : > { %p4085_p11 = scmp.lt.s32.totalorder %s5179_s23, %s4083_s14  ;;  %p4086_p12 = scmp.lt.s32.totalorder %s4084_s4, %s4078_s13 }
 0xcaa   : > { %p4087_p10 = por %p4086_p12, %p4085_p11 }
 0xcac   : > { %p4088_p8 = pnand %p4087_p10, %p4081_p0 }
 0xd10   : > { %v1867_v45 = vpop.permute.xlu1 %1866 }
 0xd11   : > { %3098 = vmatmul.mubr.msk.bf16.vlgmr.msra.gmra.mrb[20].mxu0 %vm1065_vm2, %v1867_v45 }
 0xd12   : > { %3108 = vmatpush3.bf16.xpose.msra.mxu0 %v1985_v46  ;;  %3109 = vmatprep.mubr.msk.bf16.mxu0 %vm4218_vm0, %v4217_v0 }
 0xd13   : > { %3119 = vmatprep.subr.bf16.mxu0 %v4217_v0 }
 0xd14   : > { %v1978_v48 = vpop.permute.xlu1 %1977 }
 0xd18   : > { %v2089_v50 = vpop.permute.xlu1 %2088 }
 0xd19   : > { %3110 = vmatmul.mubr.msk.bf16.vlgmr.msra.gmra.mrb[24].mxu0 %vm1065_vm2, %v1978_v48 }
 0xd1a   : > { %3120 = vmatpush3.bf16.xpose.msra.mxu0 %v2096_v49  ;;  %3121 = vmatprep.mubr.msk.bf16.mxu0 %vm4218_vm0, %v4217_v0 }
 0xd1b   : > { %3131 = vmatprep.subr.bf16.mxu0 %v4217_v0 }
 0xd21   : > { %3122 = vmatmul.mubr.msk.bf16.vlgmr.msra.gmra.mrb[28].mxu0 %vm1065_vm2, %v2089_v50 }
 0xd22   : > { %3135 = vmatprep.mubr.msk.bf16.mxu0 %vm4218_vm0, %v4217_v0 }
 0xd71   : > { %v1797_v51 = vpop.f32.mrb[16].mxu0 }
 0xd72   : > { %v1803_v52 = vmul.f32 0.35355338, %v1797_v51  ;;  %v3087_v53 = vpop.f32.mrb[17].mxu0 }
 0xd73   : > { %v1800_v54 = vpop.f32.mrb[18].mxu0 }
 0xd74   : > { %v3088_v55 = vpop.f32.mrb[19].mxu0  ;;  %v1804_v56 = vsel %vm1065_vm2, %v1803_v52, -inf }
 0xd75   : > { %1805 = vmax.xlane.f32.xlu0 %v1804_v56 }
 0xde4   : > { %v1910_v57 = vpop.f32.mrb[20].mxu0 }
 0xde5   : > { %v1916_v58 = vmul.f32 0.35355338, %v1910_v57  ;;  %v3099_v59 = vpop.f32.mrb[21].mxu0 }
 0xde6   : > { %v1913_v60 = vpop.f32.mrb[22].mxu0 }
 0xde7   : > { %v3100_v61 = vpop.f32.mrb[23].mxu0  ;;  %v1917_v62 = vsel %vm1065_vm2, %v1916_v58, -inf }
 0xde8   : > { %1918 = vmax.xlane.f32.xlu1 %v1917_v62  ;;  %v3430_v61 = vld [vmem:[#allocation23] sm:$0xff]  }
 0xde9   : > { %3132 = vmatpush3.bf16.msra.mxu0 %v3430_v61 }
 0xdea   : > { %3133 = vmatprep.subr.bf16.mxu0 %v4217_v0 }
 0xdec   : > { %v2021_v63 = vpop.f32.mrb[24].mxu0 }
 0xded   : > { %v2027_v1 = vmul.f32 0.35355338, %v2021_v63  ;;  %v3111_v2 = vpop.f32.mrb[25].mxu0 }
 0xdee   : > { %v2024_v4 = vpop.f32.mrb[26].mxu0 }
 0xdef   : > { %v3112_v5 = vpop.f32.mrb[27].mxu0  ;;  %v2028_v43 = vsel %vm1065_vm2, %v2027_v1, -inf  ;;  %v3431_v4 = vld [vmem:[#allocation23 + $0x8] sm:$0xff]  }
 0xdf0   : > { %2029 = vmax.xlane.f32.xlu0 %v2028_v43  ;;  %3134 = vmatpush3.bf16.msra.mxu0 %v3431_v4 }
 0xdf1   : > { %3147 = vmatprep.subr.bf16.mxu0 %v4217_v0 }
 0xdf4   : > { %v2132_v6 = vpop.f32.mrb[28].mxu0 }
 0xdf5   : > { %v2138_v7 = vmul.f32 0.35355338, %v2132_v6  ;;  %v3123_v8 = vpop.f32.mrb[29].mxu0 }
 0xdf6   : > { %v2135_v10 = vpop.f32.mrb[30].mxu0 }
 0xdf7   : > { %v3124_v11 = vpop.f32.mrb[31].mxu0  ;;  %v2139_v12 = vsel %vm1065_vm2, %v2138_v7, -inf }
 0xdf8   : > { %2140 = vmax.xlane.f32.xlu0 %v2139_v12 }
 0xe02   : > { %v1806_v13 = vpop.xlane.xlu0 %1805 }
 0xe03   : > { %v1807_v3 = vsub.f32 %v1803_v52, %v1806_v13 }
 0xe05   : > { %v1808_v14 = vmul.f32 1.442695, %v1807_v3 }
 0xe07   : > { %3460 = vpow2.f32 %v1808_v14 }
 0xe11   : > { %v3461_v15 = vpop.eup %3460 }
 0xe12   : > { %v1810_v16 = vsel %vm1065_vm2, %v3461_v15, 0.0 }
 0xe13   : > { %1811 = vadd.xlane.f32.xlu1 %v1810_v16 }
 0xe24   : > { %1817 = vrot.lane.b32.xlu1 %v5074_v31, %s4220_s5 }
 0xe75   : > { %v1919_v17 = vpop.xlane.xlu1 %1918 }
 0xe76   : > { %v1920_v18 = vsub.f32 %v1916_v58, %v1919_v17 }
 0xe78   : > { %v1921_v19 = vmul.f32 1.442695, %v1920_v18 }
 0xe7a   : > { %3462 = vpow2.f32 %v1921_v19  ;;  %v2919_v19 = vld [vmem:[#allocation25] ss:$0 sm:$0xff] }
 0xe7d   : > { %v2030_v20 = vpop.xlane.xlu0 %2029 }
 0xe7e   : > { %v2031_v21 = vsub.f32 %v2027_v1, %v2030_v20 }
 0xe80   : > { %v2032_v22 = vmul.f32 1.442695, %v2031_v21 }
 0xe82   : > { %3464 = vpow2.f32 %v2032_v22 }
 0xe84   : > { %v3463_v23 = vpop.eup %3462 }
 0xe85   : > { %v2141_v24 = vpop.xlane.xlu0 %2140  ;;  %v1923_v26 = vsel %vm1065_vm2, %v3463_v23, 0.0 }
 0xe86   : > { %v2142_v27 = vsub.f32 %v2138_v7, %v2141_v24  ;;  %1924 = vadd.xlane.f32.xlu0 %v1923_v26 }
 0xe88   : > { %v2143_v28 = vmul.f32 1.442695, %v2142_v27 }
 0xe8a   : > { %3466 = vpow2.f32 %v2143_v28 }
 0xe8c   : > { %v3465_v29 = vpop.eup %3464 }
 0xe8d   : > { %v2034_v9 = vsel %vm1065_vm2, %v3465_v29, 0.0 }
 0xe8e   : > { %2035 = vadd.xlane.f32.xlu1 %v2034_v9 }
 0xe94   : > { %v3467_v30 = vpop.eup %3466 }
 0xe95   : > { %v2145_v32 = vsel %vm1065_vm2, %v3467_v30, 0.0 }
 0xe96   : > { %2146 = vadd.xlane.f32.xlu0 %v2145_v32 }
 0xe9f   : > { %2040 = vrot.lane.b32.xlu1 %v5074_v31, %s4224_s12  ;;  %s2540_s12 = scalar_lea.sflag [#allocation4], %s4888_s21 }
 0xea0   : > { %v1812_v33 = vpop.xlane.xlu1 %1811 }
 0xea1   : > { %3468 = vrcp.f32 %v1812_v33  ;;  %v3432_v33 = vld [vmem:[#allocation28] sm:$0xff]  }
 0xea3   : > { %2151 = vrot.lane.b32.xlu1 %v5074_v31, %s4222_s6  ;;  %s5362_s6 = sld [smem:[#allocation72_spill]] }
 0xea4   : > { %v1818_v34 = vpop.permute.xlu1 %1817 }
 0xea5   : > { %v1823_v35 = vsel %vm1131_vm3, %v1818_v34, 0  ;;  %v3433_v34 = vld [vmem:[#allocation28 + $0x8] sm:$0xff]  }
 0xea6   : > { %3090 = vmatpush3.bf16.msra.mxu1 %v1823_v35 }
 0xea7   : > { %3101 = vmatprep.subr.bf16.mxu1 %v4217_v0 }
 0xea9   : > { %s5177_s20 = scalar_lea.hbm %s5362_s6, %s2941_s28 }
 0xeab   : > { %v3469_v36 = vpop.eup %3468 }
 0xeac   : > { %v1814_v37 = vmul.f32 %v3469_v36, %v3461_v15  ;;  %1929 = vrot.lane.b32.xlu0 %v5074_v31, %s4221_s7 }
 0xeae   : > { %v1815_v38 = vpack.c.bf16 %v1814_v37, %v1814_v37 }
 0xeb0   : > { %3092 = vmatmul.mubr.msk.bf16.vlgmr.msra.gmra.mrb[32].mxu1 %vm1065_vm2, %v1815_v38  ;;  %v2923_v38 = vld [vmem:[#allocation26] ss:$0 sm:$0xff] }
 0xeb1   : > { %3103 = vmatprep.mubr.msk.bf16.mxu1 %vm4218_vm0, %v4217_v0 }
 0xf13   : > { %v1925_v39 = vpop.xlane.xlu0 %1924 }
 0xf14   : > { %3470 = vrcp.f32 %v1925_v39 }
 0xf1b   : > { %v2036_v40 = vpop.xlane.xlu1 %2035 }
 0xf1c   : > { %3472 = vrcp.f32 %v2036_v40  ;;  %v2924_v40 = vld [vmem:[#allocation26 + $0x1] ss:$0 sm:$0xff] }
 0xf1e   : > { %v3471_v41 = vpop.eup %3470 }
 0xf1f   : > { %v1927_v44 = vmul.f32 %v3471_v41, %v3463_v23  ;;  %v2041_v47 = vpop.permute.xlu1 %2040 }
 0xf20   : > { %v2046_v49 = vsel %vm1131_vm3, %v2041_v47, 0  ;;  %v3436_v47 = vld [vmem:[#allocation31 + $0x10] sm:$0xff]  }
 0xf21   : > { %v1928_v31 = vpack.c.bf16 %v1927_v44, %v1927_v44 }
 0xf23   : > { %v2147_v42 = vpop.xlane.xlu0 %2146  ;;  %v2152_v51 = vpop.permute.xlu1 %2151 }
 0xf24   : > { %3474 = vrcp.f32 %v2147_v42  ;;  %v2157_v54 = vsel %vm1131_vm3, %v2152_v51, 0  ;;  %v3441_v51 = vld [vmem:[#allocation31 + $0x38] sm:$0xff]  }
 0xf26   : > { %v3473_v48 = vpop.eup %3472 }
 0xf27   : > { %v1930_v45 = vpop.permute.xlu0 %1929  ;;  %v2038_v50 = vmul.f32 %v3473_v48, %v3465_v29  ;;  %v3438_v48 = vld [vmem:[#allocation31 + $0x20] sm:$0xff]  }
 0xf28   : > { %v1935_v46 = vsel %vm1131_vm3, %v1930_v45, 0  ;;  %v3434_v45 = vld [vmem:[#allocation31] sm:$0xff]  }
 0xf29   : > { %3102 = vmatpush3.bf16.msra.mxu1 %v1935_v46  ;;  %v2039_v52 = vpack.c.bf16 %v2038_v50, %v2038_v50  ;;  %v3435_v46 = vld [vmem:[#allocation31 + $0x8] sm:$0xff]   ;;  %v3440_v50 = vld [vmem:[#allocation31 + $0x30] sm:$0xff]  }
 0xf2a   : > { %3113 = vmatprep.subr.bf16.mxu1 %v4217_v0 }
 0xf2c   : > { %3104 = vmatmul.mubr.msk.bf16.vlgmr.msra.gmra.mrb[36].mxu1 %vm1065_vm2, %v1928_v31  ;;  %v3437_v31 = vld [vmem:[#allocation31 + $0x18] sm:$0xff]  }
 0xf2d   : > { %3114 = vmatpush3.bf16.msra.mxu1 %v2046_v49  ;;  %3115 = vmatprep.mubr.msk.bf16.mxu1 %vm4218_vm0, %v4217_v0  ;;  %v3439_v49 = vld [vmem:[#allocation31 + $0x28] sm:$0xff]  }
 0xf2e   : > { %3125 = vmatprep.subr.bf16.mxu1 %v4217_v0  ;;  %v3475_v53 = vpop.eup %3474 }
 0xf2f   : > { %v2149_v55 = vmul.f32 %v3475_v53, %v3467_v30 }
 0xf31   : > { %v2150_v56 = vpack.c.bf16 %v2149_v55, %v2149_v55 }
 0xf34   : > { %3116 = vmatmul.mubr.msk.bf16.vlgmr.msra.gmra.mrb[40].mxu1 %vm1065_vm2, %v2039_v52  ;;  %v2925_v52 = vld [vmem:[#allocation29] ss:$0 sm:$0xff] }
 0xf35   : > { %3126 = vmatpush3.bf16.msra.mxu1 %v2157_v54  ;;  %3127 = vmatprep.mubr.msk.bf16.mxu1 %vm4218_vm0, %v4217_v0 }
 0xf36   : > { %3139 = vmatprep.subr.bf16.mxu1 %v4217_v0 }
 0xf3c   : > { %3128 = vmatmul.mubr.msk.bf16.vlgmr.msra.gmra.mrb[44].mxu1 %vm1065_vm2, %v2150_v56 }
 0xf3d   : > { %3143 = vmatprep.mubr.msk.bf16.mxu1 %vm4218_vm0, %v4217_v0  ;;  %3140 = vmatpush3.bf16.msra.mxu1 %v3432_v33 }
 0xf3e   : > { %3141 = vmatprep.subr.bf16.mxu1 %v4217_v0 }
 0xf41   : > { %3142 = vmatpush3.bf16.msra.mxu1 %v3433_v34 }
 0xf83   : > { %v1859_v57 = vpop.f32.mrb[32].mxu1 }
 0xf84   : > { %v3093_v58 = vpop.f32.mrb[33].mxu1 }
 0xf85   : > { %v1862_v59 = vpop.f32.mrb[34].mxu1 }
 0xf86   : > { %v3094_v60 = vpop.f32.mrb[35].mxu1 }
 0xfff   : > { %v1971_v62 = vpop.f32.mrb[36].mxu1 }
0x1000   : > { %2200 = vrot.lane.b32.xlu0 %v1971_v62, %s4230_s25  ;;  %v3105_v63 = vpop.f32.mrb[37].mxu1 }
0x1001   : > { %v1974_v1 = vpop.f32.mrb[38].mxu1 }
0x1002   : > { %v3106_v2 = vpop.f32.mrb[39].mxu1 }
0x1007   : > { %v2082_v5 = vpop.f32.mrb[40].mxu1 }
0x1008   : > { %2204 = vrot.lane.b32.xlu1 %v2082_v5, %s4231_s8  ;;  %v3117_v43 = vpop.f32.mrb[41].mxu1 }
0x1009   : > { %v2085_v6 = vpop.f32.mrb[42].mxu1 }
0x100a   : > { %v3118_v7 = vpop.f32.mrb[43].mxu1 }
0x100f   : > { %v2193_v8 = vpop.f32.mrb[44].mxu1 }
0x1010   : > { %2208 = vrot.lane.b32.xlu0 %v2193_v8, %s4232_s30  ;;  %v3129_v10 = vpop.f32.mrb[45].mxu1 }
0x1011   : > { %v2196_v11 = vpop.f32.mrb[46].mxu1 }
0x1012   : > { %v3130_v12 = vpop.f32.mrb[47].mxu1 }
0x1072   : > { %v2201_v13 = vpop.permute.xlu0 %2200 }
0x1073   : > { %v2211_v14 = vsel %vm1065_vm2, %v1859_v57, %v2201_v13 }
0x107a   : > { %v2205_v3 = vpop.permute.xlu1 %2204 }
0x107b   : > { %v2212_v15 = vsel %vm1524_vm4, %v2211_v14, %v2205_v3 }
0x1082   : > { %v2209_v16 = vpop.permute.xlu0 %2208 }
0x1083   : > { %v2213_v17 = vsel %vm1526_vm5, %v2212_v15, %v2209_v16 }
0x1084   : > { %v2214_v18 = vpack.c.bf16 %v2213_v17, %v2213_v17 }
0x1086   : > { %3136 = vmatmul.mubr.msk.bf16.vlgmr.msra.gmra.mrb[32].mxu0 %vm1009_vm1, %v2214_v18 }
0x1087   : > { %3163 = vmatprep.mubr.msk.bf16.mxu0 %vm4218_vm0, %v4217_v0  ;;  %3148 = vmatpush3.bf16.msra.mxu0 %v3434_v45 }
0x1088   : > { %3149 = vmatprep.subr.bf16.mxu0 %v4217_v0 }
0x108b   : > { %3150 = vmatpush3.bf16.msra.mxu0 %v3435_v46 }
0x108c   : > { %3151 = vmatprep.subr.bf16.mxu0 %v4217_v0 }
0x108f   : > { %3152 = vmatpush3.bf16.msra.mxu0 %v3436_v47 }
0x1090   : > { %3153 = vmatprep.subr.bf16.mxu0 %v4217_v0 }
0x1093   : > { %3154 = vmatpush3.bf16.msra.mxu0 %v3437_v31 }
0x1094   : > { %3155 = vmatprep.subr.bf16.mxu0 %v4217_v0 }
0x1097   : > { %3156 = vmatpush3.bf16.msra.mxu0 %v3438_v48 }
0x1098   : > { %3157 = vmatprep.subr.bf16.mxu0 %v4217_v0 }
0x109b   : > { %3158 = vmatpush3.bf16.msra.mxu0 %v3439_v49 }
0x109c   : > { %3159 = vmatprep.subr.bf16.mxu0 %v4217_v0 }
0x109f   : > { %3160 = vmatpush3.bf16.msra.mxu0 %v3440_v50 }
0x10a0   : > { %3161 = vmatprep.subr.bf16.mxu0 %v4217_v0 }
0x10a3   : > { %3162 = vmatpush3.bf16.msra.mxu0 %v3441_v51 }
0x1159   : > { %v2275_v20 = vpop.f32.mrb[32].mxu0 }
0x115a   : > { %v2276_v21 = vadd.f32 %v2919_v19, %v2275_v20  ;;  %v3137_v22 = vpop.f32.mrb[33].mxu0  ;;  %v2929_v20 = vld [vmem:[#allocation32] ss:$0 sm:$0xff] }
0x115b   : > { %v2278_v23 = vpop.f32.mrb[34].mxu0 }
0x115c   : > { %v3138_v24 = vpop.f32.mrb[35].mxu0  ;;  %v2281_v26 = vadd.f32 %v2276_v21, %v5067_v25 }
0x115e   : > { %v2284_v27 = vsel %vm1009_vm1, %v2281_v26, 0.0 }
0x115f   : > { %2285 = vadd.xlane.f32.xlu1 %v2284_v27 }
0x11ec   : > { %v2286_v28 = vpop.xlane.xlu1 %2285 }
0x11ed   : > { %v2287_v29 = vmul.f32 0.03125, %v2286_v28 }
0x11ef   : > { %v2288_v9 = vsub.f32 %v2281_v26, %v2287_v29 }
0x11f1   : > { %v2289_v30 = vmul.f32 %v2288_v9, %v2288_v9 }
0x11f3   : > { %v2290_v32 = vsel %vm1009_vm1, %v2289_v30, 0.0 }
0x11f4   : > { %2291 = vadd.xlane.f32.xlu0 %v2290_v32 }
0x1281   : > { %v2292_v35 = vpop.xlane.xlu0 %2291 }
0x1282   : > { %v2293_v36 = vmul.f32 0.03125, %v2292_v35 }
0x1284   : > { %v2294_v37 = vadd.f32 1e-05, %v2293_v36 }
0x1286   : > { %3476 = vrsqrt.f32 %v2294_v37 }
0x1290   : > { %v3477_v25 = vpop.eup %3476 }
0x1291   : > { %v2296_v39 = vmul.f32 %v3477_v25, %v2288_v9  ;;  %v2938_v25 = vld [vmem:[#allocation34] ss:$0 sm:$0xff] }
0x1293   : > { %v2301_v41 = vmul.f32 %v2923_v38, %v2296_v39  ;;  %v2939_v39 = vld [vmem:[#allocation34 + $0x1] ss:$0 sm:$0xff] }
0x1295   : > { %v5157_v42 = vadd.f32 %v2924_v40, %v2301_v41 }
0x1297   : > { %v2307_v44 = vpack.c.bf16 %v5157_v42, %v5157_v42 }
0x1299   : > { %3144 = vmatmul.mubr.msk.bf16.vlgmr.msra.gmra.mrb[48].mxu1 %vm1009_vm1, %v2307_v44 }
0x136c   : > { %v2368_v53 = vpop.f32.mrb[48].mxu1 }
0x136d   : > { %v2369_v54 = vadd.f32 %v2925_v52, %v2368_v53  ;;  %v3145_v55 = vpop.f32.mrb[49].mxu1 }
0x136e   : > { %v2371_v56 = vpop.f32.mrb[50].mxu1 }
0x136f   : > { %v2375_v57 = vmul.f32 0.70710677, %v2369_v54  ;;  %v3146_v58 = vpop.f32.mrb[51].mxu1  ;;  %v2374_v16 = vmul.f32 0.5, %v2369_v54 }
0x1371   : > { %v2376_v59 = vand.u32 2147483647, %v2375_v57  ;;  %vm2395_vm6 = vcmp.ge.f32.partialorder %v2375_v57, 0.0 }
0x1373   : > { %v2377_v60 = vmul.f32 0.3275911, %v2376_v59  ;;  %v2389_v62 = vsub.f32 0.0, %v2376_v59 }
0x1375   : > { %v2378_v61 = vadd.f32 1.0, %v2377_v60  ;;  %v2390_v1 = vmul.f32 %v2389_v62, %v2376_v59 }
0x1377   : > { %3478 = vrcp.f32 %v2378_v61  ;;  %v2391_v5 = vmul.f32 1.442695, %v2390_v1 }
0x1379   : > { %3480 = vpow2.f32 %v2391_v5 }
0x1381   : > { %v3479_v63 = vpop.eup %3478 }
0x1382   : > { %v2380_v2 = vmul.f32 1.0614054, %v3479_v63 }
0x1383   : > { %v3481_v12 = vpop.eup %3480 }
0x1384   : > { %v2381_v4 = vadd.f32 -1.4531521, %v2380_v2 }
0x1386   : > { %v2382_v0 = vmul.f32 %v3479_v63, %v2381_v4 }
0x1388   : > { %v2383_v43 = vadd.f32 1.4214138, %v2382_v0 }
0x138a   : > { %v2384_v6 = vmul.f32 %v3479_v63, %v2383_v43 }
0x138c   : > { %v2385_v7 = vadd.f32 -0.28449672, %v2384_v6 }
0x138e   : > { %v2386_v8 = vmul.f32 %v3479_v63, %v2385_v7 }
0x1390   : > { %v2387_v10 = vadd.f32 0.2548296, %v2386_v8 }
0x1392   : > { %v2388_v11 = vmul.f32 %v3479_v63, %v2387_v10 }
0x1394   : > { %v2393_v13 = vmul.f32 %v3481_v12, %v2388_v11 }
0x1396   : > { %v2394_v3 = vsub.f32 1.0, %v2393_v13 }
0x1398   : > { %v2396_v14 = vsub.f32 0.0, %v2394_v3 }
0x139a   : > { %v2397_v15 = vsel %vm2395_vm6, %v2394_v3, %v2396_v14 }
0x139b   : > { %v2398_v17 = vadd.f32 1.0, %v2397_v15 }
0x139d   : > { %v2399_v18 = vmul.f32 %v2398_v17, %v2374_v16 }
0x139f   : > { %v2400_v19 = vpack.c.bf16 %v2399_v18, %v2399_v18 }
0x13a1   : > { %3164 = vmatmul.mubr.bf16.vlgmr.msra.gmra.mrb[36].mxu0 %v2400_v19 }
0x1474   : > { %v2506_v21 = vpop.f32.mrb[36].mxu0 }
0x1475   : > { %v2507_v22 = vadd.f32 %v2929_v20, %v2506_v21  ;;  %v3165_v23 = vpop.f32.mrb[37].mxu0 }
0x1476   : > { %v2509_v24 = vpop.f32.mrb[38].mxu0 }
0x1477   : > { %v3166_v26 = vpop.f32.mrb[39].mxu0  ;;  %v2512_v27 = vadd.f32 %v2507_v22, %v5157_v42 }
0x1479   : > { %v2515_v28 = vsel %vm1009_vm1, %v2512_v27, 0.0 }
0x147a   : > { %2516 = vadd.xlane.f32.xlu0 %v2515_v28 }
0x1507   : > { %v2517_v29 = vpop.xlane.xlu0 %2516 }
0x1508   : > { %v2518_v9 = vmul.f32 0.03125, %v2517_v29 }
0x150a   : > { %v2519_v30 = vsub.f32 %v2512_v27, %v2518_v9 }
0x150c   : > { %v2520_v32 = vmul.f32 %v2519_v30, %v2519_v30 }
0x150e   : > { %v2521_v33 = vsel %vm1009_vm1, %v2520_v32, 0.0 }
0x150f   : > { %2522 = vadd.xlane.f32.xlu1 %v2521_v33 }
0x159c   : > { %v2523_v34 = vpop.xlane.xlu1 %2522 }
0x159d   : > { %v2524_v35 = vmul.f32 0.03125, %v2523_v34 }
0x159f   : > { %v2525_v36 = vadd.f32 1e-05, %v2524_v35 }
0x15a1   : > { %3482 = vrsqrt.f32 %v2525_v36 }
0x15ab   : > { %v3483_v37 = vpop.eup %3482 }
0x15ac   : > { %v2527_v38 = vmul.f32 %v3483_v37, %v2519_v30 }
0x15ae   : > { %v2532_v40 = vmul.f32 %v2938_v25, %v2527_v38 }
0x15b0   : > { %v2537_v41 = vadd.f32 %v2939_v39, %v2532_v40 }
0x15b2   : > { %2538 = vst.msk [vmem:[%s980_s3] sm:$0xff] %vm1009_vm1, %v2537_v41 }
0x15b3   : > { %4091 = shalt.err (!%p4088_p8)
}
0x15b4   : > { %s4092_s21 = scalar_lea.hbm %s5177_s20, 128  ;;  %s4096_s25 = scalar_lea.hbm %s5362_s6, 256 }
0x15b5   : > { %p4093_p9 = scmp.ne.s32.totalorder %s5177_s20, %s4092_s21  ;;  %p4097_p4 = scmp.lt.u32.totalorder %s5177_s20, %s5362_s6 }
0x15b6   : > { %p4098_p1 = scmp.lt.u32.totalorder %s4096_s25, %s4092_s21  ;;  %p4100_p13 = scmp.lt.u32.totalorder %s4092_s21, %s5177_s20 }
0x15b7   : > { %p4094_p5 = pnand %p4093_p9, %p5363_p3 }
0x15b8   : > { %p4099_p6 = por %p4098_p1, %p4097_p4 }
0x15b9   : > { %p4095_p7 = pneg %p4094_p5 }
0x15ba   : > { %p4101_p2 = por %p4100_p13, %p4099_p6 }
0x15bc   : > { %p4102_p0 = pnand %p4101_p2, %p4095_p7 }
0x15be   : > { %4105 = shalt.err (!%p4102_p0)
}
0x15bf   : > { %3245 = dma.vmem_to_hbm [thread:$0]  (%p5363_p3), %s5179_s23, 128, %s5177_s20, %s2540_s12  }
0x15c0 PF: > { %s5364_s10 = sld [smem:[#allocation50_spill]]  ;;  %s5365_s28 = sld [smem:[#allocation53_spill]] }
0x15c1   : > { %p5366_p11 = scmp.ne.s32.totalorder %s5326_s0, 0 }
0x15c6   : > { %s2565_s3 = sand.u32 1, %s5364_s10   ;;  %p5367_p12 = scmp.ge.s32.totalorder %s5365_s28, 2 }
0x15c7   : > { %s2566_s5 = scalar_lea.sflag [#allocation4], %s2565_s3 }
0x15c8   : > { %p3313_p10 = pnand %p5367_p12, %p5366_p11 }
0x15ca   : > { %4175 = dma.done.wait (!%p3313_p10), %s2566_s5, 128  }
0x15cb   : > { %4177 = vsyncadd (!%p3313_p10), %s2566_s5, 4294967168  ;;  %s5368_s7 = sld [smem:[#allocation51_spill]]  ;;  %s5369_s25 = sld [smem:[#allocation52_spill]] }
0x15cc   : > { %s5370_s13 = smov %s4762_s2  ;;  %p48_p8 = scmp.ge.s32.totalorder %s4751_s27, 4  }
0x15cd   : > { %s5372_s26 = smov %s5370_s13 }
0x15ce   :  { %50 = sbr.rel (!%p48_p8) target bundleno = 35 (0x23), region = 247 }
0x15d1   : > { %s5371_s2 = smov %s5368_s7 }
0x15d5   :  { %2571 = vsyncpa [#allocation3], 1 }
0x15d6   :  { %2573 = vsyncpa [#allocation3 + $0x1], 1 }
0x15d7   :  { %2574 = vsyncpa [#allocation6], 1 }
0x15d8   :  { %2576 = vsyncpa [#allocation6 + $0x1], 1 }
0x15d9   :  { %2577 = vsyncpa [#allocation9], 1 }
0x15da   :  { %2579 = vsyncpa [#allocation9 + $0x1], 1 }
0x15db   :  { %2580 = vsyncpa [#allocation12], 1 }
0x15dc   :  { %2581 = vsyncpa [#allocation15], 1 }
0x15dd   :  { %2582 = vsyncpa [#allocation18], 1 }
0x15de   :  { %2583 = vsyncpa [#allocation21], 1 }
0x15df   :  { %2584 = vsyncpa [#allocation24], 1 }
0x15e0   :  { %2585 = vsyncpa [#allocation27], 1 }
0x15e1   :  { %2586 = vsyncpa [#allocation30], 1 }
0x15e2   :  { %2587 = vsyncpa [#allocation33], 1 }
0x15e3   :  { %2588 = vsyncpa [#allocation4], 1 }
0x15e4   :  { %2590 = vsyncpa [#allocation4 + $0x1], 1 }

// kernel: tpu_custom_call.1
= control target key start
LH: loop header
LB: loop body
LE: loop exit
PB: predicated region body
PF: predicated region fallthrough
CT: control target
= control target key end

     0   :  { %s5222_s0 = inlined_call_operand.hbm [shape: bf16[2,8,32], index: 0, kind: input, shape index: {}]   ;;  %s5223_s1 = inlined_call_operand.hbm [shape: bf16[2,8,32], index: 1, kind: input, shape index: {}]   ;;  %s5224_s2 = inlined_call_operand.hbm [shape: f32[8,8], index: 2, kind: input, shape index: {}]   ;;  %s5225_s3 = inlined_call_operand.hbm [shape: f32[2,1,8], index: 3, kind: input, shape index: {}]   ;;  %s5226_s4 = inlined_call_operand.hbm [shape: bf16[32,96], index: 4, kind: input, shape index: {}]   ;;  %s5227_s5 = inlined_call_operand.hbm [shape: f32[1,96], index: 5, kind: input, shape index: {}]   ;;  %s5228_s6 = inlined_call_operand.hbm [shape: bf16[32,32], index: 6, kind: input, shape index: {}]   ;;  %s5229_s7 = inlined_call_operand.hbm [shape: f32[1,32], index: 7, kind: input, shape index: {}]   ;;  %s5230_s8 = inlined_call_operand.hbm [shape: f32[2,32], index: 8, kind: input, shape index: {}]   ;;  %s5231_s9 = inlined_call_operand.hbm [shape: bf16[32,32], index: 9, kind: input, shape index: {}]   ;;  %s5232_s10 = inlined_call_operand.hbm [shape: f32[1,32], index: 10, kind: input, shape index: {}]   ;;  %s5233_s11 = inlined_call_operand.hbm [shape: bf16[32,64], index: 11, kind: input, shape index: {}]   ;;  %s5234_s12 = inlined_call_operand.hbm [shape: f32[1,64], index: 12, kind: input, shape index: {}]   ;;  %s5235_s13 = inlined_call_operand.hbm [shape: bf16[32,32], index: 13, kind: input, shape index: {}]   ;;  %s5236_s14 = inlined_call_operand.hbm [shape: f32[1,32], index: 14, kind: input, shape index: {}]   ;;  %s5237_s15 = inlined_call_operand.hbm [shape: f32[2,32], index: 15, kind: input, shape index: {}]   ;;  %s5238_s16 = inlined_call_operand.hbm [shape: bf16[32,128], index: 16, kind: input, shape index: {}]   ;;  %s5239_s17 = inlined_call_operand.hbm [shape: f32[1,128], index: 17, kind: input, shape index: {}]   ;;  %s5240_s18 = inlined_call_operand.hbm [shape: bf16[128,32], index: 18, kind: input, shape index: {}]   ;;  %s5241_s19 = inlined_call_operand.hbm [shape: f32[1,32], index: 19, kind: input, shape index: {}]   ;;  %s5242_s20 = inlined_call_operand.hbm [shape: f32[2,32], index: 20, kind: input, shape index: {}]   ;;  %s5243_s21 = inlined_call_operand.hbm [shape: f32[2,8,32], index: 21, kind: output, shape index: {}]  }
   0x1   :  { %5275 = sst [smem:[#allocation56_spill]] %s5222_s0 }
   0x2   :  { %5276 = sst [smem:[#allocation57_spill]] %s5223_s1 }
   0x3   :  { %5277 = sst [smem:[#allocation58_spill]] %s5224_s2 }
   0x4   :  { %5278 = sst [smem:[#allocation59_spill]] %s5225_s3 }
   0x5   :  { %5279 = sst [smem:[#allocation60_spill]] %s5226_s4 }
   0x6   :  { %5280 = sst [smem:[#allocation61_spill]] %s5227_s5 }
   0x7   :  { %5281 = sst [smem:[#allocation62_spill]] %s5228_s6 }
   0x8   :  { %5282 = sst [smem:[#allocation63_spill]] %s5229_s7 }
   0x9   :  { %5283 = sst [smem:[#allocation64_spill]] %s5230_s8 }
   0xa   :  { %5284 = sst [smem:[#allocation65_spill]] %s5231_s9 }
   0xb   :  { %5285 = sst [smem:[#allocation66_spill]] %s5232_s10 }
   0xc   :  { %5286 = sst [smem:[#allocation67_spill]] %s5233_s11 }
   0xd   :  { %5287 = sst [smem:[#allocation68_spill]] %s5234_s12 }
   0xe   :  { %5288 = sst [smem:[#allocation69_spill]] %s5235_s13 }
   0xf   :  { %5289 = sst [smem:[#allocation70_spill]] %s5236_s14 }
  0x10   :  { %5290 = sst [smem:[#allocation71_spill]] %s5242_s20 }
  0x11   :  { %5291 = sst [smem:[#allocation72_spill]] %s5243_s21 }
  0x12   :  { %26 = vsyncpa [#allocation3], 0 }
  0x13   :  { %28 = vsyncpa [#allocation3 + $0x1], 0 }
  0x14   :  { %29 = vsyncpa [#allocation6], 0 }
  0x15   :  { %31 = vsyncpa [#allocation6 + $0x1], 0 }
  0x16   :  { %32 = vsyncpa [#allocation9], 0 }
  0x17   :  { %34 = vsyncpa [#allocation9 + $0x1], 0 }
  0x18   :  { %35 = vsyncpa [#allocation12], 0 }
  0x19   :  { %36 = vsyncpa [#allocation15], 0 }
  0x1a   :  { %37 = vsyncpa [#allocation18], 0 }
  0x1b   :  { %38 = vsyncpa [#allocation21], 0 }
  0x1c   :  { %39 = vsyncpa [#allocation24], 0 }
  0x1d   :  { %40 = vsyncpa [#allocation27], 0 }
  0x1e   :  { %41 = vsyncpa [#allocation30], 0 }
  0x1f   :  { %42 = vsyncpa [#allocation33], 0 }
  0x20   :  { %43 = vsyncpa [#allocation4], 0 }
  0x21   :  { %45 = vsyncpa [#allocation4 + $0x1], 0  ;;  %s4344_s2 = smov 0   ;;  %s4346_s25 = smov 0  }
  0x22   :  { %s4348_s26 = smov 0   ;;  %s4350_s27 = smov 0  }
  0x23 LB: > { %5292 = sst [smem:[#allocation50_spill]] %s4180_s2  ;;  %s4194_s3 = smov [#allocation7]   ;;  %s4192_s27 = sphi %s4350_s27, %s4751_s27   ;;  %s4188_s26 = sphi %s4348_s26, %s5372_s26   ;;  %s4184_s25 = sphi %s4346_s25, %s5369_s25   ;;  %s4180_s2 = sphi %s4344_s2, %s5371_s2  }
  0x24   : > { %5293 = sst [smem:[#allocation51_spill]] %s4184_s25  ;;  %s551_s28 = sshll.u32 %s4194_s3, 4  ;;  %s552_s28 = int_to_ptr.vmem [resolvable:$true] %s551_s28 }
  0x25   : > { %5294 = sst [smem:[#allocation52_spill]] %s4188_s26  ;;  %s4365_s29 = sadd.s32 4294967295, %s4192_s27  }
  0x26   : > { %5295 = sst [smem:[#allocation53_spill]] %s4192_s27  ;;  %p2837_p0 = scmp.ge.s32.totalorder %s4192_s27, 1 }
  0x27   : > { %5296 = sst [smem:[#allocation54_spill]] %s4365_s29  ;;  %p5255_p1 = scmp.eq.s32.totalorder %s4365_s29, 0 }
  0x28   : > { %p538_p2 = scmp.lt.s32.totalorder %s4192_s27, 3  ;;  %s4195_s4 = smov [#allocation10]  }
  0x29   : > { %s561_s30 = sshll.u32 %s4195_s4, 4  ;;  %s4196_s22 = smov [#allocation11]   ;;  %s4377_s30 = int_to_ptr.vmem [resolvable:$true] %s561_s30 }
  0x2a   : > { %p4370_p3 = pnand %p2837_p0, %p538_p2  ;;  %s575_s23 = sshll.u32 %s4196_s22, 4  ;;  %s4385_s23 = int_to_ptr.vmem [resolvable:$true] %s575_s23 }
  0x2b   : > { %s5300_s3 = sld [smem:[#allocation58_spill]] }
  0x2c   : > { %s5297_s0 = scalar_select %p4370_p3, 1, 0 }
  0x2d   : > { %p3247_p5 = pneg %p4370_p3 }
  0x2e   : > { %5298 = sst [smem:[#allocation55_spill]] %s5297_s0 }
  0x2f   : > { %p4381_p6 = pnand %p3247_p5, %p5255_p1 }
  0x31   : > { %s3484_s21 = scalar_lea.hbm %s5300_s3, 128  ;;  %p4395_p8 = pneg %p4381_p6 }
  0x32   : > { %p3485_p7 = scmp.ne.s32.totalorder %s5300_s3, %s3484_s21  ;;  %p3491_p11 = scmp.lt.u32.totalorder %s3484_s21, %s5300_s3 }
  0x34   : > { %p3487_p9 = pnand %p4395_p8, %p3485_p7 }
  0x36   : > { %p3488_p10 = pneg %p3487_p9 }
  0x38   : > { %p3493_p12 = pnand %p3491_p11, %p3488_p10 }
  0x3a   : > { %3496 = shalt.err (!%p3493_p12)
}
  0x3b   : > { %s3497_s1 = scalar_lea.vmem %s552_s28, 128  ;;  %p3505_p5 = scmp.lt.s32.totalorder %s552_s28, %s552_s28 }
  0x3c   : > { %p3498_p13 = scmp.ne.s32.totalorder %s552_s28, %s3497_s1  ;;  %p3506_p4 = scmp.lt.s32.totalorder %s3497_s1, %s3497_s1 }
  0x3e   : > { %p3500_p0 = pnand %p3498_p13, %p4395_p8  ;;  %p3507_p1 = por %p3506_p4, %p3505_p5 }
  0x40   : > { %p3501_p2 = pneg %p3500_p0 }
  0x42   : > { %p3508_p3 = pnand %p3507_p1, %p3501_p2 }
  0x44   : > { %3511 = shalt.err (!%p3508_p3)
}
  0x45   : > { %3250 = dma.hbm_to_vmem [thread:$0]  (!%p4381_p6), %s5300_s3, 128, %s552_s28, [#allocation6]  }
  0x46   : > { %s5302_s24 = sld [smem:[#allocation60_spill]] }
  0x4c   : > { %s3512_s22 = scalar_lea.hbm %s5302_s24, 256 }
  0x4d   : > { %p3513_p7 = scmp.ne.s32.totalorder %s5302_s24, %s3512_s22  ;;  %p3519_p1 = scmp.lt.u32.totalorder %s3512_s22, %s5302_s24 }
  0x4f   : > { %p3515_p9 = pnand %p3513_p7, %p4395_p8 }
  0x51   : > { %p3516_p4 = pneg %p3515_p9 }
  0x53   : > { %p3521_p3 = pnand %p3519_p1, %p3516_p4 }
  0x55   : > { %3524 = shalt.err (!%p3521_p3)
}
  0x56   : > { %s3525_s28 = scalar_lea.vmem %s4377_s30, 256  ;;  %p3533_p13 = scmp.lt.s32.totalorder %s4377_s30, %s4377_s30 }
  0x57   : > { %p3526_p10 = scmp.ne.s32.totalorder %s4377_s30, %s3525_s28  ;;  %p3534_p0 = scmp.lt.s32.totalorder %s3525_s28, %s3525_s28 }
  0x59   : > { %p3528_p11 = pnand %p3526_p10, %p4395_p8  ;;  %p3535_p2 = por %p3534_p0, %p3533_p13 }
  0x5b   : > { %p3529_p12 = pneg %p3528_p11 }
  0x5d   : > { %p3536_p5 = pnand %p3535_p2, %p3529_p12 }
  0x5f   : > { %3539 = shalt.err (!%p3536_p5)
}
  0x60   : > { %s5263_s25 = smov 64   ;;  %s5265_s26 = smov 4  }
  0x61   : > { %3253 = dma.hbm_to_vmem [thread:$0]  (!%p4381_p6), %s5302_s24, 256, %s4377_s30, [#allocation9], %s5263_s25, %s5263_s25, %s5265_s26  }
  0x62   : > { %s5303_s29 = sld [smem:[#allocation61_spill]] }
  0x68   : > { %s3540_s22 = scalar_lea.hbm %s5303_s29, 16 }
  0x69   : > { %p3541_p7 = scmp.ne.s32.totalorder %s5303_s29, %s3540_s22  ;;  %p3547_p1 = scmp.lt.u32.totalorder %s3540_s22, %s5303_s29 }
  0x6b   : > { %p3543_p9 = pnand %p3541_p7, %p4395_p8 }
  0x6d   : > { %p3544_p4 = pneg %p3543_p9 }
  0x6f   : > { %p3549_p3 = pnand %p3547_p1, %p3544_p4 }
  0x71   : > { %3552 = shalt.err (!%p3549_p3)
}
  0x72   : > { %s3553_s30 = scalar_lea.vmem %s4385_s23, 16  ;;  %s3560_s27 = scalar_lea.vmem %s4385_s23, 32 }
  0x73   : > { %p3554_p10 = scmp.ne.s32.totalorder %s4385_s23, %s3553_s30  ;;  %p3561_p13 = scmp.lt.s32.totalorder %s4385_s23, %s4385_s23 }
  0x74   : > { %p3562_p0 = scmp.lt.s32.totalorder %s3560_s27, %s3553_s30 }
  0x75   : > { %p3556_p11 = pnand %p3554_p10, %p4395_p8 }
  0x76   : > { %p3563_p2 = por %p3562_p0, %p3561_p13 }
  0x77   : > { %p3557_p12 = pneg %p3556_p11 }
  0x79   : > { %p3564_p5 = pnand %p3563_p2, %p3557_p12 }
  0x7b   : > { %3567 = shalt.err (!%p3564_p5)
}
  0x7c   : > { %3256 = dma.hbm_to_vmem [thread:$0]  (!%p4381_p6), %s5303_s29, 16, %s4385_s23, [#allocation12]  }
  0x7d   : > { %s4199_s2 = smov [#allocation14]   ;;  %s4200_s21 = smov [#allocation17]  }
  0x7e   : > { %s599_s0 = sshll.u32 %s4199_s2, 4  ;;  %s620_s22 = sshll.u32 %s4200_s21, 4  ;;  %s600_s0 = int_to_ptr.vmem [resolvable:$true] %s599_s0  ;;  %s621_s22 = int_to_ptr.vmem [resolvable:$true] %s620_s22 }
  0x7f   : > { %s5304_s7 = sld [smem:[#allocation63_spill]] }
  0x85   : > { %s3568_s30 = scalar_lea.hbm %s5304_s7, 16 }
  0x86   : > { %p3569_p7 = scmp.ne.s32.totalorder %s5304_s7, %s3568_s30  ;;  %p3575_p1 = scmp.lt.u32.totalorder %s3568_s30, %s5304_s7 }
  0x88   : > { %p3571_p9 = pnand %p3569_p7, %p4395_p8 }
  0x8a   : > { %p3572_p4 = pneg %p3571_p9 }
  0x8c   : > { %p3577_p3 = pnand %p3575_p1, %p3572_p4 }
  0x8e   : > { %3580 = shalt.err (!%p3577_p3)
}
  0x8f   : > { %s3581_s23 = scalar_lea.vmem %s600_s0, 16  ;;  %s3588_s3 = scalar_lea.vmem %s600_s0, 32 }
  0x90   : > { %p3582_p10 = scmp.ne.s32.totalorder %s600_s0, %s3581_s23  ;;  %p3589_p13 = scmp.lt.s32.totalorder %s600_s0, %s600_s0 }
  0x91   : > { %p3590_p0 = scmp.lt.s32.totalorder %s3588_s3, %s3581_s23 }
  0x92   : > { %p3584_p11 = pnand %p3582_p10, %p4395_p8 }
  0x93   : > { %p3591_p2 = por %p3590_p0, %p3589_p13 }
  0x94   : > { %p3585_p12 = pneg %p3584_p11 }
  0x96   : > { %p3592_p5 = pnand %p3591_p2, %p3585_p12 }
  0x98   : > { %3595 = shalt.err (!%p3592_p5)
}
  0x99   : > { %3262 = dma.hbm_to_vmem [thread:$0]  (!%p4381_p6), %s5304_s7, 16, %s600_s0, [#allocation15]  }
  0x9a   : > { %s5305_s9 = sld [smem:[#allocation65_spill]] }
  0xa0   : > { %s3596_s1 = scalar_lea.hbm %s5305_s9, 256 }
  0xa1   : > { %p3597_p7 = scmp.ne.s32.totalorder %s5305_s9, %s3596_s1  ;;  %p3603_p1 = scmp.lt.u32.totalorder %s3596_s1, %s5305_s9 }
  0xa3   : > { %p3599_p9 = pnand %p3597_p7, %p4395_p8 }
  0xa5   : > { %p3600_p4 = pneg %p3599_p9 }
  0xa7   : > { %p3605_p3 = pnand %p3603_p1, %p3600_p4 }
  0xa9   : > { %3608 = shalt.err (!%p3605_p3)
}
  0xaa   : > { %s3609_s23 = scalar_lea.vmem %s621_s22, 256  ;;  %p3617_p13 = scmp.lt.s32.totalorder %s621_s22, %s621_s22 }
  0xab   : > { %p3610_p10 = scmp.ne.s32.totalorder %s621_s22, %s3609_s23  ;;  %p3618_p0 = scmp.lt.s32.totalorder %s3609_s23, %s3609_s23 }
  0xad   : > { %p3612_p11 = pnand %p3610_p10, %p4395_p8  ;;  %p3619_p2 = por %p3618_p0, %p3617_p13 }
  0xaf   : > { %p3613_p12 = pneg %p3612_p11 }
  0xb1   : > { %p3620_p5 = pnand %p3619_p2, %p3613_p12 }
  0xb3   : > { %3623 = shalt.err (!%p3620_p5)
}
  0xb4   : > { %s5306_s0 = smov 4   ;;  %s5307_s3 = smov 64  }
  0xb5   : > { %3268 = dma.hbm_to_vmem [thread:$0]  (!%p4381_p6), %s5305_s9, 256, %s621_s22, [#allocation18], %s5307_s3, %s5307_s3, %s5306_s0  }
  0xb6   : > { %s4201_s26 = smov [#allocation20]   ;;  %s4202_s1 = smov [#allocation23]  }
  0xb7   : > { %s644_s21 = sshll.u32 %s4201_s26, 4  ;;  %s668_s28 = sshll.u32 %s4202_s1, 4  ;;  %s645_s21 = int_to_ptr.vmem [resolvable:$true] %s644_s21  ;;  %s669_s28 = int_to_ptr.vmem [resolvable:$true] %s668_s28 }
  0xb8   : > { %s5308_s11 = sld [smem:[#allocation67_spill]] }
  0xbe   : > { %s3624_s20 = scalar_lea.hbm %s5308_s11, 256 }
  0xbf   : > { %p3625_p7 = scmp.ne.s32.totalorder %s5308_s11, %s3624_s20  ;;  %p3631_p1 = scmp.lt.u32.totalorder %s3624_s20, %s5308_s11 }
  0xc1   : > { %p3627_p9 = pnand %p3625_p7, %p4395_p8 }
  0xc3   : > { %p3628_p4 = pneg %p3627_p9 }
  0xc5   : > { %p3633_p3 = pnand %p3631_p1, %p3628_p4 }
  0xc7   : > { %3636 = shalt.err (!%p3633_p3)
}
  0xc8   : > { %s3637_s22 = scalar_lea.vmem %s645_s21, 256  ;;  %p3645_p13 = scmp.lt.s32.totalorder %s645_s21, %s645_s21 }
  0xc9   : > { %p3638_p10 = scmp.ne.s32.totalorder %s645_s21, %s3637_s22  ;;  %p3646_p0 = scmp.lt.s32.totalorder %s3637_s22, %s3637_s22 }
  0xcb   : > { %p3640_p11 = pnand %p3638_p10, %p4395_p8  ;;  %p3647_p2 = por %p3646_p0, %p3645_p13 }
  0xcd   : > { %p3641_p12 = pneg %p3640_p11 }
  0xcf   : > { %p3648_p5 = pnand %p3647_p2, %p3641_p12 }
  0xd1   : > { %3651 = shalt.err (!%p3648_p5)
}
  0xd2   : > { %3274 = dma.hbm_to_vmem [thread:$0]  (!%p4381_p6), %s5308_s11, 256, %s645_s21, [#allocation21], %s5307_s3, %s5307_s3, %s5306_s0  }
  0xd3   : > { %s5309_s13 = sld [smem:[#allocation69_spill]] }
  0xd9   : > { %s3652_s1 = scalar_lea.hbm %s5309_s13, 256 }
  0xda   : > { %p3653_p7 = scmp.ne.s32.totalorder %s5309_s13, %s3652_s1  ;;  %p3659_p1 = scmp.lt.u32.totalorder %s3652_s1, %s5309_s13 }
  0xdc   : > { %p3655_p9 = pnand %p3653_p7, %p4395_p8 }
  0xde   : > { %p3656_p4 = pneg %p3655_p9 }
  0xe0   : > { %p3661_p3 = pnand %p3659_p1, %p3656_p4 }
  0xe2   : > { %3664 = shalt.err (!%p3661_p3)
}
  0xe3   : > { %s3665_s25 = scalar_lea.vmem %s669_s28, 256  ;;  %p3673_p13 = scmp.lt.s32.totalorder %s669_s28, %s669_s28 }
  0xe4   : > { %p3666_p10 = scmp.ne.s32.totalorder %s669_s28, %s3665_s25  ;;  %p3674_p0 = scmp.lt.s32.totalorder %s3665_s25, %s3665_s25 }
  0xe6   : > { %p3668_p11 = pnand %p3666_p10, %p4395_p8  ;;  %p3675_p2 = por %p3674_p0, %p3673_p13 }
  0xe8   : > { %p3669_p12 = pneg %p3668_p11 }
  0xea   : > { %p3676_p5 = pnand %p3675_p2, %p3669_p12 }
  0xec   : > { %3679 = shalt.err (!%p3676_p5)
}
  0xed   : > { %3280 = dma.hbm_to_vmem [thread:$0]  (!%p4381_p6), %s5309_s13, 256, %s669_s28, [#allocation24], %s5307_s3, %s5307_s3, %s5306_s0  }
  0xee   : > { %s4203_s7 = smov [#allocation26]   ;;  %s4204_s2 = smov [#allocation29]  }
  0xef   : > { %s693_s24 = sshll.u32 %s4203_s7, 4  ;;  %s717_s26 = sshll.u32 %s4204_s2, 4  ;;  %s694_s24 = int_to_ptr.vmem [resolvable:$true] %s693_s24  ;;  %s718_s26 = int_to_ptr.vmem [resolvable:$true] %s717_s26 }
  0xf0   : > { %s3680_s27 = scalar_lea.hbm %s5237_s15, 32 }
  0xf1   : > { %p3681_p7 = scmp.ne.s32.totalorder %s5237_s15, %s3680_s27  ;;  %p3687_p1 = scmp.lt.u32.totalorder %s3680_s27, %s5237_s15 }
  0xf3   : > { %p3683_p9 = pnand %p3681_p7, %p4395_p8 }
  0xf5   : > { %p3684_p4 = pneg %p3683_p9 }
  0xf7   : > { %p3689_p3 = pnand %p3687_p1, %p3684_p4 }
  0xf9   : > { %3692 = shalt.err (!%p3689_p3)
}
  0xfa   : > { %s3693_s28 = scalar_lea.vmem %s694_s24, 32  ;;  %p3701_p13 = scmp.lt.s32.totalorder %s694_s24, %s694_s24 }
  0xfb   : > { %p3694_p10 = scmp.ne.s32.totalorder %s694_s24, %s3693_s28  ;;  %p3702_p0 = scmp.lt.s32.totalorder %s3693_s28, %s3693_s28 }
  0xfd   : > { %p3696_p11 = pnand %p3694_p10, %p4395_p8  ;;  %p3703_p2 = por %p3702_p0, %p3701_p13 }
  0xff   : > { %p3697_p12 = pneg %p3696_p11 }
 0x101   : > { %p3704_p5 = pnand %p3703_p2, %p3697_p12 }
 0x103   : > { %3707 = shalt.err (!%p3704_p5)
}
 0x104   : > { %3286 = dma.hbm_to_vmem [thread:$0]  (!%p4381_p6), %s5237_s15, 32, %s694_s24, [#allocation27]  }
 0x105   : > { %s3708_s30 = scalar_lea.hbm %s5239_s17, 16 }
 0x106   : > { %p3709_p7 = scmp.ne.s32.totalorder %s5239_s17, %s3708_s30  ;;  %p3715_p1 = scmp.lt.u32.totalorder %s3708_s30, %s5239_s17 }
 0x108   : > { %p3711_p9 = pnand %p3709_p7, %p4395_p8 }
 0x10a   : > { %p3712_p4 = pneg %p3711_p9 }
 0x10c   : > { %p3717_p3 = pnand %p3715_p1, %p3712_p4 }
 0x10e   : > { %3720 = shalt.err (!%p3717_p3)
}
 0x10f   : > { %s3721_s21 = scalar_lea.vmem %s718_s26, 16  ;;  %s3728_s24 = scalar_lea.vmem %s718_s26, 32 }
 0x110   : > { %p3722_p10 = scmp.ne.s32.totalorder %s718_s26, %s3721_s21  ;;  %p3729_p13 = scmp.lt.s32.totalorder %s718_s26, %s718_s26 }
 0x111   : > { %p3730_p0 = scmp.lt.s32.totalorder %s3728_s24, %s3721_s21 }
 0x112   : > { %p3724_p11 = pnand %p3722_p10, %p4395_p8 }
 0x113   : > { %p3731_p2 = por %p3730_p0, %p3729_p13 }
 0x114   : > { %p3725_p12 = pneg %p3724_p11 }
 0x116   : > { %p3732_p5 = pnand %p3731_p2, %p3725_p12 }
 0x118   : > { %3735 = shalt.err (!%p3732_p5)
}
 0x119   : > { %3292 = dma.hbm_to_vmem [thread:$0]  (!%p4381_p6), %s5239_s17, 16, %s718_s26, [#allocation30]  }
 0x11a   : > { %s4205_s7 = smov [#allocation32]   ;;  %s4206_s1 = smov [#allocation13]  }
 0x11b   : > { %s741_s2 = sshll.u32 %s4205_s7, 4  ;;  %s585_s30 = sshll.u32 %s4206_s1, 4  ;;  %s742_s2 = int_to_ptr.vmem [resolvable:$true] %s741_s2  ;;  %s586_s30 = int_to_ptr.vmem [resolvable:$true] %s585_s30 }
 0x11c   : > { %s3736_s23 = scalar_lea.hbm %s5241_s19, 16 }
 0x11d   : > { %p3737_p7 = scmp.ne.s32.totalorder %s5241_s19, %s3736_s23  ;;  %p3743_p1 = scmp.lt.u32.totalorder %s3736_s23, %s5241_s19 }
 0x11f   : > { %p3739_p9 = pnand %p3737_p7, %p4395_p8 }
 0x121   : > { %p3740_p4 = pneg %p3739_p9 }
 0x123   : > { %p3745_p3 = pnand %p3743_p1, %p3740_p4 }
 0x125   : > { %3748 = shalt.err (!%p3745_p3)
}
 0x126   : > { %s3749_s26 = scalar_lea.vmem %s742_s2, 16  ;;  %s3756_s22 = scalar_lea.vmem %s742_s2, 32 }
 0x127   : > { %p3750_p10 = scmp.ne.s32.totalorder %s742_s2, %s3749_s26  ;;  %p3757_p13 = scmp.lt.s32.totalorder %s742_s2, %s742_s2 }
 0x128   : > { %p3758_p0 = scmp.lt.s32.totalorder %s3756_s22, %s3749_s26 }
 0x129   : > { %p3752_p11 = pnand %p3750_p10, %p4395_p8 }
 0x12a   : > { %p3759_p2 = por %p3758_p0, %p3757_p13 }
 0x12b   : > { %p3753_p12 = pneg %p3752_p11 }
 0x12d   : > { %p3760_p5 = pnand %p3759_p2, %p3753_p12 }
 0x12f   : > { %3763 = shalt.err (!%p3760_p5)
}
 0x130   : > { %3298 = dma.hbm_to_vmem [thread:$0]  (!%p4381_p6), %s5241_s19, 16, %s742_s2, [#allocation33]  }
 0x131   : > { %s5310_s6 = sld [smem:[#allocation62_spill]] }
 0x137   : > { %s3764_s23 = scalar_lea.hbm %s5310_s6, 256 }
 0x138   : > { %p3765_p7 = scmp.ne.s32.totalorder %s5310_s6, %s3764_s23  ;;  %p3771_p1 = scmp.lt.u32.totalorder %s3764_s23, %s5310_s6 }
 0x13a   : > { %p3767_p9 = pnand %p3765_p7, %p4395_p8 }
 0x13c   : > { %p3768_p4 = pneg %p3767_p9 }
 0x13e   : > { %p3773_p3 = pnand %p3771_p1, %p3768_p4 }
 0x140   : > { %3776 = shalt.err (!%p3773_p3)
}
 0x141   : > { %s3777_s26 = scalar_lea.vmem %s586_s30, 256  ;;  %p3785_p13 = scmp.lt.s32.totalorder %s586_s30, %s586_s30 }
 0x142   : > { %p3778_p10 = scmp.ne.s32.totalorder %s586_s30, %s3777_s26  ;;  %p3786_p0 = scmp.lt.s32.totalorder %s3777_s26, %s3777_s26 }
 0x144   : > { %p3780_p11 = pnand %p3778_p10, %p4395_p8  ;;  %p3787_p2 = por %p3786_p0, %p3785_p13 }
 0x146   : > { %p3781_p12 = pneg %p3780_p11 }
 0x148   : > { %p3788_p5 = pnand %p3787_p2, %p3781_p12 }
 0x14a   : > { %3791 = shalt.err (!%p3788_p5)
}
 0x14b   : > { %3259 = dma.hbm_to_vmem [thread:$0]  (!%p4381_p6), %s5310_s6, 256, %s586_s30, [#allocation12], %s5307_s3, %s5307_s3, %s5306_s0  }
 0x14c   : > { %s4207_s7 = smov [#allocation16]   ;;  %s4208_s27 = smov [#allocation19]  }
 0x14d   : > { %s610_s1 = sshll.u32 %s4207_s7, 4  ;;  %s634_s20 = sshll.u32 %s4208_s27, 4  ;;  %s611_s1 = int_to_ptr.vmem [resolvable:$true] %s610_s1  ;;  %s635_s20 = int_to_ptr.vmem [resolvable:$true] %s634_s20 }
 0x14e   : > { %s5311_s8 = sld [smem:[#allocation64_spill]] }
 0x154   : > { %s3792_s21 = scalar_lea.hbm %s5311_s8, 32 }
 0x155   : > { %p3793_p7 = scmp.ne.s32.totalorder %s5311_s8, %s3792_s21  ;;  %p3799_p1 = scmp.lt.u32.totalorder %s3792_s21, %s5311_s8 }
 0x157   : > { %p3795_p9 = pnand %p3793_p7, %p4395_p8 }
 0x159   : > { %p3796_p4 = pneg %p3795_p9 }
 0x15b   : > { %p3801_p3 = pnand %p3799_p1, %p3796_p4 }
 0x15d   : > { %3804 = shalt.err (!%p3801_p3)
}
 0x15e   : > { %s3805_s30 = scalar_lea.vmem %s611_s1, 32  ;;  %p3813_p13 = scmp.lt.s32.totalorder %s611_s1, %s611_s1 }
 0x15f   : > { %p3806_p10 = scmp.ne.s32.totalorder %s611_s1, %s3805_s30  ;;  %p3814_p0 = scmp.lt.s32.totalorder %s3805_s30, %s3805_s30 }
 0x161   : > { %p3808_p11 = pnand %p3806_p10, %p4395_p8  ;;  %p3815_p2 = por %p3814_p0, %p3813_p13 }
 0x163   : > { %p3809_p12 = pneg %p3808_p11 }
 0x165   : > { %p3816_p5 = pnand %p3815_p2, %p3809_p12 }
 0x167   : > { %3819 = shalt.err (!%p3816_p5)
}
 0x168   : > { %3265 = dma.hbm_to_vmem [thread:$0]  (!%p4381_p6), %s5311_s8, 32, %s611_s1, [#allocation15]  }
 0x169   : > { %s5312_s10 = sld [smem:[#allocation66_spill]] }
 0x16f   : > { %s3820_s25 = scalar_lea.hbm %s5312_s10, 16 }
 0x170   : > { %p3821_p7 = scmp.ne.s32.totalorder %s5312_s10, %s3820_s25  ;;  %p3827_p1 = scmp.lt.u32.totalorder %s3820_s25, %s5312_s10 }
 0x172   : > { %p3823_p9 = pnand %p3821_p7, %p4395_p8 }
 0x174   : > { %p3824_p4 = pneg %p3823_p9 }
 0x176   : > { %p3829_p3 = pnand %p3827_p1, %p3824_p4 }
 0x178   : > { %3832 = shalt.err (!%p3829_p3)
}
 0x179   : > { %s3833_s2 = scalar_lea.vmem %s635_s20, 16  ;;  %s3840_s1 = scalar_lea.vmem %s635_s20, 32 }
 0x17a   : > { %p3834_p10 = scmp.ne.s32.totalorder %s635_s20, %s3833_s2  ;;  %p3841_p13 = scmp.lt.s32.totalorder %s635_s20, %s635_s20 }
 0x17b   : > { %p3842_p0 = scmp.lt.s32.totalorder %s3840_s1, %s3833_s2 }
 0x17c   : > { %p3836_p11 = pnand %p3834_p10, %p4395_p8 }
 0x17d   : > { %p3843_p2 = por %p3842_p0, %p3841_p13 }
 0x17e   : > { %p3837_p12 = pneg %p3836_p11 }
 0x180   : > { %p3844_p5 = pnand %p3843_p2, %p3837_p12 }
 0x182   : > { %3847 = shalt.err (!%p3844_p5)
}
 0x183   : > { %3271 = dma.hbm_to_vmem [thread:$0]  (!%p4381_p6), %s5312_s10, 16, %s635_s20, [#allocation18]  }
 0x184   : > { %s4209_s7 = smov [#allocation22]   ;;  %s4210_s23 = smov [#allocation25]  }
 0x185   : > { %s658_s27 = sshll.u32 %s4209_s7, 4  ;;  %s682_s25 = sshll.u32 %s4210_s23, 4  ;;  %s659_s27 = int_to_ptr.vmem [resolvable:$true] %s658_s27  ;;  %s683_s25 = int_to_ptr.vmem [resolvable:$true] %s682_s25 }
 0x186   : > { %s5313_s12 = sld [smem:[#allocation68_spill]] }
 0x18c   : > { %s3848_s28 = scalar_lea.hbm %s5313_s12, 16 }
 0x18d   : > { %p3849_p7 = scmp.ne.s32.totalorder %s5313_s12, %s3848_s28  ;;  %p3855_p1 = scmp.lt.u32.totalorder %s3848_s28, %s5313_s12 }
 0x18f   : > { %p3851_p9 = pnand %p3849_p7, %p4395_p8 }
 0x191   : > { %p3852_p4 = pneg %p3851_p9 }
 0x193   : > { %p3857_p3 = pnand %p3855_p1, %p3852_p4 }
 0x195   : > { %3860 = shalt.err (!%p3857_p3)
}
 0x196   : > { %s3861_s20 = scalar_lea.vmem %s659_s27, 16  ;;  %s3868_s22 = scalar_lea.vmem %s659_s27, 32 }
 0x197   : > { %p3862_p10 = scmp.ne.s32.totalorder %s659_s27, %s3861_s20  ;;  %p3869_p13 = scmp.lt.s32.totalorder %s659_s27, %s659_s27 }
 0x198   : > { %p3870_p0 = scmp.lt.s32.totalorder %s3868_s22, %s3861_s20 }
 0x199   : > { %p3864_p11 = pnand %p3862_p10, %p4395_p8 }
 0x19a   : > { %p3871_p2 = por %p3870_p0, %p3869_p13 }
 0x19b   : > { %p3865_p12 = pneg %p3864_p11 }
 0x19d   : > { %p3872_p5 = pnand %p3871_p2, %p3865_p12 }
 0x19f   : > { %3875 = shalt.err (!%p3872_p5)
}
 0x1a0   : > { %3277 = dma.hbm_to_vmem [thread:$0]  (!%p4381_p6), %s5313_s12, 16, %s659_s27, [#allocation21]  }
 0x1a1   : > { %s5314_s14 = sld [smem:[#allocation70_spill]] }
 0x1a7   : > { %s3876_s28 = scalar_lea.hbm %s5314_s14, 16 }
 0x1a8   : > { %p3877_p7 = scmp.ne.s32.totalorder %s5314_s14, %s3876_s28  ;;  %p3883_p1 = scmp.lt.u32.totalorder %s3876_s28, %s5314_s14 }
 0x1aa   : > { %p3879_p9 = pnand %p3877_p7, %p4395_p8 }
 0x1ac   : > { %p3880_p4 = pneg %p3879_p9 }
 0x1ae   : > { %p3885_p3 = pnand %p3883_p1, %p3880_p4 }
 0x1b0   : > { %3888 = shalt.err (!%p3885_p3)
}
 0x1b1   : > { %s3889_s20 = scalar_lea.vmem %s683_s25, 16  ;;  %s3896_s27 = scalar_lea.vmem %s683_s25, 32 }
 0x1b2   : > { %p3890_p10 = scmp.ne.s32.totalorder %s683_s25, %s3889_s20  ;;  %p3897_p13 = scmp.lt.s32.totalorder %s683_s25, %s683_s25 }
 0x1b3   : > { %p3898_p0 = scmp.lt.s32.totalorder %s3896_s27, %s3889_s20 }
 0x1b4   : > { %p3892_p11 = pnand %p3890_p10, %p4395_p8 }
 0x1b5   : > { %p3899_p2 = por %p3898_p0, %p3897_p13 }
 0x1b6   : > { %p3893_p12 = pneg %p3892_p11 }
 0x1b8   : > { %p3900_p5 = pnand %p3899_p2, %p3893_p12 }
 0x1ba   : > { %3903 = shalt.err (!%p3900_p5)
}
 0x1bb   : > { %3283 = dma.hbm_to_vmem [thread:$0]  (!%p4381_p6), %s5314_s14, 16, %s683_s25, [#allocation24]  }
 0x1bc   : > { %s4211_s23 = smov [#allocation28]   ;;  %s4212_s24 = smov [#allocation31]  }
 0x1bd   : > { %s703_s21 = sshll.u32 %s4211_s23, 4  ;;  %s727_s28 = sshll.u32 %s4212_s24, 4  ;;  %s704_s21 = int_to_ptr.vmem [resolvable:$true] %s703_s21  ;;  %s728_s28 = int_to_ptr.vmem [resolvable:$true] %s727_s28 }
 0x1be   : > { %s3904_s1 = scalar_lea.hbm %s5238_s16, 256 }
 0x1bf   : > { %p3905_p7 = scmp.ne.s32.totalorder %s5238_s16, %s3904_s1  ;;  %p3911_p1 = scmp.lt.u32.totalorder %s3904_s1, %s5238_s16 }
 0x1c1   : > { %p3907_p9 = pnand %p3905_p7, %p4395_p8 }
 0x1c3   : > { %p3908_p4 = pneg %p3907_p9 }
 0x1c5   : > { %p3913_p3 = pnand %p3911_p1, %p3908_p4 }
 0x1c7   : > { %3916 = shalt.err (!%p3913_p3)
}
 0x1c8   : > { %s3917_s25 = scalar_lea.vmem %s704_s21, 256  ;;  %p3925_p13 = scmp.lt.s32.totalorder %s704_s21, %s704_s21 }
 0x1c9   : > { %p3918_p10 = scmp.ne.s32.totalorder %s704_s21, %s3917_s25  ;;  %p3926_p0 = scmp.lt.s32.totalorder %s3917_s25, %s3917_s25 }
 0x1cb   : > { %p3920_p11 = pnand %p3918_p10, %p4395_p8  ;;  %p3927_p2 = por %p3926_p0, %p3925_p13 }
 0x1cd   : > { %p3921_p12 = pneg %p3920_p11 }
 0x1cf   : > { %p3928_p5 = pnand %p3927_p2, %p3921_p12 }
 0x1d1   : > { %3931 = shalt.err (!%p3928_p5)
}
 0x1d2   : > { %3289 = dma.hbm_to_vmem [thread:$0]  (!%p4381_p6), %s5238_s16, 256, %s704_s21, [#allocation27], %s5307_s3, %s5307_s3, %s5306_s0  }
 0x1d3   : > { %s3932_s2 = scalar_lea.hbm %s5240_s18, 1024 }
 0x1d4   : > { %p3933_p7 = scmp.ne.s32.totalorder %s5240_s18, %s3932_s2  ;;  %p3939_p1 = scmp.lt.u32.totalorder %s3932_s2, %s5240_s18 }
 0x1d6   : > { %p3935_p9 = pnand %p3933_p7, %p4395_p8 }
 0x1d8   : > { %p3936_p4 = pneg %p3935_p9 }
 0x1da   : > { %p3941_p3 = pnand %p3939_p1, %p3936_p4 }
 0x1dc   : > { %3944 = shalt.err (!%p3941_p3)
}
 0x1dd   : > { %s3945_s22 = scalar_lea.vmem %s728_s28, 1024  ;;  %p3953_p13 = scmp.lt.s32.totalorder %s728_s28, %s728_s28 }
 0x1de   : > { %p3946_p10 = scmp.ne.s32.totalorder %s728_s28, %s3945_s22  ;;  %p3954_p0 = scmp.lt.s32.totalorder %s3945_s22, %s3945_s22 }
 0x1e0   : > { %p3948_p11 = pnand %p3946_p10, %p4395_p8  ;;  %p3955_p2 = por %p3954_p0, %p3953_p13 }
 0x1e2   : > { %p3949_p12 = pneg %p3948_p11 }
 0x1e4   : > { %p3956_p5 = pnand %p3955_p2, %p3949_p12 }
 0x1e6   : > { %3959 = shalt.err (!%p3956_p5)
}
 0x1e7   : > { %3295 = dma.hbm_to_vmem [thread:$0]  (!%p4381_p6), %s5240_s18, 1024, %s728_s28, [#allocation30], %s5307_s3, %s5307_s3, %s5306_s0  }
 0x1e8   : > { %s4213_s7 = smov [#allocation34]   ;;  %s5315_s2 = sld [smem:[#allocation71_spill]] }
 0x1e9   : > { %s752_s23 = sshll.u32 %s4213_s7, 4  ;;  %s753_s23 = int_to_ptr.vmem [resolvable:$true] %s752_s23 }
 0x1ee   : > { %s5316_s1 = smov %s5315_s2  ;;  %s3960_s30 = scalar_lea.hbm %s5315_s2, 32 }
 0x1ef   : > { %p3961_p7 = scmp.ne.s32.totalorder %s5316_s1, %s3960_s30  ;;  %p3967_p1 = scmp.lt.u32.totalorder %s3960_s30, %s5316_s1 }
 0x1f1   : > { %p3963_p9 = pnand %p3961_p7, %p4395_p8 }
 0x1f3   : > { %p3964_p4 = pneg %p3963_p9 }
 0x1f5   : > { %p3969_p3 = pnand %p3967_p1, %p3964_p4 }
 0x1f7   : > { %3972 = shalt.err (!%p3969_p3)
}
 0x1f8   : > { %s3973_s0 = scalar_lea.vmem %s753_s23, 32  ;;  %p3981_p13 = scmp.lt.s32.totalorder %s753_s23, %s753_s23 }
 0x1f9   : > { %p3974_p10 = scmp.ne.s32.totalorder %s753_s23, %s3973_s0  ;;  %p3982_p0 = scmp.lt.s32.totalorder %s3973_s0, %s3973_s0 }
 0x1fb   : > { %p3976_p11 = pnand %p3974_p10, %p4395_p8  ;;  %p3983_p2 = por %p3982_p0, %p3981_p13 }
 0x1fd   : > { %p3977_p12 = pneg %p3976_p11 }
 0x1ff   : > { %p3984_p5 = pnand %p3983_p2, %p3977_p12 }
 0x201   : > { %3987 = shalt.err (!%p3984_p5)
}
 0x202   : > { %s5317_s6 = sld [smem:[#allocation53_spill]]  ;;  %s5318_s21 = sld [smem:[#allocation52_spill]] }
 0x203   : > { %s5319_s25 = sld [smem:[#allocation51_spill]]  ;;  %s5320_s4 = sld [smem:[#allocation50_spill]] }
 0x204   : > { %s5321_s7 = sld [smem:[#allocation54_spill]]  ;;  %s5329_s9 = sld [smem:[#allocation57_spill]] }
 0x205   : > { %3301 = dma.hbm_to_vmem [thread:$0]  (!%p4381_p6), %s5316_s1, 32, %s753_s23, [#allocation33]  }
 0x208   : > { %s2836_s24 = sadd.s32 4294967294, %s5317_s6   ;;  %s4751_s27 = sadd.s32 1, %s5317_s6  }
 0x209   : > { %s55_s5 = ssub.s32 %s5317_s6, %s4751_s27  ;;  %s58_s26 = sadd.s32 1, %s5318_s21 }
 0x20a   : > { %p56_p8 = scmp.eq.s32.totalorder %s55_s5, 0  ;;  %p65_p7 = scmp.ne.s32.totalorder %s5318_s21, %s5319_s25 }
 0x20b   : > { %p66_p9 = scmp.eq.s32.totalorder %s5317_s6, 0  ;;  %p71_p4 = scmp.ne.s32.totalorder %s5319_s25, %s5320_s4 }
 0x20c   : > { %s4762_s2 = scalar_select %p56_p8, %s5318_s21, %s58_s26  }
 0x20d   : > { %p4764_p1 = por %p66_p9, %p65_p7  ;;  %p5323_p3 = scmp.eq.s32.totalorder %s5321_s7, 0 }
 0x20e   : > { %p525_p10 = scmp.eq.s32.totalorder %s5321_s7, 1  ;;  %p531_p11 = scmp.eq.s32.totalorder %s2836_s24, 1 }
 0x20f   : > { %p4770_p6 = por %p5323_p3, %p71_p4  ;;  %p3334_p12 = scmp.lt.s32.totalorder %s5317_s6, 2 }
 0x210   : > { %s4777_s20 = sand.u32 1, %s5318_s21   ;;  %p4779_p13 = por %p525_p10, %p65_p7 }
 0x211   : > { %s5324_s23 = scalar_select %p4770_p6, 1, 0 }
 0x212   : > { %s5325_s22 = scalar_select %p4779_p13, 1, 0 }
 0x213   : > { %p4783_p0 = por %p531_p11, %p71_p4  ;;  %s5269_s3 = sshll.u32 %s4777_s20, 2 }
 0x214   : > { %s2858_s28 = sshll.u32 %s5317_s6, 6  ;;  %s5327_s7 = sld [smem:[#allocation56_spill]] }
 0x215   : > { %s5326_s0 = scalar_select %p4783_p0, 1, 0 }
 0x216   : > { %s767_s21 = scalar_lea.vmem [#allocation2], %s5269_s3  ;;  %p4800_p2 = pnand %p3334_p12, %p4764_p1 }
 0x217   : > { %s774_s5 = sshll.u32 %s767_s21, 4  ;;  %s4807_s25 = scalar_lea.hbm %s5329_s9, %s2858_s28  ;;  %s4796_s5 = int_to_ptr.vmem [resolvable:$true] %s774_s5 }
 0x218   : > { %s5328_s26 = scalar_select %p4800_p2, 1, 0 }
 0x219   : > { %s764_s10 = scalar_lea.sflag [#allocation3], %s4777_s20  ;;  %p4815_p8 = pneg %p4800_p2 }
 0x21a   : > { %s4792_s24 = scalar_lea.hbm %s5327_s7, %s2858_s28  ;;  %s3993_s8 = scalar_lea.hbm %s5327_s7, 128 }
 0x21b   : > { %s3988_s11 = scalar_lea.hbm %s4792_s24, 64  ;;  %p3994_p4 = scmp.lt.u32.totalorder %s4792_s24, %s5327_s7 }
 0x21c   : > { %p3989_p5 = scmp.ne.s32.totalorder %s4792_s24, %s3988_s11  ;;  %p3995_p1 = scmp.lt.u32.totalorder %s3993_s8, %s3988_s11 }
 0x21d   : > { %p3997_p10 = scmp.lt.u32.totalorder %s3988_s11, %s4792_s24 }
 0x21e   : > { %p3991_p7 = pnand %p4815_p8, %p3989_p5  ;;  %p3996_p3 = por %p3995_p1, %p3994_p4 }
 0x220   : > { %p3992_p9 = pneg %p3991_p7  ;;  %p3998_p11 = por %p3997_p10, %p3996_p3 }
 0x222   : > { %p3999_p12 = pnand %p3998_p11, %p3992_p9 }
 0x224   : > { %4002 = shalt.err (!%p3999_p12)
}
 0x225   : > { %s4003_s4 = scalar_lea.vmem %s4796_s5, 64  ;;  %s4214_s3 = smov [#allocation2]  }
 0x226   : > { %p4004_p5 = scmp.ne.s32.totalorder %s4796_s5, %s4003_s4  ;;  %s4008_s30 = sshll.u32 %s4214_s3, 4  ;;  %s4009_s30 = int_to_ptr.vmem [resolvable:$false] %s4008_s30 }
 0x227   : > { %s4010_s1 = scalar_lea.vmem %s4009_s30, 128  ;;  %p4011_p13 = scmp.lt.s32.totalorder %s4796_s5, %s4009_s30 }
 0x228   : > { %p4006_p7 = pnand %p4004_p5, %p4815_p8  ;;  %p4012_p6 = scmp.lt.s32.totalorder %s4010_s1, %s4003_s4 }
 0x22a   : > { %p4007_p0 = pneg %p4006_p7  ;;  %p4013_p4 = por %p4012_p6, %p4011_p13 }
 0x22c   : > { %p4014_p1 = pnand %p4013_p4, %p4007_p0 }
 0x22e   : > { %4017 = shalt.err (!%p4014_p1)
}
 0x22f   : > { %3305 = dma.hbm_to_vmem [thread:$0]  (!%p4800_p2), %s4792_s24, 64, %s4796_s5, %s764_s10  }
 0x230   : > { %s5331_s11 = sshll.u32 %s4777_s20, 2  ;;  %s5332_s4 = sand.u32 1, %s5317_s6  }
 0x231   : > { %s785_s8 = scalar_lea.vmem [#allocation5], %s5331_s11  ;;  %s782_s3 = scalar_lea.sflag [#allocation6], %s5332_s4 }
 0x232   : > { %s792_s28 = sshll.u32 %s785_s8, 4  ;;  %s4018_s30 = scalar_lea.hbm %s4807_s25, 64  ;;  %s793_s28 = int_to_ptr.vmem [resolvable:$true] %s792_s28 }
 0x233   : > { %p4019_p6 = scmp.ne.s32.totalorder %s4807_s25, %s4018_s30  ;;  %s4023_s12 = scalar_lea.hbm %s5329_s9, 128 }
 0x234   : > { %p4024_p9 = scmp.lt.u32.totalorder %s4807_s25, %s5329_s9  ;;  %p4025_p3 = scmp.lt.u32.totalorder %s4023_s12, %s4018_s30 }
 0x235   : > { %p4021_p13 = pnand %p4019_p6, %p4815_p8  ;;  %p4027_p11 = scmp.lt.u32.totalorder %s4018_s30, %s4807_s25 }
 0x236   : > { %p4026_p10 = por %p4025_p3, %p4024_p9 }
 0x237   : > { %p4022_p0 = pneg %p4021_p13 }
 0x238   : > { %p4028_p12 = por %p4027_p11, %p4026_p10 }
 0x23a   : > { %p4029_p5 = pnand %p4028_p12, %p4022_p0 }
 0x23c   : > { %4032 = shalt.err (!%p4029_p5)
}
 0x23d   : > { %s4033_s10 = scalar_lea.vmem %s793_s28, 64  ;;  %s4215_s24 = smov [#allocation5]  }
 0x23e   : > { %p4034_p7 = scmp.ne.s32.totalorder %s793_s28, %s4033_s10  ;;  %s4038_s5 = sshll.u32 %s4215_s24, 4  ;;  %s4039_s5 = int_to_ptr.vmem [resolvable:$false] %s4038_s5 }
 0x23f   : > { %s4040_s7 = scalar_lea.vmem %s4039_s5, 128  ;;  %p4041_p6 = scmp.lt.s32.totalorder %s793_s28, %s4039_s5 }
 0x240   : > { %p4036_p4 = pnand %p4034_p7, %p4815_p8  ;;  %p4042_p13 = scmp.lt.s32.totalorder %s4040_s7, %s4033_s10 }
 0x242   : > { %p4037_p1 = pneg %p4036_p4  ;;  %p4043_p2 = por %p4042_p13, %p4041_p6 }
 0x244   : > { %p4044_p3 = pnand %p4043_p2, %p4037_p1 }
 0x246   : > { %4047 = shalt.err (!%p4044_p3)
}
 0x247   : > { %p5333_p9 = scmp.ne.s32.totalorder %s5328_s26, 0  ;;  %s2861_s12 = sshll.u32 %s5317_s6, 4 }
 0x248   : > { %s5334_s11 = sld [smem:[#allocation59_spill]]  ;;  %s802_s4 = scalar_lea.vmem [#allocation8], %s4777_s20 }
 0x249   : > { %3308 = dma.hbm_to_vmem [thread:$0]  (!%p5333_p9), %s4807_s25, 64, %s793_s28, %s782_s3  }
 0x24a   : > { %s809_s30 = sshll.u32 %s802_s4, 4  ;;  %s5335_s1 = sand.u32 1, %s5317_s6   ;;  %s810_s30 = int_to_ptr.vmem [resolvable:$true] %s809_s30 }
 0x24b   : > { %s800_s10 = scalar_lea.sflag [#allocation9], %s5335_s1 }
 0x24e   : > { %s4863_s8 = scalar_lea.hbm %s5334_s11, %s2861_s12  ;;  %s4053_s3 = scalar_lea.hbm %s5334_s11, 32 }
 0x24f   : > { %s4048_s24 = scalar_lea.hbm %s4863_s8, 16  ;;  %p4054_p11 = scmp.lt.u32.totalorder %s4863_s8, %s5334_s11 }
 0x250   : > { %p4049_p2 = scmp.ne.s32.totalorder %s4863_s8, %s4048_s24  ;;  %p4055_p12 = scmp.lt.u32.totalorder %s4053_s3, %s4048_s24 }
 0x251   : > { %p4057_p7 = scmp.lt.u32.totalorder %s4048_s24, %s4863_s8 }
 0x252   : > { %p4051_p0 = pnand %p4049_p2, %p4815_p8  ;;  %p4056_p5 = por %p4055_p12, %p4054_p11 }
 0x254   : > { %p4052_p10 = pneg %p4051_p0  ;;  %p4058_p4 = por %p4057_p7, %p4056_p5 }
 0x256   : > { %p4059_p1 = pnand %p4058_p4, %p4052_p10 }
 0x258   : > { %4062 = shalt.err (!%p4059_p1)
}
 0x259   : > { %s4063_s6 = scalar_lea.vmem %s810_s30, 16  ;;  %s4216_s20 = smov [#allocation8]  }
 0x25a   : > { %p4064_p6 = scmp.ne.s32.totalorder %s810_s30, %s4063_s6  ;;  %s4068_s12 = sshll.u32 %s4216_s20, 4  ;;  %s4069_s12 = int_to_ptr.vmem [resolvable:$false] %s4068_s12 }
 0x25b   : > { %s4070_s13 = scalar_lea.vmem %s4069_s12, 32  ;;  %p4071_p2 = scmp.lt.s32.totalorder %s810_s30, %s4069_s12 }
 0x25c   : > { %p4066_p13 = pnand %p4064_p6, %p4815_p8  ;;  %p4072_p0 = scmp.lt.s32.totalorder %s4070_s13, %s4063_s6 }
 0x25e   : > { %p4067_p3 = pneg %p4066_p13  ;;  %p4073_p9 = por %p4072_p0, %p4071_p2 }
 0x260   : > { %p4074_p11 = pnand %p4073_p9, %p4067_p3 }
 0x262   : > { %4077 = shalt.err (!%p4074_p11)
}
 0x263   : > { %p5336_p12 = scmp.ne.s32.totalorder %s5328_s26, 0  ;;  %s5337_s14 = sld [smem:[#allocation55_spill]] }
 0x265   : > { %3311 = dma.hbm_to_vmem [thread:$0]  (!%p5336_p12), %s4863_s8, 16, %s810_s30, %s800_s10  }
 0x269   : > { %p5338_p10 = scmp.ne.s32.totalorder %s5337_s14, 0 }
 0x26a   : > { %s5339_s4 = sld [smem:[#allocation51_spill]] (!%p5338_p10)  ;;  %p5340_p8 = scmp.ne.s32.totalorder (!%p5338_p10), %s5324_s23, 0 }
 0x26b   : > { %818 = sbr.rel (%p5338_p10) target bundleno = 5568 (0x15c0), region = 104 }
 0x270   : > { %s4888_s21 = sand.u32 (!%p5338_p10), 1, %s5339_s4  }
 0x271   : > { %s2863_s1 = sshll.u32 (!%p5338_p10), %s4888_s21, 2  ;;  %s821_s24 = scalar_lea.sflag (!%p5338_p10), [#allocation3], %s4888_s21 }
 0x272   : > { %s4892_s25 = scalar_lea.vmem [#allocation2], %s2863_s1 }
 0x273   : > { %4123 = dma.done.wait (%p5340_p8), %s821_s24, 64  }
 0x274   : > { %4125 = vsyncadd (%p5340_p8), %s821_s24, 4294967232  ;;  %s5341_s26 = sld [smem:[#allocation54_spill]]  ;;  %s4899_s10 = scalar_lea.vmem [#allocation5], %s2863_s1 }
 0x27a   : > { %s829_s8 = sand.u32 1, %s5341_s26  }
 0x27b   : > { %s830_s30 = scalar_lea.sflag [#allocation6], %s829_s8 }
 0x27c   : > { %4127 = dma.done.wait (%p5340_p8), %s830_s30, 64  }
 0x27d   : > { %4129 = vsyncadd (%p5340_p8), %s830_s30, 4294967232  ;;  %p5342_p9 = scmp.eq.s32.totalorder %s5341_s26, 0 }
 0x27f   : > { %4131 = dma.done.wait (%p5342_p9), [#allocation6], 128   ;;  %p5343_p5 = pmov %p5342_p9 }
 0x280   : > { %s843_s28 = scalar_lea.sflag [#allocation9], %s829_s8  ;;  %s845_s3 = scalar_lea.vmem [#allocation8], %s4888_s21 }
 0x281   : > { %4133 = vsyncadd (%p5343_p5), [#allocation6], 4294967168 }
 0x282   : > { %4135 = dma.done.wait (%p5340_p8), %s843_s28, 16  }
 0x283   : > { %4137 = vsyncadd (%p5340_p8), %s843_s28, 4294967280  ;;  %p5344_p7 = pmov %p5343_p5 }
 0x284   : > { %p5345_p4 = pmov %p5343_p5 }
 0x285   : > { %4139 = dma.done.wait (%p5344_p7), [#allocation9], 256  }
 0x286   : > { %4141 = vsyncadd (%p5345_p4), [#allocation9], 4294967040  ;;  %p5346_p1 = pmov %p5345_p4 }
 0x288   : > { %4143 = dma.done.wait (%p5346_p1), [#allocation12], 272   ;;  %p5347_p6 = pmov %p5346_p1 }
 0x289   : > { %p5348_p13 = pmov %p5346_p1 }
 0x28a   : > { %4145 = vsyncadd (%p5347_p6), [#allocation12], 4294967024 }
 0x28b   : > { %4147 = dma.done.wait (%p5348_p13), [#allocation15], 48   ;;  %p5349_p3 = pmov %p5346_p1 }
 0x28c   : > { %p5350_p2 = pmov %p5346_p1 }
 0x28d   : > { %4149 = vsyncadd (%p5349_p3), [#allocation15], 4294967248 }
 0x28e   : > { %4151 = dma.done.wait (%p5350_p2), [#allocation18], 272   ;;  %p5351_p0 = pmov %p5346_p1 }
 0x290   : > { %4153 = vsyncadd (%p5351_p0), [#allocation18], 4294967024  ;;  %p5352_p11 = pmov %p5351_p0 }
 0x291   : > { %p5353_p12 = pmov %p5351_p0 }
 0x292   : > { %4155 = dma.done.wait (%p5352_p11), [#allocation21], 272  }
 0x293   : > { %4157 = vsyncadd (%p5353_p12), [#allocation21], 4294967024  ;;  %p5354_p10 = pmov %p5351_p0 }
 0x294   : > { %p5355_p8 = pmov %p5351_p0 }
 0x295   : > { %4159 = dma.done.wait (%p5354_p10), [#allocation24], 272  }
 0x296   : > { %4161 = vsyncadd (%p5355_p8), [#allocation24], 4294967024  ;;  %p5356_p9 = pmov %p5351_p0 }
 0x297   : > { %p5357_p5 = pmov %p5351_p0 }
 0x298   : > { %4163 = dma.done.wait (%p5356_p9), [#allocation27], 288  }
 0x299   : > { %4165 = vsyncadd (%p5357_p5), [#allocation27], 4294967008  ;;  %p5358_p7 = pmov %p5351_p0 }
 0x29a   : > { %p5359_p4 = pmov %p5351_p0 }
 0x29b   : > { %4167 = dma.done.wait (%p5358_p7), [#allocation30], 1040  }
 0x29c   : > { %4169 = vsyncadd (%p5359_p4), [#allocation30], 4294966256  ;;  %p5360_p1 = pmov %p5351_p0 }
 0x29d   : > { %p5361_p6 = pmov %p5351_p0 }
 0x29e   : > { %4171 = dma.done.wait (%p5360_p1), [#allocation33], 48  }
 0x29f   : > { %4173 = vsyncadd (%p5361_p6), [#allocation33], 4294967248  ;;  %v4217_v0 = vmov 0.0   ;;  %vm4218_vm0 = vmmov 0   ;;  %v3422_v1 = vld [vmem:[#allocation10] sm:$0xff]   ;;  %v3423_v2 = vld [vmem:[#allocation10 + $0x8] sm:$0xff]  }
 0x2a0   : > { %3003 = vmatprep.subr.bf16.mxu1 %v4217_v0  ;;  %3007 = vmatprep.mubr.msk.bf16.mxu1 %vm4218_vm0, %v4217_v0  ;;  %vm1009_vm1 = vcmask 261120   ;;  %v4958_v3 = vld [vmem:[%s4892_s25] sm:$0xf]  ;;  %v2884_v4 = vld [vmem:[#allocation11] ss:$0 sm:$0xff]  ;;  %s4219_s23 = smov 64  }
 0x2a1   : > { %3029 = vmatprep.subr.bf16.mxu0 %v4217_v0  ;;  %3031 = vmatprep.mubr.msk.bf16.mxu0 %vm4218_vm0, %v4217_v0  ;;  %s4220_s5 = smov 96   ;;  %s4221_s7 = smov 88   ;;  %vm1065_vm2 = vcmask 64512   ;;  %vm1131_vm3 = vcmask 1043456   ;;  %v985_v15 = vld [vmem:[#allocation7] sm:$0xff]  ;;  %vm1524_vm4 = vcmask 130048  }
 0x2a2   : > { %3004 = vmatpush3.bf16.msra.mxu1 %v3422_v1  ;;  %v2888_v16 = vld [vmem:[%s845_s3] ss:$0 sm:$0xff]  ;;  %s4222_s6 = smov 72   ;;  %s4223_s20 = smov 120   ;;  %vm1526_vm5 = vcmask 195584  }
 0x2a3   : > { %3005 = vmatprep.subr.bf16.mxu1 %v4217_v0  ;;  %v4982_v17 = vadd.f32 %v2888_v16, %v985_v15  ;;  %s4224_s12 = smov 80   ;;  %s4225_s13 = smov 112  }
 0x2a4   : > { %s4226_s14 = smov 104   ;;  %s4227_s4 = smov 56  }
 0x2a5   : > { %s4228_s1 = smov 48   ;;  %s4229_s24 = smov 40  }
 0x2a6   : > { %3006 = vmatpush3.bf16.msra.mxu1 %v3423_v2  ;;  %s4230_s25 = smov 8   ;;  %s4231_s8 = smov 16  }
 0x2a7   : > { %3011 = vmatprep.subr.bf16.mxu1 %v4217_v0  ;;  %s4232_s30 = smov 24   ;;  %s2941_s28 = sshll.u32 %s5341_s26, 7 }
 0x2a8   : > { %p5363_p3 = scmp.ne.s32.totalorder %s5325_s22, 0  ;;  %s4233_s26 = smov [#allocation35]  }
 0x2a9   : > { %3008 = vmatmul.mubr.msk.bf16.vlgmr.msra.gmra.mrb[0].mxu1 %vm1009_vm1, %v4958_v3 }
 0x2aa   : > { %3013 = vmatprep.mubr.msk.bf16.mxu1 %vm4218_vm0, %v4217_v0 }
 0x37c   : > { %v1047_v5 = vpop.f32.mrb[0].mxu1 }
 0x37d   : > { %v1048_v6 = vadd.f32 %v2884_v4, %v1047_v5  ;;  %v3009_v7 = vpop.f32.mrb[1].mxu1 }
 0x37e   : > { %v1050_v8 = vpop.f32.mrb[2].mxu1 }
 0x37f   : > { %v4965_v9 = vpack.c.bf16 %v1048_v6, %v1048_v6  ;;  %v3010_v10 = vpop.f32.mrb[3].mxu1 }
 0x381   : > { %1126 = vrot.lane.b32.xlu1 %v4965_v9, %s4219_s23  ;;  %1063 = vrot.lane.b32.xlu0 %v4965_v9, %s4220_s5 }
 0x385   : > { %1177 = vrot.lane.b32.xlu1 %v4965_v9, %s4221_s7 }
 0x3f3   : > { %v1064_v11 = vpop.permute.xlu0 %1063  ;;  %v1127_v13 = vpop.permute.xlu1 %1126 }
 0x3f4   : > { %v1070_v12 = vsel %vm1065_vm2, %v1064_v11, 0  ;;  %v1133_v14 = vsel %vm1131_vm3, %v1127_v13, 0 }
 0x3f5   : > { %3012 = vmatpush3.bf16.xpose.msra.mxu1 %v1070_v12 }
 0x3f6   : > { %3017 = vmatprep.subr.bf16.mxu1 %v4217_v0 }
 0x3f7   : > { %v1178_v30 = vpop.permute.xlu1 %1177 }
 0x3f8   : > { %v1183_v36 = vsel %vm1065_vm2, %v1178_v30, 0 }
 0x3fc   : > { %3014 = vmatmul.mubr.msk.bf16.vlgmr.msra.gmra.mrb[4].mxu1 %vm1065_vm2, %v4965_v9 }
 0x3fd   : > { %3018 = vmatpush3.bf16.msra.mxu1 %v1133_v14  ;;  %3019 = vmatprep.mubr.msk.bf16.mxu1 %vm4218_vm0, %v4217_v0 }
 0x3fe   : > { %3023 = vmatprep.subr.bf16.mxu1 %v4217_v0 }
 0x4cf   : > { %v1106_v18 = vpop.f32.mrb[4].mxu1 }
 0x4d0   : > { %v1112_v19 = vmul.f32 0.35355338, %v1106_v18  ;;  %v3015_v20 = vpop.f32.mrb[5].mxu1 }
 0x4d1   : > { %v1109_v21 = vpop.f32.mrb[6].mxu1 }
 0x4d2   : > { %v3016_v22 = vpop.f32.mrb[7].mxu1  ;;  %v1113_v23 = vadd.f32 %v1112_v19, %v4982_v17 }
 0x4d4   : > { %v1114_v24 = vsel %vm1065_vm2, %v1113_v23, -inf }
 0x4d5   : > { %1115 = vmax.xlane.f32.xlu0 %v1114_v24 }
 0x4eb   : > { %1401 = vrot.lane.b32.xlu0 %v4965_v9, %s4222_s6 }
 0x562   : > { %v1116_v25 = vpop.xlane.xlu0 %1115 }
 0x563   : > { %v1117_v26 = vsub.f32 %v1113_v23, %v1116_v25 }
 0x565   : > { %v1118_v27 = vmul.f32 1.442695, %v1117_v26 }
 0x566   : > { %v1402_v39 = vpop.permute.xlu0 %1401 }
 0x567   : > { %3442 = vpow2.f32 %v1118_v27  ;;  %v1407_v41 = vsel %vm1065_vm2, %v1402_v39, 0 }
 0x571   : > { %v3443_v28 = vpop.eup %3442 }
 0x572   : > { %v1120_v29 = vsel %vm1065_vm2, %v3443_v28, 0.0 }
 0x573   : > { %1121 = vadd.xlane.f32.xlu1 %v1120_v29 }
 0x584   : > { %1175 = vrot.lane.b32.xlu1 %v4965_v9, %s4223_s20 }
 0x588   : > { %1289 = vrot.lane.b32.xlu1 %v4965_v9, %s4224_s12 }
 0x58c   : > { %1287 = vrot.lane.b32.xlu1 %v4965_v9, %s4225_s13 }
 0x590   : > { %1399 = vrot.lane.b32.xlu1 %v4965_v9, %s4226_s14 }
 0x600   : > { %v1122_v31 = vpop.xlane.xlu1 %1121 }
 0x601   : > { %3444 = vrcp.f32 %v1122_v31 }
 0x604   : > { %v1176_v35 = vpop.permute.xlu1 %1175 }
 0x608   : > { %v1290_v37 = vpop.permute.xlu1 %1289 }
 0x609   : > { %v1295_v38 = vsel %vm1065_vm2, %v1290_v37, 0 }
 0x60b   : > { %v3445_v32 = vpop.eup %3444 }
 0x60c   : > { %v1124_v33 = vmul.f32 %v3445_v32, %v3443_v28  ;;  %v1288_v40 = vpop.permute.xlu1 %1287 }
 0x60e   : > { %v1125_v34 = vpack.c.bf16 %v1124_v33, %v1124_v33 }
 0x610   : > { %3020 = vmatmul.mubr.msk.bf16.vlgmr.msra.gmra.mrb[8].mxu1 %vm1065_vm2, %v1125_v34  ;;  %v1400_v42 = vpop.permute.xlu1 %1399 }
 0x611   : > { %3024 = vmatpush3.bf16.xpose.msra.mxu1 %v1183_v36  ;;  %3025 = vmatprep.mubr.msk.bf16.mxu1 %vm4218_vm0, %v4217_v0 }
 0x612   : > { %3035 = vmatprep.subr.bf16.mxu1 %v4217_v0 }
 0x618   : > { %3026 = vmatmul.mubr.msk.bf16.vlgmr.msra.gmra.mrb[12].mxu1 %vm1065_vm2, %v1176_v35 }
 0x619   : > { %3036 = vmatpush3.bf16.xpose.msra.mxu1 %v1295_v38  ;;  %3037 = vmatprep.mubr.msk.bf16.mxu1 %vm4218_vm0, %v4217_v0 }
 0x61a   : > { %3047 = vmatprep.subr.bf16.mxu1 %v4217_v0 }
 0x620   : > { %3038 = vmatmul.mubr.msk.bf16.vlgmr.msra.gmra.mrb[16].mxu1 %vm1065_vm2, %v1288_v40 }
 0x621   : > { %3048 = vmatpush3.bf16.xpose.msra.mxu1 %v1407_v41  ;;  %3049 = vmatprep.mubr.msk.bf16.mxu1 %vm4218_vm0, %v4217_v0 }
 0x622   : > { %3059 = vmatprep.subr.bf16.mxu1 %v4217_v0 }
 0x628   : > { %3050 = vmatmul.mubr.msk.bf16.vlgmr.msra.gmra.mrb[20].mxu1 %vm1065_vm2, %v1400_v42 }
 0x629   : > { %3063 = vmatprep.mubr.msk.bf16.mxu1 %vm4218_vm0, %v4217_v0 }
 0x6e3   : > { %v5015_v43 = vpop.f32.mrb[8].mxu1 }
 0x6e4   : > { %v3021_v44 = vpop.f32.mrb[9].mxu1 }
 0x6e5   : > { %v1172_v45 = vpop.f32.mrb[10].mxu1  ;;  %v3424_v44 = vld [vmem:[#allocation13] sm:$0xff]  }
 0x6e6   : > { %v3022_v46 = vpop.f32.mrb[11].mxu1  ;;  %3060 = vmatpush3.bf16.msra.mxu1 %v3424_v44  ;;  %v3425_v45 = vld [vmem:[#allocation13 + $0x8] sm:$0xff]  }
 0x6e7   : > { %3061 = vmatprep.subr.bf16.mxu1 %v4217_v0 }
 0x6ea   : > { %3062 = vmatpush3.bf16.msra.mxu1 %v3425_v45 }
 0x6eb   : > { %v1219_v47 = vpop.f32.mrb[12].mxu1  ;;  %3075 = vmatprep.subr.bf16.mxu1 %v4217_v0 }
 0x6ec   : > { %v1225_v48 = vmul.f32 0.35355338, %v1219_v47  ;;  %v3027_v49 = vpop.f32.mrb[13].mxu1 }
 0x6ed   : > { %v1222_v50 = vpop.f32.mrb[14].mxu1 }
 0x6ee   : > { %v3028_v51 = vpop.f32.mrb[15].mxu1  ;;  %v1226_v52 = vadd.f32 %v1225_v48, %v4982_v17 }
 0x6f0   : > { %v1227_v53 = vsel %vm1065_vm2, %v1226_v52, -inf }
 0x6f1   : > { %1228 = vmax.xlane.f32.xlu1 %v1227_v53 }
 0x6f3   : > { %v1331_v54 = vpop.f32.mrb[16].mxu1 }
 0x6f4   : > { %v1337_v55 = vmul.f32 0.35355338, %v1331_v54  ;;  %v3039_v56 = vpop.f32.mrb[17].mxu1 }
 0x6f5   : > { %v1334_v57 = vpop.f32.mrb[18].mxu1 }
 0x6f6   : > { %v3040_v58 = vpop.f32.mrb[19].mxu1  ;;  %v1338_v59 = vadd.f32 %v1337_v55, %v4982_v17 }
 0x6f8   : > { %v1339_v60 = vsel %vm1065_vm2, %v1338_v59, -inf }
 0x6f9   : > { %1340 = vmax.xlane.f32.xlu0 %v1339_v60 }
 0x6fb   : > { %v1443_v61 = vpop.f32.mrb[20].mxu1 }
 0x6fc   : > { %v1449_v62 = vmul.f32 0.35355338, %v1443_v61  ;;  %v3051_v63 = vpop.f32.mrb[21].mxu1  ;;  %v2897_v61 = vld [vmem:[#allocation14] ss:$0 sm:$0xff] }
 0x6fd   : > { %v1446_v1 = vpop.f32.mrb[22].mxu1 }
 0x6fe   : > { %v3052_v2 = vpop.f32.mrb[23].mxu1  ;;  %v1450_v4 = vadd.f32 %v1449_v62, %v4982_v17  ;;  %v983_v62 = vunpack.c.l.bf16 %v4958_v3  ;;  %v3427_v3 = vld [vmem:[#allocation20 + $0x8] sm:$0xff]  }
 0x700   : > { %v1451_v5 = vsel %vm1065_vm2, %v1450_v4, -inf }
 0x701   : > { %1452 = vmax.xlane.f32.xlu1 %v1451_v5 }
 0x77e   : > { %v1229_v6 = vpop.xlane.xlu1 %1228 }
 0x77f   : > { %v1230_v7 = vsub.f32 %v1226_v52, %v1229_v6 }
 0x781   : > { %v1231_v8 = vmul.f32 1.442695, %v1230_v7 }
 0x783   : > { %3446 = vpow2.f32 %v1231_v8 }
 0x786   : > { %v1341_v17 = vpop.xlane.xlu0 %1340 }
 0x787   : > { %v1342_v18 = vsub.f32 %v1338_v59, %v1341_v17 }
 0x789   : > { %v1343_v19 = vmul.f32 1.442695, %v1342_v18 }
 0x78d   : > { %v3447_v10 = vpop.eup %3446 }
 0x78e   : > { %v1453_v11 = vpop.xlane.xlu1 %1452  ;;  %v1233_v12 = vsel %vm1065_vm2, %v3447_v10, 0.0 }
 0x78f   : > { %v1454_v13 = vsub.f32 %v1450_v4, %v1453_v11  ;;  %1234 = vadd.xlane.f32.xlu1 %v1233_v12 }
 0x791   : > { %v1455_v14 = vmul.f32 1.442695, %v1454_v13  ;;  %v3426_v13 = vld [vmem:[#allocation20] sm:$0xff]  }
 0x793   : > { %3448 = vpow2.f32 %v1455_v14  ;;  %v984_v14 = vld [vmem:[%s4899_s10] sm:$0xf]  ;;  %s2883_s10 = sshll.u32 %s4888_s21, 3 }
 0x794   : > { %3450 = vpow2.f32 %v1343_v19  ;;  %s980_s3 = scalar_lea.vmem [#allocation35], %s2883_s10 }
 0x795   : > { %s2553_s23 = sshll.u32 %s980_s3, 4  ;;  %s5179_s23 = int_to_ptr.vmem [resolvable:$true] %s2553_s23 }
 0x79d   : > { %v3449_v15 = vpop.eup %3448 }
 0x79e   : > { %v1457_v16 = vsel %vm1065_vm2, %v3449_v15, 0.0  ;;  %v3451_v20 = vpop.eup %3450 }
 0x79f   : > { %1458 = vadd.xlane.f32.xlu0 %v1457_v16  ;;  %v1345_v21 = vsel %vm1065_vm2, %v3451_v20, 0.0  ;;  %v3429_v16 = vld [vmem:[#allocation17 + $0x8] sm:$0xff]  }
 0x7a0   : > { %1239 = vrot.lane.b32.xlu1 %v4965_v9, %s4227_s4 }
 0x7b5   : > { %1351 = vrot.lane.b32.xlu0 %v4965_v9, %s4228_s1 }
 0x7c4   : > { %1346 = vadd.xlane.f32.xlu1 %v1345_v21  ;;  %v2901_v21 = vld [vmem:[#allocation16] ss:$0 sm:$0xff] }
 0x7d5   : > { %1463 = vrot.lane.b32.xlu1 %v4965_v9, %s4229_s24 }
 0x81c   : > { %v1235_v22 = vpop.xlane.xlu1 %1234 }
 0x81d   : > { %3452 = vrcp.f32 %v1235_v22 }
 0x820   : > { %v1240_v23 = vpop.permute.xlu1 %1239 }
 0x821   : > { %v1245_v24 = vsel %vm1131_vm3, %v1240_v23, 0  ;;  %v2902_v23 = vld [vmem:[#allocation16 + $0x1] ss:$0 sm:$0xff] }
 0x822   : > { %3030 = vmatpush3.bf16.msra.mxu0 %v1245_v24 }
 0x823   : > { %3041 = vmatprep.subr.bf16.mxu0 %v4217_v0 }
 0x827   : > { %v3453_v25 = vpop.eup %3452 }
 0x828   : > { %v1237_v26 = vmul.f32 %v3453_v25, %v3447_v10 }
 0x82a   : > { %v1238_v27 = vpack.c.bf16 %v1237_v26, %v1237_v26 }
 0x82c   : > { %v1459_v28 = vpop.xlane.xlu0 %1458  ;;  %3032 = vmatmul.mubr.msk.bf16.vlgmr.msra.gmra.mrb[0].mxu0 %vm1065_vm2, %v1238_v27  ;;  %v2907_v27 = vld [vmem:[#allocation22] ss:$0 sm:$0xff] }
 0x82d   : > { %3043 = vmatprep.mubr.msk.bf16.mxu0 %vm4218_vm0, %v4217_v0 }
 0x830   : > { %v1352_v29 = vpop.permute.xlu0 %1351 }
 0x831   : > { %v1357_v9 = vsel %vm1131_vm3, %v1352_v29, 0 }
 0x832   : > { %3042 = vmatpush3.bf16.msra.mxu0 %v1357_v9 }
 0x833   : > { %3053 = vmatprep.subr.bf16.mxu0 %v4217_v0 }
 0x851   : > { %v1347_v30 = vpop.xlane.xlu1 %1346 }
 0x852   : > { %3454 = vrcp.f32 %v1347_v30 }
 0x853   : > { %3456 = vrcp.f32 %v1459_v28 }
 0x855   : > { %v1464_v33 = vpop.permute.xlu1 %1463 }
 0x856   : > { %v1469_v36 = vsel %vm1131_vm3, %v1464_v33, 0 }
 0x85c   : > { %v3455_v31 = vpop.eup %3454 }
 0x85d   : > { %v1349_v32 = vmul.f32 %v3455_v31, %v3451_v20  ;;  %v3457_v35 = vpop.eup %3456 }
 0x85e   : > { %v1461_v37 = vmul.f32 %v3457_v35, %v3449_v15  ;;  %v3428_v15 = vld [vmem:[#allocation17] sm:$0xff]  }
 0x85f   : > { %v1350_v34 = vpack.c.bf16 %v1349_v32, %v1349_v32 }
 0x860   : > { %v1462_v38 = vpack.c.bf16 %v1461_v37, %v1461_v37 }
 0x861   : > { %3044 = vmatmul.mubr.msk.bf16.vlgmr.msra.gmra.mrb[4].mxu0 %vm1065_vm2, %v1350_v34  ;;  %v2903_v34 = vld [vmem:[#allocation19] ss:$0 sm:$0xff] }
 0x862   : > { %3054 = vmatpush3.bf16.msra.mxu0 %v1469_v36  ;;  %3055 = vmatprep.mubr.msk.bf16.mxu0 %vm4218_vm0, %v4217_v0 }
 0x863   : > { %3067 = vmatprep.subr.bf16.mxu0 %v4217_v0 }
 0x869   : > { %3056 = vmatmul.mubr.msk.bf16.vlgmr.msra.gmra.mrb[8].mxu0 %vm1065_vm2, %v1462_v38 }
 0x86a   : > { %3071 = vmatprep.mubr.msk.bf16.mxu0 %vm4218_vm0, %v4217_v0  ;;  %3068 = vmatpush3.bf16.msra.mxu0 %v3428_v15 }
 0x86b   : > { %3069 = vmatprep.subr.bf16.mxu0 %v4217_v0 }
 0x86e   : > { %3070 = vmatpush3.bf16.msra.mxu0 %v3429_v16 }
 0x86f   : > { %3083 = vmatprep.subr.bf16.mxu0 %v4217_v0 }
 0x8ff   : > { %v1281_v39 = vpop.f32.mrb[0].mxu0 }
 0x900   : > { %1512 = vrot.lane.b32.xlu1 %v1281_v39, %s4230_s25  ;;  %v3033_v40 = vpop.f32.mrb[1].mxu0 }
 0x901   : > { %v1284_v41 = vpop.f32.mrb[2].mxu0 }
 0x902   : > { %v3034_v42 = vpop.f32.mrb[3].mxu0 }
 0x934   : > { %v1393_v46 = vpop.f32.mrb[4].mxu0 }
 0x935   : > { %1516 = vrot.lane.b32.xlu0 %v1393_v46, %s4231_s8  ;;  %v3045_v47 = vpop.f32.mrb[5].mxu0 }
 0x936   : > { %v1396_v48 = vpop.f32.mrb[6].mxu0 }
 0x937   : > { %v3046_v49 = vpop.f32.mrb[7].mxu0 }
 0x93c   : > { %v1505_v50 = vpop.f32.mrb[8].mxu0 }
 0x93d   : > { %1520 = vrot.lane.b32.xlu1 %v1505_v50, %s4232_s30  ;;  %v3057_v51 = vpop.f32.mrb[9].mxu0 }
 0x93e   : > { %v1508_v52 = vpop.f32.mrb[10].mxu0 }
 0x93f   : > { %v3058_v53 = vpop.f32.mrb[11].mxu0 }
 0x972   : > { %v1513_v54 = vpop.permute.xlu1 %1512 }
 0x973   : > { %v1523_v56 = vsel %vm1065_vm2, %v5015_v43, %v1513_v54 }
 0x9a7   : > { %v1517_v55 = vpop.permute.xlu0 %1516 }
 0x9a8   : > { %v1525_v57 = vsel %vm1524_vm4, %v1523_v56, %v1517_v55 }
 0x9af   : > { %v1521_v58 = vpop.permute.xlu1 %1520 }
 0x9b0   : > { %v1527_v59 = vsel %vm1526_vm5, %v1525_v57, %v1521_v58 }
 0x9b1   : > { %v1528_v60 = vpack.c.bf16 %v1527_v59, %v1527_v59 }
 0x9b3   : > { %3064 = vmatmul.mubr.msk.bf16.vlgmr.msra.gmra.mrb[24].mxu1 %vm1009_vm1, %v1528_v60 }
 0x9b4   : > { %3079 = vmatprep.mubr.msk.bf16.mxu1 %vm4218_vm0, %v4217_v0  ;;  %3076 = vmatpush3.bf16.msra.mxu1 %v3426_v13 }
 0x9b5   : > { %3077 = vmatprep.subr.bf16.mxu1 %v4217_v0 }
 0x9b8   : > { %3078 = vmatpush3.bf16.msra.mxu1 %v3427_v3 }
 0x9b9   : > { %3089 = vmatprep.subr.bf16.mxu1 %v4217_v0 }
 0x9bb   : > { %3080 = vmatmul.mubr.msk.bf16.vlgmr.msra.gmra.mrb[28].mxu1 %vm1009_vm1, %v984_v14 }
 0x9bc   : > { %3091 = vmatprep.mubr.msk.bf16.mxu1 %vm4218_vm0, %v4217_v0 }
 0xa86   : > { %v1589_v63 = vpop.f32.mrb[24].mxu1 }
 0xa87   : > { %v1590_v1 = vadd.f32 %v2897_v61, %v1589_v63  ;;  %v3065_v2 = vpop.f32.mrb[25].mxu1 }
 0xa88   : > { %v1592_v4 = vpop.f32.mrb[26].mxu1 }
 0xa89   : > { %v3066_v5 = vpop.f32.mrb[27].mxu1  ;;  %v1595_v43 = vadd.f32 %v1590_v1, %v983_v62 }
 0xa8b   : > { %v1598_v6 = vsel %vm1009_vm1, %v1595_v43, 0.0 }
 0xa8c   : > { %1599 = vadd.xlane.f32.xlu0 %v1598_v6 }
 0xa8e   : > { %v1750_v28 = vpop.f32.mrb[28].mxu1 }
 0xa8f   : > { %v1751_v29 = vadd.f32 %v2907_v27, %v1750_v28  ;;  %v3081_v9 = vpop.f32.mrb[29].mxu1 }
 0xa90   : > { %v1753_v30 = vpop.f32.mrb[30].mxu1 }
 0xa91   : > { %v5074_v31 = vpack.c.bf16 %v1751_v29, %v1751_v29  ;;  %v3082_v32 = vpop.f32.mrb[31].mxu1 }
 0xa93   : > { %v1761_v33 = vsel %vm1065_vm2, %v5074_v31, 0 }
 0xaa2   : > { %1868 = vrot.lane.b32.xlu0 %v5074_v31, %s4223_s20 }
 0xaa6   : > { %1979 = vrot.lane.b32.xlu0 %v5074_v31, %s4225_s13 }
 0xaaa   : > { %2090 = vrot.lane.b32.xlu0 %v5074_v31, %s4226_s14 }
 0xb19   : > { %v1600_v7 = vpop.xlane.xlu0 %1599 }
 0xb1a   : > { %v1602_v8 = vmul.f32 0.03125, %v1600_v7 }
 0xb1c   : > { %v1603_v10 = vsub.f32 %v1595_v43, %v1602_v8 }
 0xb1d   : > { %v1869_v39 = vpop.permute.xlu0 %1868 }
 0xb1e   : > { %v1604_v11 = vmul.f32 %v1603_v10, %v1603_v10  ;;  %v1874_v42 = vsel %vm1065_vm2, %v1869_v39, 0 }
 0xb20   : > { %v1605_v12 = vsel %vm1009_vm1, %v1604_v11, 0.0 }
 0xb21   : > { %1606 = vadd.xlane.f32.xlu1 %v1605_v12  ;;  %v1980_v44 = vpop.permute.xlu0 %1979 }
 0xb22   : > { %v1985_v46 = vsel %vm1065_vm2, %v1980_v44, 0 }
 0xb25   : > { %v2091_v47 = vpop.permute.xlu0 %2090 }
 0xb26   : > { %v2096_v49 = vsel %vm1065_vm2, %v2091_v47, 0 }
 0xbae   : > { %v1607_v17 = vpop.xlane.xlu1 %1606 }
 0xbaf   : > { %v1608_v18 = vmul.f32 0.03125, %v1607_v17 }
 0xbb1   : > { %v1609_v19 = vadd.f32 1e-05, %v1608_v18 }
 0xbb3   : > { %3458 = vrsqrt.f32 %v1609_v19 }
 0xbbd   : > { %v3459_v20 = vpop.eup %3458 }
 0xbbe   : > { %v1611_v22 = vmul.f32 %v3459_v20, %v1603_v10 }
 0xbc0   : > { %v1616_v24 = vmul.f32 %v2901_v21, %v1611_v22 }
 0xbc2   : > { %v5067_v25 = vadd.f32 %v2902_v23, %v1616_v24 }
 0xbc4   : > { %v1622_v26 = vpack.c.bf16 %v5067_v25, %v5067_v25 }
 0xbc6   : > { %3072 = vmatmul.mubr.msk.bf16.vlgmr.msra.gmra.mrb[12].mxu0 %vm1009_vm1, %v1622_v26 }
 0xbc7   : > { %3085 = vmatprep.mubr.msk.bf16.mxu0 %vm4218_vm0, %v4217_v0  ;;  %3084 = vmatpush3.bf16.xpose.msra.mxu0 %v1761_v33 }
 0xbc8   : > { %3095 = vmatprep.subr.bf16.mxu0 %v4217_v0 }
 0xc99   : > { %v1683_v35 = vpop.f32.mrb[12].mxu0 }
 0xc9a   : > { %v1684_v36 = vadd.f32 %v2903_v34, %v1683_v35  ;;  %v3073_v37 = vpop.f32.mrb[13].mxu0 }
 0xc9b   : > { %v1686_v38 = vpop.f32.mrb[14].mxu0 }
 0xc9c   : > { %v1689_v40 = vpack.c.bf16 %v1684_v36, %v1684_v36  ;;  %v3074_v41 = vpop.f32.mrb[15].mxu0 }
 0xc9e   : > { %1866 = vrot.lane.b32.xlu1 %v1689_v40, %s4223_s20  ;;  %3086 = vmatmul.mubr.msk.bf16.vlgmr.msra.gmra.mrb[16].mxu0 %vm1065_vm2, %v1689_v40 }
 0xc9f   : > { %3096 = vmatpush3.bf16.xpose.msra.mxu0 %v1874_v42  ;;  %3097 = vmatprep.mubr.msk.bf16.mxu0 %vm4218_vm0, %v4217_v0 }
 0xca0   : > { %3107 = vmatprep.subr.bf16.mxu0 %v4217_v0 }
 0xca2   : > { %1977 = vrot.lane.b32.xlu1 %v1689_v40, %s4225_s13  ;;  %s4078_s13 = scalar_lea.vmem %s5179_s23, 128 }
 0xca3   : > { %p4079_p13 = scmp.ne.s32.totalorder %s5179_s23, %s4078_s13 }
 0xca5   : > { %p4080_p2 = pnand %p4079_p13, %p5363_p3 }
 0xca6   : > { %2088 = vrot.lane.b32.xlu1 %v1689_v40, %s4226_s14  ;;  %s4082_s14 = sshll.u32 %s4233_s26, 4  ;;  %s4083_s14 = int_to_ptr.vmem [resolvable:$false] %s4082_s14 }
 0xca7   : > { %p4081_p0 = pneg %p4080_p2  ;;  %s4084_s4 = scalar_lea.vmem %s4083_s14, 256 }
 0xca8   : > { %p4085_p11 = scmp.lt.s32.totalorder %s5179_s23, %s4083_s14  ;;  %p4086_p12 = scmp.lt.s32.totalorder %s4084_s4, %s4078_s13 }
 0xcaa   : > { %p4087_p10 = por %p4086_p12, %p4085_p11 }
 0xcac   : > { %p4088_p8 = pnand %p4087_p10, %p4081_p0 }
 0xd10   : > { %v1867_v45 = vpop.permute.xlu1 %1866 }
 0xd11   : > { %3098 = vmatmul.mubr.msk.bf16.vlgmr.msra.gmra.mrb[20].mxu0 %vm1065_vm2, %v1867_v45 }
 0xd12   : > { %3108 = vmatpush3.bf16.xpose.msra.mxu0 %v1985_v46  ;;  %3109 = vmatprep.mubr.msk.bf16.mxu0 %vm4218_vm0, %v4217_v0 }
 0xd13   : > { %3119 = vmatprep.subr.bf16.mxu0 %v4217_v0 }
 0xd14   : > { %v1978_v48 = vpop.permute.xlu1 %1977 }
 0xd18   : > { %v2089_v50 = vpop.permute.xlu1 %2088 }
 0xd19   : > { %3110 = vmatmul.mubr.msk.bf16.vlgmr.msra.gmra.mrb[24].mxu0 %vm1065_vm2, %v1978_v48 }
 0xd1a   : > { %3120 = vmatpush3.bf16.xpose.msra.mxu0 %v2096_v49  ;;  %3121 = vmatprep.mubr.msk.bf16.mxu0 %vm4218_vm0, %v4217_v0 }
 0xd1b   : > { %3131 = vmatprep.subr.bf16.mxu0 %v4217_v0 }
 0xd21   : > { %3122 = vmatmul.mubr.msk.bf16.vlgmr.msra.gmra.mrb[28].mxu0 %vm1065_vm2, %v2089_v50 }
 0xd22   : > { %3135 = vmatprep.mubr.msk.bf16.mxu0 %vm4218_vm0, %v4217_v0 }
 0xd71   : > { %v1797_v51 = vpop.f32.mrb[16].mxu0 }
 0xd72   : > { %v1803_v52 = vmul.f32 0.35355338, %v1797_v51  ;;  %v3087_v53 = vpop.f32.mrb[17].mxu0 }
 0xd73   : > { %v1800_v54 = vpop.f32.mrb[18].mxu0 }
 0xd74   : > { %v3088_v55 = vpop.f32.mrb[19].mxu0  ;;  %v1804_v56 = vsel %vm1065_vm2, %v1803_v52, -inf }
 0xd75   : > { %1805 = vmax.xlane.f32.xlu0 %v1804_v56 }
 0xde4   : > { %v1910_v57 = vpop.f32.mrb[20].mxu0 }
 0xde5   : > { %v1916_v58 = vmul.f32 0.35355338, %v1910_v57  ;;  %v3099_v59 = vpop.f32.mrb[21].mxu0 }
 0xde6   : > { %v1913_v60 = vpop.f32.mrb[22].mxu0 }
 0xde7   : > { %v3100_v61 = vpop.f32.mrb[23].mxu0  ;;  %v1917_v62 = vsel %vm1065_vm2, %v1916_v58, -inf }
 0xde8   : > { %1918 = vmax.xlane.f32.xlu1 %v1917_v62  ;;  %v3430_v61 = vld [vmem:[#allocation23] sm:$0xff]  }
 0xde9   : > { %3132 = vmatpush3.bf16.msra.mxu0 %v3430_v61 }
 0xdea   : > { %3133 = vmatprep.subr.bf16.mxu0 %v4217_v0 }
 0xdec   : > { %v2021_v63 = vpop.f32.mrb[24].mxu0 }
 0xded   : > { %v2027_v1 = vmul.f32 0.35355338, %v2021_v63  ;;  %v3111_v2 = vpop.f32.mrb[25].mxu0 }
 0xdee   : > { %v2024_v4 = vpop.f32.mrb[26].mxu0 }
 0xdef   : > { %v3112_v5 = vpop.f32.mrb[27].mxu0  ;;  %v2028_v43 = vsel %vm1065_vm2, %v2027_v1, -inf  ;;  %v3431_v4 = vld [vmem:[#allocation23 + $0x8] sm:$0xff]  }
 0xdf0   : > { %2029 = vmax.xlane.f32.xlu0 %v2028_v43  ;;  %3134 = vmatpush3.bf16.msra.mxu0 %v3431_v4 }
 0xdf1   : > { %3147 = vmatprep.subr.bf16.mxu0 %v4217_v0 }
 0xdf4   : > { %v2132_v6 = vpop.f32.mrb[28].mxu0 }
 0xdf5   : > { %v2138_v7 = vmul.f32 0.35355338, %v2132_v6  ;;  %v3123_v8 = vpop.f32.mrb[29].mxu0 }
 0xdf6   : > { %v2135_v10 = vpop.f32.mrb[30].mxu0 }
 0xdf7   : > { %v3124_v11 = vpop.f32.mrb[31].mxu0  ;;  %v2139_v12 = vsel %vm1065_vm2, %v2138_v7, -inf }
 0xdf8   : > { %2140 = vmax.xlane.f32.xlu0 %v2139_v12 }
 0xe02   : > { %v1806_v13 = vpop.xlane.xlu0 %1805 }
 0xe03   : > { %v1807_v3 = vsub.f32 %v1803_v52, %v1806_v13 }
 0xe05   : > { %v1808_v14 = vmul.f32 1.442695, %v1807_v3 }
 0xe07   : > { %3460 = vpow2.f32 %v1808_v14 }
 0xe11   : > { %v3461_v15 = vpop.eup %3460 }
 0xe12   : > { %v1810_v16 = vsel %vm1065_vm2, %v3461_v15, 0.0 }
 0xe13   : > { %1811 = vadd.xlane.f32.xlu1 %v1810_v16 }
 0xe24   : > { %1817 = vrot.lane.b32.xlu1 %v5074_v31, %s4220_s5 }
 0xe75   : > { %v1919_v17 = vpop.xlane.xlu1 %1918 }
 0xe76   : > { %v1920_v18 = vsub.f32 %v1916_v58, %v1919_v17 }
 0xe78   : > { %v1921_v19 = vmul.f32 1.442695, %v1920_v18 }
 0xe7a   : > { %3462 = vpow2.f32 %v1921_v19  ;;  %v2919_v19 = vld [vmem:[#allocation25] ss:$0 sm:$0xff] }
 0xe7d   : > { %v2030_v20 = vpop.xlane.xlu0 %2029 }
 0xe7e   : > { %v2031_v21 = vsub.f32 %v2027_v1, %v2030_v20 }
 0xe80   : > { %v2032_v22 = vmul.f32 1.442695, %v2031_v21 }
 0xe82   : > { %3464 = vpow2.f32 %v2032_v22 }
 0xe84   : > { %v3463_v23 = vpop.eup %3462 }
 0xe85   : > { %v2141_v24 = vpop.xlane.xlu0 %2140  ;;  %v1923_v26 = vsel %vm1065_vm2, %v3463_v23, 0.0 }
 0xe86   : > { %v2142_v27 = vsub.f32 %v2138_v7, %v2141_v24  ;;  %1924 = vadd.xlane.f32.xlu0 %v1923_v26 }
 0xe88   : > { %v2143_v28 = vmul.f32 1.442695, %v2142_v27 }
 0xe8a   : > { %3466 = vpow2.f32 %v2143_v28 }
 0xe8c   : > { %v3465_v29 = vpop.eup %3464 }
 0xe8d   : > { %v2034_v9 = vsel %vm1065_vm2, %v3465_v29, 0.0 }
 0xe8e   : > { %2035 = vadd.xlane.f32.xlu1 %v2034_v9 }
 0xe94   : > { %v3467_v30 = vpop.eup %3466 }
 0xe95   : > { %v2145_v32 = vsel %vm1065_vm2, %v3467_v30, 0.0 }
 0xe96   : > { %2146 = vadd.xlane.f32.xlu0 %v2145_v32 }
 0xe9f   : > { %2040 = vrot.lane.b32.xlu1 %v5074_v31, %s4224_s12  ;;  %s2540_s12 = scalar_lea.sflag [#allocation4], %s4888_s21 }
 0xea0   : > { %v1812_v33 = vpop.xlane.xlu1 %1811 }
 0xea1   : > { %3468 = vrcp.f32 %v1812_v33  ;;  %v3432_v33 = vld [vmem:[#allocation28] sm:$0xff]  }
 0xea3   : > { %2151 = vrot.lane.b32.xlu1 %v5074_v31, %s4222_s6  ;;  %s5362_s6 = sld [smem:[#allocation72_spill]] }
 0xea4   : > { %v1818_v34 = vpop.permute.xlu1 %1817 }
 0xea5   : > { %v1823_v35 = vsel %vm1131_vm3, %v1818_v34, 0  ;;  %v3433_v34 = vld [vmem:[#allocation28 + $0x8] sm:$0xff]  }
 0xea6   : > { %3090 = vmatpush3.bf16.msra.mxu1 %v1823_v35 }
 0xea7   : > { %3101 = vmatprep.subr.bf16.mxu1 %v4217_v0 }
 0xea9   : > { %s5177_s20 = scalar_lea.hbm %s5362_s6, %s2941_s28 }
 0xeab   : > { %v3469_v36 = vpop.eup %3468 }
 0xeac   : > { %v1814_v37 = vmul.f32 %v3469_v36, %v3461_v15  ;;  %1929 = vrot.lane.b32.xlu0 %v5074_v31, %s4221_s7 }
 0xeae   : > { %v1815_v38 = vpack.c.bf16 %v1814_v37, %v1814_v37 }
 0xeb0   : > { %3092 = vmatmul.mubr.msk.bf16.vlgmr.msra.gmra.mrb[32].mxu1 %vm1065_vm2, %v1815_v38  ;;  %v2923_v38 = vld [vmem:[#allocation26] ss:$0 sm:$0xff] }
 0xeb1   : > { %3103 = vmatprep.mubr.msk.bf16.mxu1 %vm4218_vm0, %v4217_v0 }
 0xf13   : > { %v1925_v39 = vpop.xlane.xlu0 %1924 }
 0xf14   : > { %3470 = vrcp.f32 %v1925_v39 }
 0xf1b   : > { %v2036_v40 = vpop.xlane.xlu1 %2035 }
 0xf1c   : > { %3472 = vrcp.f32 %v2036_v40  ;;  %v2924_v40 = vld [vmem:[#allocation26 + $0x1] ss:$0 sm:$0xff] }
 0xf1e   : > { %v3471_v41 = vpop.eup %3470 }
 0xf1f   : > { %v1927_v44 = vmul.f32 %v3471_v41, %v3463_v23  ;;  %v2041_v47 = vpop.permute.xlu1 %2040 }
 0xf20   : > { %v2046_v49 = vsel %vm1131_vm3, %v2041_v47, 0  ;;  %v3436_v47 = vld [vmem:[#allocation31 + $0x10] sm:$0xff]  }
 0xf21   : > { %v1928_v31 = vpack.c.bf16 %v1927_v44, %v1927_v44 }
 0xf23   : > { %v2147_v42 = vpop.xlane.xlu0 %2146  ;;  %v2152_v51 = vpop.permute.xlu1 %2151 }
 0xf24   : > { %3474 = vrcp.f32 %v2147_v42  ;;  %v2157_v54 = vsel %vm1131_vm3, %v2152_v51, 0  ;;  %v3441_v51 = vld [vmem:[#allocation31 + $0x38] sm:$0xff]  }
 0xf26   : > { %v3473_v48 = vpop.eup %3472 }
 0xf27   : > { %v1930_v45 = vpop.permute.xlu0 %1929  ;;  %v2038_v50 = vmul.f32 %v3473_v48, %v3465_v29  ;;  %v3438_v48 = vld [vmem:[#allocation31 + $0x20] sm:$0xff]  }
 0xf28   : > { %v1935_v46 = vsel %vm1131_vm3, %v1930_v45, 0  ;;  %v3434_v45 = vld [vmem:[#allocation31] sm:$0xff]  }
 0xf29   : > { %3102 = vmatpush3.bf16.msra.mxu1 %v1935_v46  ;;  %v2039_v52 = vpack.c.bf16 %v2038_v50, %v2038_v50  ;;  %v3435_v46 = vld [vmem:[#allocation31 + $0x8] sm:$0xff]   ;;  %v3440_v50 = vld [vmem:[#allocation31 + $0x30] sm:$0xff]  }
 0xf2a   : > { %3113 = vmatprep.subr.bf16.mxu1 %v4217_v0 }
 0xf2c   : > { %3104 = vmatmul.mubr.msk.bf16.vlgmr.msra.gmra.mrb[36].mxu1 %vm1065_vm2, %v1928_v31  ;;  %v3437_v31 = vld [vmem:[#allocation31 + $0x18] sm:$0xff]  }
 0xf2d   : > { %3114 = vmatpush3.bf16.msra.mxu1 %v2046_v49  ;;  %3115 = vmatprep.mubr.msk.bf16.mxu1 %vm4218_vm0, %v4217_v0  ;;  %v3439_v49 = vld [vmem:[#allocation31 + $0x28] sm:$0xff]  }
 0xf2e   : > { %3125 = vmatprep.subr.bf16.mxu1 %v4217_v0  ;;  %v3475_v53 = vpop.eup %3474 }
 0xf2f   : > { %v2149_v55 = vmul.f32 %v3475_v53, %v3467_v30 }
 0xf31   : > { %v2150_v56 = vpack.c.bf16 %v2149_v55, %v2149_v55 }
 0xf34   : > { %3116 = vmatmul.mubr.msk.bf16.vlgmr.msra.gmra.mrb[40].mxu1 %vm1065_vm2, %v2039_v52  ;;  %v2925_v52 = vld [vmem:[#allocation29] ss:$0 sm:$0xff] }
 0xf35   : > { %3126 = vmatpush3.bf16.msra.mxu1 %v2157_v54  ;;  %3127 = vmatprep.mubr.msk.bf16.mxu1 %vm4218_vm0, %v4217_v0 }
 0xf36   : > { %3139 = vmatprep.subr.bf16.mxu1 %v4217_v0 }
 0xf3c   : > { %3128 = vmatmul.mubr.msk.bf16.vlgmr.msra.gmra.mrb[44].mxu1 %vm1065_vm2, %v2150_v56 }
 0xf3d   : > { %3143 = vmatprep.mubr.msk.bf16.mxu1 %vm4218_vm0, %v4217_v0  ;;  %3140 = vmatpush3.bf16.msra.mxu1 %v3432_v33 }
 0xf3e   : > { %3141 = vmatprep.subr.bf16.mxu1 %v4217_v0 }
 0xf41   : > { %3142 = vmatpush3.bf16.msra.mxu1 %v3433_v34 }
 0xf83   : > { %v1859_v57 = vpop.f32.mrb[32].mxu1 }
 0xf84   : > { %v3093_v58 = vpop.f32.mrb[33].mxu1 }
 0xf85   : > { %v1862_v59 = vpop.f32.mrb[34].mxu1 }
 0xf86   : > { %v3094_v60 = vpop.f32.mrb[35].mxu1 }
 0xfff   : > { %v1971_v62 = vpop.f32.mrb[36].mxu1 }
0x1000   : > { %2200 = vrot.lane.b32.xlu0 %v1971_v62, %s4230_s25  ;;  %v3105_v63 = vpop.f32.mrb[37].mxu1 }
0x1001   : > { %v1974_v1 = vpop.f32.mrb[38].mxu1 }
0x1002   : > { %v3106_v2 = vpop.f32.mrb[39].mxu1 }
0x1007   : > { %v2082_v5 = vpop.f32.mrb[40].mxu1 }
0x1008   : > { %2204 = vrot.lane.b32.xlu1 %v2082_v5, %s4231_s8  ;;  %v3117_v43 = vpop.f32.mrb[41].mxu1 }
0x1009   : > { %v2085_v6 = vpop.f32.mrb[42].mxu1 }
0x100a   : > { %v3118_v7 = vpop.f32.mrb[43].mxu1 }
0x100f   : > { %v2193_v8 = vpop.f32.mrb[44].mxu1 }
0x1010   : > { %2208 = vrot.lane.b32.xlu0 %v2193_v8, %s4232_s30  ;;  %v3129_v10 = vpop.f32.mrb[45].mxu1 }
0x1011   : > { %v2196_v11 = vpop.f32.mrb[46].mxu1 }
0x1012   : > { %v3130_v12 = vpop.f32.mrb[47].mxu1 }
0x1072   : > { %v2201_v13 = vpop.permute.xlu0 %2200 }
0x1073   : > { %v2211_v14 = vsel %vm1065_vm2, %v1859_v57, %v2201_v13 }
0x107a   : > { %v2205_v3 = vpop.permute.xlu1 %2204 }
0x107b   : > { %v2212_v15 = vsel %vm1524_vm4, %v2211_v14, %v2205_v3 }
0x1082   : > { %v2209_v16 = vpop.permute.xlu0 %2208 }
0x1083   : > { %v2213_v17 = vsel %vm1526_vm5, %v2212_v15, %v2209_v16 }
0x1084   : > { %v2214_v18 = vpack.c.bf16 %v2213_v17, %v2213_v17 }
0x1086   : > { %3136 = vmatmul.mubr.msk.bf16.vlgmr.msra.gmra.mrb[32].mxu0 %vm1009_vm1, %v2214_v18 }
0x1087   : > { %3163 = vmatprep.mubr.msk.bf16.mxu0 %vm4218_vm0, %v4217_v0  ;;  %3148 = vmatpush3.bf16.msra.mxu0 %v3434_v45 }
0x1088   : > { %3149 = vmatprep.subr.bf16.mxu0 %v4217_v0 }
0x108b   : > { %3150 = vmatpush3.bf16.msra.mxu0 %v3435_v46 }
0x108c   : > { %3151 = vmatprep.subr.bf16.mxu0 %v4217_v0 }
0x108f   : > { %3152 = vmatpush3.bf16.msra.mxu0 %v3436_v47 }
0x1090   : > { %3153 = vmatprep.subr.bf16.mxu0 %v4217_v0 }
0x1093   : > { %3154 = vmatpush3.bf16.msra.mxu0 %v3437_v31 }
0x1094   : > { %3155 = vmatprep.subr.bf16.mxu0 %v4217_v0 }
0x1097   : > { %3156 = vmatpush3.bf16.msra.mxu0 %v3438_v48 }
0x1098   : > { %3157 = vmatprep.subr.bf16.mxu0 %v4217_v0 }
0x109b   : > { %3158 = vmatpush3.bf16.msra.mxu0 %v3439_v49 }
0x109c   : > { %3159 = vmatprep.subr.bf16.mxu0 %v4217_v0 }
0x109f   : > { %3160 = vmatpush3.bf16.msra.mxu0 %v3440_v50 }
0x10a0   : > { %3161 = vmatprep.subr.bf16.mxu0 %v4217_v0 }
0x10a3   : > { %3162 = vmatpush3.bf16.msra.mxu0 %v3441_v51 }
0x1159   : > { %v2275_v20 = vpop.f32.mrb[32].mxu0 }
0x115a   : > { %v2276_v21 = vadd.f32 %v2919_v19, %v2275_v20  ;;  %v3137_v22 = vpop.f32.mrb[33].mxu0  ;;  %v2929_v20 = vld [vmem:[#allocation32] ss:$0 sm:$0xff] }
0x115b   : > { %v2278_v23 = vpop.f32.mrb[34].mxu0 }
0x115c   : > { %v3138_v24 = vpop.f32.mrb[35].mxu0  ;;  %v2281_v26 = vadd.f32 %v2276_v21, %v5067_v25 }
0x115e   : > { %v2284_v27 = vsel %vm1009_vm1, %v2281_v26, 0.0 }
0x115f   : > { %2285 = vadd.xlane.f32.xlu1 %v2284_v27 }
0x11ec   : > { %v2286_v28 = vpop.xlane.xlu1 %2285 }
0x11ed   : > { %v2287_v29 = vmul.f32 0.03125, %v2286_v28 }
0x11ef   : > { %v2288_v9 = vsub.f32 %v2281_v26, %v2287_v29 }
0x11f1   : > { %v2289_v30 = vmul.f32 %v2288_v9, %v2288_v9 }
0x11f3   : > { %v2290_v32 = vsel %vm1009_vm1, %v2289_v30, 0.0 }
0x11f4   : > { %2291 = vadd.xlane.f32.xlu0 %v2290_v32 }
0x1281   : > { %v2292_v35 = vpop.xlane.xlu0 %2291 }
0x1282   : > { %v2293_v36 = vmul.f32 0.03125, %v2292_v35 }
0x1284   : > { %v2294_v37 = vadd.f32 1e-05, %v2293_v36 }
0x1286   : > { %3476 = vrsqrt.f32 %v2294_v37 }
0x1290   : > { %v3477_v25 = vpop.eup %3476 }
0x1291   : > { %v2296_v39 = vmul.f32 %v3477_v25, %v2288_v9  ;;  %v2938_v25 = vld [vmem:[#allocation34] ss:$0 sm:$0xff] }
0x1293   : > { %v2301_v41 = vmul.f32 %v2923_v38, %v2296_v39  ;;  %v2939_v39 = vld [vmem:[#allocation34 + $0x1] ss:$0 sm:$0xff] }
0x1295   : > { %v5157_v42 = vadd.f32 %v2924_v40, %v2301_v41 }
0x1297   : > { %v2307_v44 = vpack.c.bf16 %v5157_v42, %v5157_v42 }
0x1299   : > { %3144 = vmatmul.mubr.msk.bf16.vlgmr.msra.gmra.mrb[48].mxu1 %vm1009_vm1, %v2307_v44 }
0x136c   : > { %v2368_v53 = vpop.f32.mrb[48].mxu1 }
0x136d   : > { %v2369_v54 = vadd.f32 %v2925_v52, %v2368_v53  ;;  %v3145_v55 = vpop.f32.mrb[49].mxu1 }
0x136e   : > { %v2371_v56 = vpop.f32.mrb[50].mxu1 }
0x136f   : > { %v2375_v57 = vmul.f32 0.70710677, %v2369_v54  ;;  %v3146_v58 = vpop.f32.mrb[51].mxu1  ;;  %v2374_v16 = vmul.f32 0.5, %v2369_v54 }
0x1371   : > { %v2376_v59 = vand.u32 2147483647, %v2375_v57  ;;  %vm2395_vm6 = vcmp.ge.f32.partialorder %v2375_v57, 0.0 }
0x1373   : > { %v2377_v60 = vmul.f32 0.3275911, %v2376_v59  ;;  %v2389_v62 = vsub.f32 0.0, %v2376_v59 }
0x1375   : > { %v2378_v61 = vadd.f32 1.0, %v2377_v60  ;;  %v2390_v1 = vmul.f32 %v2389_v62, %v2376_v59 }
0x1377   : > { %3478 = vrcp.f32 %v2378_v61  ;;  %v2391_v5 = vmul.f32 1.442695, %v2390_v1 }
0x1379   : > { %3480 = vpow2.f32 %v2391_v5 }
0x1381   : > { %v3479_v63 = vpop.eup %3478 }
0x1382   : > { %v2380_v2 = vmul.f32 1.0614054, %v3479_v63 }
0x1383   : > { %v3481_v12 = vpop.eup %3480 }
0x1384   : > { %v2381_v4 = vadd.f32 -1.4531521, %v2380_v2 }
0x1386   : > { %v2382_v0 = vmul.f32 %v3479_v63, %v2381_v4 }
0x1388   : > { %v2383_v43 = vadd.f32 1.4214138, %v2382_v0 }
0x138a   : > { %v2384_v6 = vmul.f32 %v3479_v63, %v2383_v43 }
0x138c   : > { %v2385_v7 = vadd.f32 -0.28449672, %v2384_v6 }
0x138e   : > { %v2386_v8 = vmul.f32 %v3479_v63, %v2385_v7 }
0x1390   : > { %v2387_v10 = vadd.f32 0.2548296, %v2386_v8 }
0x1392   : > { %v2388_v11 = vmul.f32 %v3479_v63, %v2387_v10 }
0x1394   : > { %v2393_v13 = vmul.f32 %v3481_v12, %v2388_v11 }
0x1396   : > { %v2394_v3 = vsub.f32 1.0, %v2393_v13 }
0x1398   : > { %v2396_v14 = vsub.f32 0.0, %v2394_v3 }
0x139a   : > { %v2397_v15 = vsel %vm2395_vm6, %v2394_v3, %v2396_v14 }
0x139b   : > { %v2398_v17 = vadd.f32 1.0, %v2397_v15 }
0x139d   : > { %v2399_v18 = vmul.f32 %v2398_v17, %v2374_v16 }
0x139f   : > { %v2400_v19 = vpack.c.bf16 %v2399_v18, %v2399_v18 }
0x13a1   : > { %3164 = vmatmul.mubr.bf16.vlgmr.msra.gmra.mrb[36].mxu0 %v2400_v19 }
0x1474   : > { %v2506_v21 = vpop.f32.mrb[36].mxu0 }
0x1475   : > { %v2507_v22 = vadd.f32 %v2929_v20, %v2506_v21  ;;  %v3165_v23 = vpop.f32.mrb[37].mxu0 }
0x1476   : > { %v2509_v24 = vpop.f32.mrb[38].mxu0 }
0x1477   : > { %v3166_v26 = vpop.f32.mrb[39].mxu0  ;;  %v2512_v27 = vadd.f32 %v2507_v22, %v5157_v42 }
0x1479   : > { %v2515_v28 = vsel %vm1009_vm1, %v2512_v27, 0.0 }
0x147a   : > { %2516 = vadd.xlane.f32.xlu0 %v2515_v28 }
0x1507   : > { %v2517_v29 = vpop.xlane.xlu0 %2516 }
0x1508   : > { %v2518_v9 = vmul.f32 0.03125, %v2517_v29 }
0x150a   : > { %v2519_v30 = vsub.f32 %v2512_v27, %v2518_v9 }
0x150c   : > { %v2520_v32 = vmul.f32 %v2519_v30, %v2519_v30 }
0x150e   : > { %v2521_v33 = vsel %vm1009_vm1, %v2520_v32, 0.0 }
0x150f   : > { %2522 = vadd.xlane.f32.xlu1 %v2521_v33 }
0x159c   : > { %v2523_v34 = vpop.xlane.xlu1 %2522 }
0x159d   : > { %v2524_v35 = vmul.f32 0.03125, %v2523_v34 }
0x159f   : > { %v2525_v36 = vadd.f32 1e-05, %v2524_v35 }
0x15a1   : > { %3482 = vrsqrt.f32 %v2525_v36 }
0x15ab   : > { %v3483_v37 = vpop.eup %3482 }
0x15ac   : > { %v2527_v38 = vmul.f32 %v3483_v37, %v2519_v30 }
0x15ae   : > { %v2532_v40 = vmul.f32 %v2938_v25, %v2527_v38 }
0x15b0   : > { %v2537_v41 = vadd.f32 %v2939_v39, %v2532_v40 }
0x15b2   : > { %2538 = vst.msk [vmem:[%s980_s3] sm:$0xff] %vm1009_vm1, %v2537_v41 }
0x15b3   : > { %4091 = shalt.err (!%p4088_p8)
}
0x15b4   : > { %s4092_s21 = scalar_lea.hbm %s5177_s20, 128  ;;  %s4096_s25 = scalar_lea.hbm %s5362_s6, 256 }
0x15b5   : > { %p4093_p9 = scmp.ne.s32.totalorder %s5177_s20, %s4092_s21  ;;  %p4097_p4 = scmp.lt.u32.totalorder %s5177_s20, %s5362_s6 }
0x15b6   : > { %p4098_p1 = scmp.lt.u32.totalorder %s4096_s25, %s4092_s21  ;;  %p4100_p13 = scmp.lt.u32.totalorder %s4092_s21, %s5177_s20 }
0x15b7   : > { %p4094_p5 = pnand %p4093_p9, %p5363_p3 }
0x15b8   : > { %p4099_p6 = por %p4098_p1, %p4097_p4 }
0x15b9   : > { %p4095_p7 = pneg %p4094_p5 }
0x15ba   : > { %p4101_p2 = por %p4100_p13, %p4099_p6 }
0x15bc   : > { %p4102_p0 = pnand %p4101_p2, %p4095_p7 }
0x15be   : > { %4105 = shalt.err (!%p4102_p0)
}
0x15bf   : > { %3245 = dma.vmem_to_hbm [thread:$0]  (%p5363_p3), %s5179_s23, 128, %s5177_s20, %s2540_s12  }
0x15c0 PF: > { %s5364_s10 = sld [smem:[#allocation50_spill]]  ;;  %s5365_s28 = sld [smem:[#allocation53_spill]] }
0x15c1   : > { %p5366_p11 = scmp.ne.s32.totalorder %s5326_s0, 0 }
0x15c6   : > { %s2565_s3 = sand.u32 1, %s5364_s10   ;;  %p5367_p12 = scmp.ge.s32.totalorder %s5365_s28, 2 }
0x15c7   : > { %s2566_s5 = scalar_lea.sflag [#allocation4], %s2565_s3 }
0x15c8   : > { %p3313_p10 = pnand %p5367_p12, %p5366_p11 }
0x15ca   : > { %4175 = dma.done.wait (!%p3313_p10), %s2566_s5, 128  }
0x15cb   : > { %4177 = vsyncadd (!%p3313_p10), %s2566_s5, 4294967168  ;;  %s5368_s7 = sld [smem:[#allocation51_spill]]  ;;  %s5369_s25 = sld [smem:[#allocation52_spill]] }
0x15cc   : > { %s5370_s13 = smov %s4762_s2  ;;  %p48_p8 = scmp.ge.s32.totalorder %s4751_s27, 4  }
0x15cd   : > { %s5372_s26 = smov %s5370_s13 }
0x15ce   :  { %50 = sbr.rel (!%p48_p8) target bundleno = 35 (0x23), region = 247 }
0x15d1   : > { %s5371_s2 = smov %s5368_s7 }
0x15d5   :  { %2571 = vsyncpa [#allocation3], 1 }
0x15d6   :  { %2573 = vsyncpa [#allocation3 + $0x1], 1 }
0x15d7   :  { %2574 = vsyncpa [#allocation6], 1 }
0x15d8   :  { %2576 = vsyncpa [#allocation6 + $0x1], 1 }
0x15d9   :  { %2577 = vsyncpa [#allocation9], 1 }
0x15da   :  { %2579 = vsyncpa [#allocation9 + $0x1], 1 }
0x15db   :  { %2580 = vsyncpa [#allocation12], 1 }
0x15dc   :  { %2581 = vsyncpa [#allocation15], 1 }
0x15dd   :  { %2582 = vsyncpa [#allocation18], 1 }
0x15de   :  { %2583 = vsyncpa [#allocation21], 1 }
0x15df   :  { %2584 = vsyncpa [#allocation24], 1 }
0x15e0   :  { %2585 = vsyncpa [#allocation27], 1 }
0x15e1   :  { %2586 = vsyncpa [#allocation30], 1 }
0x15e2   :  { %2587 = vsyncpa [#allocation33], 1 }
0x15e3   :  { %2588 = vsyncpa [#allocation4], 1 }
0x15e4   :  { %2590 = vsyncpa [#allocation4 + $0x1], 1 }

</bundles_post_ra>
